<compile_context>
chip_gen: v7x
topology: tpu7x:2x2x1
jax: 0.10.0
libtpu: 0.0.40
codegen_flags: <defaults>
</compile_context>

<pallas_src>
import math
import functools

import jax
import jax.numpy as jnp
from jax.experimental import pallas as pl
from jax.experimental.pallas import tpu as pltpu


# ----------------------------- config (small) --------------------------------
B_SZ = 2          # batch
T_SEQ = 128       # sequence length
C_EMB = 64        # n_embd
N_HEAD = 4        # n_head  (head_dim = 16)
LN_EPS = 1e-5


def _gelu_tanh(x):
    # GELU with tanh approximation (matches nn.GELU(approximate='tanh')).
    c = math.sqrt(2.0 / math.pi)
    return 0.5 * x * (1.0 + jnp.tanh(c * (x + 0.044715 * x * x * x)))


def _layernorm(x, g, b, eps):
    mu = jnp.mean(x, axis=-1, keepdims=True)
    xc = x - mu
    var = jnp.mean(xc * xc, axis=-1, keepdims=True)
    return xc * jax.lax.rsqrt(var + eps) * g + b


# ------------------------------ Pallas kernel --------------------------------
def gpt2_block_kernel(
    x_ref,                              # (T, C) fp32  -- one batch element
    ln1_g_ref, ln1_b_ref,               # (1, C) fp32
    w_qkv_ref, b_qkv_ref,               # (C, 3C) bf16, (1, 3C) fp32  (q-scale baked in)
    w_attn_proj_ref, b_attn_proj_ref,   # (C, C) bf16, (1, C) fp32
    ln2_g_ref, ln2_b_ref,               # (1, C) fp32
    w_fc_ref, b_fc_ref,                 # (C, 4C) bf16, (1, 4C) fp32
    w_mlp_proj_ref, b_mlp_proj_ref,     # (4C, C) bf16, (1, C) fp32
    out_ref,                            # (T, C) fp32
    y_scratch,                          # (T, C) fp32 VMEM -- attention head outputs
    *, n_head, eps,
):
    bf16 = jnp.bfloat16
    x = x_ref[...]                      # (T, C) fp32
    T, C = x.shape
    hd = C // n_head

    # ---- ln_1 + causal self-attention (per batch element) ----
    h = _layernorm(x, ln1_g_ref[0], ln1_b_ref[0], eps)                     # fp32
    qkv = jnp.dot(h.astype(bf16), w_qkv_ref[...],
                  preferred_element_type=jnp.float32) + b_qkv_ref[0]       # (T, 3C)

    # In-kernel (T, T) causal mask: VPU iota/compare, hidden under MXU work.
    row = jax.lax.broadcasted_iota(jnp.int32, (T, T), 0)
    col = jax.lax.broadcasted_iota(jnp.int32, (T, T), 1)
    attn_bias = jnp.where(row >= col, 0.0, -1e30).astype(jnp.float32)

    # Cast q/k/v to bf16 once (3 full casts instead of 12 per-head ones).
    # The 1/sqrt(hd) scale is already baked into the q columns of w_qkv/b_qkv.
    q = qkv[:, 0 * C:1 * C].astype(bf16)
    k = qkv[:, 1 * C:2 * C].astype(bf16)
    v = qkv[:, 2 * C:3 * C].astype(bf16)

    for hh in range(n_head):
        qh = q[:, hh * hd:(hh + 1) * hd]                                   # (T, hd)
        kh = k[:, hh * hd:(hh + 1) * hd]
        vh = v[:, hh * hd:(hh + 1) * hd]
        # scores: contract last dims (no explicit transpose), fp32 accumulate.
        s = jax.lax.dot_general(qh, kh, (((1,), (1,)), ((), ())),
                                preferred_element_type=jnp.float32)        # (T, T)
        s = s + attn_bias
        p = jnp.exp(s - jnp.max(s, axis=-1, keepdims=True))
        inv = pl.reciprocal(jnp.sum(p, axis=-1, keepdims=True), approx=True)
        p = p * inv
        # Write each head's output into its VMEM scratch slice (no concatenate).
        y_scratch[:, hh * hd:(hh + 1) * hd] = jnp.dot(
            p.astype(bf16), vh, preferred_element_type=jnp.float32)        # (T, hd)

    y = jnp.dot(y_scratch[...].astype(bf16), w_attn_proj_ref[...],
                preferred_element_type=jnp.float32) + b_attn_proj_ref[0]

    x1 = x + y                                                             # residual 1

    # ---- ln_2 + MLP ----
    h2 = _layernorm(x1, ln2_g_ref[0], ln2_b_ref[0], eps)
    f = jnp.dot(h2.astype(bf16), w_fc_ref[...],
                preferred_element_type=jnp.float32) + b_fc_ref[0]          # (T, 4C)
    f = _gelu_tanh(f)
    mlp = jnp.dot(f.astype(bf16), w_mlp_proj_ref[...],
                  preferred_element_type=jnp.float32) + b_mlp_proj_ref[0]

    out_ref[...] = x1 + mlp                                                # residual 2


# ---------------------- one-time parameter preparation ------------------------
def prepare_block_params(params, *, n_head=N_HEAD):
    """One-time, out-of-hot-path prep: bake 1/sqrt(head_dim) into the q columns
    of w_qkv/b_qkv and store matmul weights in bf16 (no per-call casts)."""
    (ln1_g, ln1_b, w_qkv, b_qkv, w_ap, b_ap,
     ln2_g, ln2_b, w_fc, b_fc, w_mp, b_mp) = params
    C = w_qkv.shape[0]
    hd = C // n_head
    scale = 1.0 / math.sqrt(hd)        # 0.25 here: exact power-of-two scaling
    col_scale = jnp.concatenate(
        [jnp.full((C,), scale, jnp.float32), jnp.ones((2 * C,), jnp.float32)])
    w_qkv_s = w_qkv * col_scale[None, :]
    b_qkv_s = b_qkv * col_scale[None, :]
    bf = jnp.bfloat16
    return (ln1_g, ln1_b,
            w_qkv_s.astype(bf), b_qkv_s,
            w_ap.astype(bf), b_ap,
            ln2_g, ln2_b,
            w_fc.astype(bf), b_fc,
            w_mp.astype(bf), b_mp)


# ------------------------------ wrapper ---------------------------------------
def gpt2_block(x, prep_params, *, n_head=N_HEAD, eps=LN_EPS):
    B, T, C = x.shape
    M = B * T
    hd = C // n_head

    # Const index_map (block (0,0)) for everything resident across the batch grid.
    const = lambda b: (0, 0)
    in_specs = [
        pl.BlockSpec((T, C), lambda b: (b, 0)),        # x (per batch block)
        pl.BlockSpec((1, C), const),                   # ln1_g
        pl.BlockSpec((1, C), const),                   # ln1_b
        pl.BlockSpec((C, 3 * C), const),               # w_qkv
        pl.BlockSpec((1, 3 * C), const),               # b_qkv
        pl.BlockSpec((C, C), const),                   # w_attn_proj
        pl.BlockSpec((1, C), const),                   # b_attn_proj
        pl.BlockSpec((1, C), const),                   # ln2_g
        pl.BlockSpec((1, C), const),                   # ln2_b
        pl.BlockSpec((C, 4 * C), const),               # w_fc
        pl.BlockSpec((1, 4 * C), const),               # b_fc
        pl.BlockSpec((4 * C, C), const),               # w_mlp_proj
        pl.BlockSpec((1, C), const),                   # b_mlp_proj
    ]
    out_specs = pl.BlockSpec((T, C), lambda b: (b, 0))

    flops = int(2 * M * C * (3 * C)                    # qkv
                + B * n_head * 4 * T * T * hd          # scores + p@v
                + 2 * M * C * C                        # attn proj
                + 2 * (2 * M * C * (4 * C)))           # fc + mlp proj
    transcendentals = int(B * n_head * T * T + M * 4 * C)   # exp + tanh
    bytes_accessed = int(2 * M * C * 4                 # x in + out (fp32)
                         + sum(p.size * p.dtype.itemsize for p in prep_params))

    kernel = functools.partial(gpt2_block_kernel, n_head=n_head, eps=eps)
    out2d = pl.pallas_call(
        kernel,
        out_shape=jax.ShapeDtypeStruct((M, C), jnp.float32),
        grid_spec=pltpu.PrefetchScalarGridSpec(
            num_scalar_prefetch=0,
            grid=(B,),
            in_specs=in_specs,
            out_specs=out_specs,
            scratch_shapes=[pltpu.VMEM((T, C), jnp.float32)],
        ),
        compiler_params=pltpu.CompilerParams(
            dimension_semantics=("parallel",)),
        cost_estimate=pl.CostEstimate(flops=flops,
                                      transcendentals=transcendentals,
                                      bytes_accessed=bytes_accessed),
    )(x.reshape(M, C), *prep_params)
    return out2d.reshape(B, T, C)


# --------------------------- pure-JAX reference --------------------------------
def gpt2_block_ref(x, params, *, n_head=N_HEAD, eps=LN_EPS):
    (ln1_g, ln1_b, w_qkv, b_qkv, w_ap, b_ap,
     ln2_g, ln2_b, w_fc, b_fc, w_mp, b_mp) = params
    B, T, C = x.shape
    hd = C // n_head

    def ln(z, g, b):
        mu = jnp.mean(z, axis=-1, keepdims=True)
        var = jnp.mean((z - mu) ** 2, axis=-1, keepdims=True)
        return (z - mu) * jax.lax.rsqrt(var + eps) * g + b

    h = ln(x, ln1_g[0], ln1_b[0])
    qkv = jnp.einsum('btc,cd->btd', h, w_qkv) + b_qkv[0]
    q, k, v = jnp.split(qkv, 3, axis=-1)
    q = q.reshape(B, T, n_head, hd).transpose(0, 2, 1, 3)
    k = k.reshape(B, T, n_head, hd).transpose(0, 2, 1, 3)
    v = v.reshape(B, T, n_head, hd).transpose(0, 2, 1, 3)
    s = jnp.einsum('bhqd,bhkd->bhqk', q, k) / math.sqrt(hd)
    mask = jnp.tril(jnp.ones((T, T), dtype=bool))
    s = jnp.where(mask, s, -1e30)
    p = jax.nn.softmax(s, axis=-1)
    y = jnp.einsum('bhqk,bhkd->bhqd', p, v)
    y = y.transpose(0, 2, 1, 3).reshape(B, T, C)
    y = jnp.einsum('btc,cd->btd', y, w_ap) + b_ap[0]
    x1 = x + y

    h2 = ln(x1, ln2_g[0], ln2_b[0])
    f = jnp.einsum('btc,cd->btd', h2, w_fc) + b_fc[0]
    c = math.sqrt(2.0 / math.pi)
    f = 0.5 * f * (1.0 + jnp.tanh(c * (f + 0.044715 * f ** 3)))
    m = jnp.einsum('btc,cd->btd', f, w_mp) + b_mp[0]
    return x1 + m


# ---------------------------------- main ---------------------------------------
if __name__ == "__main__":
    key = jax.random.PRNGKey(0)
    ks = jax.random.split(key, 8)
    C = C_EMB

    # Deterministic parameter init (GPT-2 style: normal(0, 0.02), zero biases,
    # LayerNorm gamma=1 / beta=0).  Linear weights stored as (in, out).
    ln1_g = jnp.ones((1, C), jnp.float32)
    ln1_b = jnp.zeros((1, C), jnp.float32)
    w_qkv = 0.02 * jax.random.normal(ks[0], (C, 3 * C), jnp.float32)
    b_qkv = jnp.zeros((1, 3 * C), jnp.float32)
    w_ap = 0.02 * jax.random.normal(ks[1], (C, C), jnp.float32)
    b_ap = jnp.zeros((1, C), jnp.float32)
    ln2_g = jnp.ones((1, C), jnp.float32)
    ln2_b = jnp.zeros((1, C), jnp.float32)
    w_fc = 0.02 * jax.random.normal(ks[2], (C, 4 * C), jnp.float32)
    b_fc = jnp.zeros((1, 4 * C), jnp.float32)
    w_mp = 0.02 * jax.random.normal(ks[3], (4 * C, C), jnp.float32)
    b_mp = jnp.zeros((1, C), jnp.float32)

    params = (ln1_g, ln1_b, w_qkv, b_qkv, w_ap, b_ap,
              ln2_g, ln2_b, w_fc, b_fc, w_mp, b_mp)

    # One-time prep (bf16 weight storage + baked q-scale), outside the hot path.
    prep_params = jax.tree.map(jax.block_until_ready,
                               prepare_block_params(params))

    x = jax.random.normal(ks[4], (B_SZ, T_SEQ, C_EMB), jnp.float32)

    out = gpt2_block(x, prep_params)
    out = jax.block_until_ready(out)

    ref = gpt2_block_ref(x, params)
    ref = jax.block_until_ready(ref)

    max_err = float(jnp.max(jnp.abs(out - ref)))
    assert out.shape == (B_SZ, T_SEQ, C_EMB)
    assert max_err < 1e-2, f"mismatch vs reference: {max_err}"
    print("KERNEL_OK")
</pallas_src>

<mosaic_0001>
module attributes {stable_mosaic.version = 11 : i64} {
  func.func @gpt2_block_kernel(%arg0: i32, %arg1: memref<128x64xf32, #tpu.memory_space<vmem>>, %arg2: memref<1x64xf32, #tpu.memory_space<vmem>>, %arg3: memref<1x64xf32, #tpu.memory_space<vmem>>, %arg4: memref<64x192xbf16, #tpu.memory_space<vmem>>, %arg5: memref<1x192xf32, #tpu.memory_space<vmem>>, %arg6: memref<64x64xbf16, #tpu.memory_space<vmem>>, %arg7: memref<1x64xf32, #tpu.memory_space<vmem>>, %arg8: memref<1x64xf32, #tpu.memory_space<vmem>>, %arg9: memref<1x64xf32, #tpu.memory_space<vmem>>, %arg10: memref<64x256xbf16, #tpu.memory_space<vmem>>, %arg11: memref<1x256xf32, #tpu.memory_space<vmem>>, %arg12: memref<256x64xbf16, #tpu.memory_space<vmem>>, %arg13: memref<1x64xf32, #tpu.memory_space<vmem>>, %arg14: memref<128x64xf32, #tpu.memory_space<vmem>>, %arg15: memref<128x64xf32, #tpu.memory_space<vmem>>) attributes {dimension_semantics = [#tpu.dimension_semantics<parallel>], iteration_bounds = array<i64: 2>, scalar_prefetch = 0 : i64, scratch_operands = 1 : i64, tpu.core_type = #tpu.core_type<tc>, window_params = [{transform_indices = @transform_0, window_bounds = array<i64: 128, 64>}, {pipeline_mode = #tpu.pipeline_mode<synchronous>, transform_indices = @transform_1, window_bounds = array<i64: 1, 64>}, {pipeline_mode = #tpu.pipeline_mode<synchronous>, transform_indices = @transform_2, window_bounds = array<i64: 1, 64>}, {pipeline_mode = #tpu.pipeline_mode<synchronous>, transform_indices = @transform_3, window_bounds = array<i64: 64, 192>}, {pipeline_mode = #tpu.pipeline_mode<synchronous>, transform_indices = @transform_4, window_bounds = array<i64: 1, 192>}, {pipeline_mode = #tpu.pipeline_mode<synchronous>, transform_indices = @transform_5, window_bounds = array<i64: 64, 64>}, {pipeline_mode = #tpu.pipeline_mode<synchronous>, transform_indices = @transform_6, window_bounds = array<i64: 1, 64>}, {pipeline_mode = #tpu.pipeline_mode<synchronous>, transform_indices = @transform_7, window_bounds = array<i64: 1, 64>}, {pipeline_mode = #tpu.pipeline_mode<synchronous>, transform_indices = @transform_8, window_bounds = array<i64: 1, 64>}, {pipeline_mode = #tpu.pipeline_mode<synchronous>, transform_indices = @transform_9, window_bounds = array<i64: 64, 256>}, {pipeline_mode = #tpu.pipeline_mode<synchronous>, transform_indices = @transform_10, window_bounds = array<i64: 1, 256>}, {pipeline_mode = #tpu.pipeline_mode<synchronous>, transform_indices = @transform_11, window_bounds = array<i64: 256, 64>}, {pipeline_mode = #tpu.pipeline_mode<synchronous>, transform_indices = @transform_12, window_bounds = array<i64: 1, 64>}, {transform_indices = @transform_13, window_bounds = array<i64: 128, 64>}]} {
    %c0 = arith.constant 0 : index
    %c0_0 = arith.constant 0 : index
    %0 = vector.load %arg1[%c0, %c0_0] : memref<128x64xf32, #tpu.memory_space<vmem>>, vector<128x64xf32>
    %c0_1 = arith.constant 0 : index
    %c0_2 = arith.constant 0 : index
    %1 = vector.load %arg2[%c0_1, %c0_2] : memref<1x64xf32, #tpu.memory_space<vmem>>, vector<1x64xf32>
    %2 = vector.shape_cast %1 : vector<1x64xf32> to vector<64xf32>
    %c0_3 = arith.constant 0 : index
    %c0_4 = arith.constant 0 : index
    %3 = vector.load %arg3[%c0_3, %c0_4] : memref<1x64xf32, #tpu.memory_space<vmem>>, vector<1x64xf32>
    %4 = vector.shape_cast %3 : vector<1x64xf32> to vector<64xf32>
    %cst = arith.constant dense<0.000000e+00> : vector<128xf32>
    %5 = vector.multi_reduction <add>, %0, %cst [1] : vector<128x64xf32> to vector<128xf32>
    %6 = vector.shape_cast %5 : vector<128xf32> to vector<128x1xf32>
    %cst_5 = arith.constant 6.400000e+01 : f32
    %7 = vector.broadcast %cst_5 : f32 to vector<128x1xf32>
    %8 = arith.divf %6, %7 : vector<128x1xf32>
    %9 = vector.broadcast %8 : vector<128x1xf32> to vector<128x64xf32>
    %10 = arith.subf %0, %9 : vector<128x64xf32>
    %11 = arith.mulf %10, %10 : vector<128x64xf32>
    %cst_6 = arith.constant dense<0.000000e+00> : vector<128xf32>
    %12 = vector.multi_reduction <add>, %11, %cst_6 [1] : vector<128x64xf32> to vector<128xf32>
    %13 = vector.shape_cast %12 : vector<128xf32> to vector<128x1xf32>
    %cst_7 = arith.constant 6.400000e+01 : f32
    %14 = vector.broadcast %cst_7 : f32 to vector<128x1xf32>
    %15 = arith.divf %13, %14 : vector<128x1xf32>
    %cst_8 = arith.constant 9.99999974E-6 : f32
    %16 = vector.broadcast %cst_8 : f32 to vector<128x1xf32>
    %17 = arith.addf %15, %16 : vector<128x1xf32>
    %18 = math.rsqrt %17 : vector<128x1xf32>
    %19 = vector.broadcast %18 : vector<128x1xf32> to vector<128x64xf32>
    %20 = arith.mulf %10, %19 : vector<128x64xf32>
    %21 = vector.shape_cast %2 : vector<64xf32> to vector<1x64xf32>
    %22 = vector.broadcast %21 : vector<1x64xf32> to vector<128x64xf32>
    %23 = arith.mulf %20, %22 : vector<128x64xf32>
    %24 = vector.shape_cast %4 : vector<64xf32> to vector<1x64xf32>
    %25 = vector.broadcast %24 : vector<1x64xf32> to vector<128x64xf32>
    %26 = arith.addf %23, %25 : vector<128x64xf32>
    %27 = arith.truncf %26 : vector<128x64xf32> to vector<128x64xbf16>
    %c0_9 = arith.constant 0 : index
    %c0_10 = arith.constant 0 : index
    %28 = vector.load %arg4[%c0_9, %c0_10] : memref<64x192xbf16, #tpu.memory_space<vmem>>, vector<64x192xbf16>
    %cst_11 = arith.constant dense<0.000000e+00> : vector<128x192xf32>
    %29 = tpu.matmul %27, %28, %cst_11 {dimension_numbers = #tpu.dot_dimension_numbers<[1], [0], [0], [1], [0, 0, 1, 1], [], []>} : vector<128x64xbf16>, vector<64x192xbf16>, vector<128x192xf32> -> vector<128x192xf32>
    %c0_12 = arith.constant 0 : index
    %c0_13 = arith.constant 0 : index
    %30 = vector.load %arg5[%c0_12, %c0_13] : memref<1x192xf32, #tpu.memory_space<vmem>>, vector<1x192xf32>
    %31 = vector.shape_cast %30 : vector<1x192xf32> to vector<192xf32>
    %32 = vector.shape_cast %31 : vector<192xf32> to vector<1x192xf32>
    %33 = vector.broadcast %32 : vector<1x192xf32> to vector<128x192xf32>
    %34 = arith.addf %29, %33 : vector<128x192xf32>
    %35 = tpu.iota {dimensions = array<i32: 0>} : vector<128x128xi32>
    %36 = tpu.iota {dimensions = array<i32: 1>} : vector<128x128xi32>
    %37 = arith.cmpi sge, %35, %36 : vector<128x128xi32>
    %cst_14 = arith.constant 0.000000e+00 : f32
    %cst_15 = arith.constant -1.000000e+30 : f32
    %38 = vector.broadcast %cst_14 : f32 to vector<128x128xf32>
    %39 = vector.broadcast %cst_15 : f32 to vector<128x128xf32>
    %40 = arith.select %37, %38, %39 : vector<128x128xi1>, vector<128x128xf32>
    %41 = vector.extract_strided_slice %34 {offsets = [0, 0], sizes = [128, 64], strides = [1, 1]} : vector<128x192xf32> to vector<128x64xf32>
    %42 = arith.truncf %41 : vector<128x64xf32> to vector<128x64xbf16>
    %43 = vector.extract_strided_slice %34 {offsets = [0, 64], sizes = [128, 64], strides = [1, 1]} : vector<128x192xf32> to vector<128x64xf32>
    %44 = arith.truncf %43 : vector<128x64xf32> to vector<128x64xbf16>
    %45 = vector.extract_strided_slice %34 {offsets = [0, 128], sizes = [128, 64], strides = [1, 1]} : vector<128x192xf32> to vector<128x64xf32>
    %46 = arith.truncf %45 : vector<128x64xf32> to vector<128x64xbf16>
    %47 = vector.extract_strided_slice %42 {offsets = [0, 0], sizes = [128, 16], strides = [1, 1]} : vector<128x64xbf16> to vector<128x16xbf16>
    %48 = vector.extract_strided_slice %44 {offsets = [0, 0], sizes = [128, 16], strides = [1, 1]} : vector<128x64xbf16> to vector<128x16xbf16>
    %49 = vector.extract_strided_slice %46 {offsets = [0, 0], sizes = [128, 16], strides = [1, 1]} : vector<128x64xbf16> to vector<128x16xbf16>
    %cst_16 = arith.constant dense<0.000000e+00> : vector<128x128xf32>
    %50 = tpu.matmul %47, %48, %cst_16 {dimension_numbers = #tpu.dot_dimension_numbers<[1], [1], [0], [0], [0, 0, 1, 0], [], []>} : vector<128x16xbf16>, vector<128x16xbf16>, vector<128x128xf32> -> vector<128x128xf32>
    %51 = arith.addf %50, %40 : vector<128x128xf32>
    %cst_17 = arith.constant dense<0xFF800000> : vector<128xf32>
    %52 = vector.multi_reduction <maximumf>, %51, %cst_17 [1] : vector<128x128xf32> to vector<128xf32>
    %53 = vector.shape_cast %52 : vector<128xf32> to vector<128x1xf32>
    %54 = vector.broadcast %53 : vector<128x1xf32> to vector<128x128xf32>
    %55 = arith.subf %51, %54 : vector<128x128xf32>
    %56 = math.exp %55 : vector<128x128xf32>
    %cst_18 = arith.constant dense<0.000000e+00> : vector<128xf32>
    %57 = vector.multi_reduction <add>, %56, %cst_18 [1] : vector<128x128xf32> to vector<128xf32>
    %58 = vector.shape_cast %57 : vector<128xf32> to vector<128x1xf32>
    %59 = tpu.reciprocal %58 {approx = true} : vector<128x1xf32> -> vector<128x1xf32>
    %60 = vector.broadcast %59 : vector<128x1xf32> to vector<128x128xf32>
    %61 = arith.mulf %56, %60 : vector<128x128xf32>
    %62 = arith.truncf %61 : vector<128x128xf32> to vector<128x128xbf16>
    %cst_19 = arith.constant dense<0.000000e+00> : vector<128x16xf32>
    %63 = tpu.matmul %62, %49, %cst_19 {dimension_numbers = #tpu.dot_dimension_numbers<[1], [0], [0], [1], [0, 0, 1, 1], [], []>} : vector<128x128xbf16>, vector<128x16xbf16>, vector<128x16xf32> -> vector<128x16xf32>
    %c0_20 = arith.constant 0 : index
    %c0_21 = arith.constant 0 : index
    %64 = vector.load %arg15[%c0_20, %c0_21] : memref<128x64xf32, #tpu.memory_space<vmem>>, vector<128x16xf32>
    tpu.vector_store %arg15[%c0_20, %c0_21], %63 {strides = array<i32>} : memref<128x64xf32, #tpu.memory_space<vmem>>, vector<128x16xf32>,
    %65 = vector.extract_strided_slice %42 {offsets = [0, 16], sizes = [128, 16], strides = [1, 1]} : vector<128x64xbf16> to vector<128x16xbf16>
    %66 = vector.extract_strided_slice %44 {offsets = [0, 16], sizes = [128, 16], strides = [1, 1]} : vector<128x64xbf16> to vector<128x16xbf16>
    %67 = vector.extract_strided_slice %46 {offsets = [0, 16], sizes = [128, 16], strides = [1, 1]} : vector<128x64xbf16> to vector<128x16xbf16>
    %cst_22 = arith.constant dense<0.000000e+00> : vector<128x128xf32>
    %68 = tpu.matmul %65, %66, %cst_22 {dimension_numbers = #tpu.dot_dimension_numbers<[1], [1], [0], [0], [0, 0, 1, 0], [], []>} : vector<128x16xbf16>, vector<128x16xbf16>, vector<128x128xf32> -> vector<128x128xf32>
    %69 = arith.addf %68, %40 : vector<128x128xf32>
    %cst_23 = arith.constant dense<0xFF800000> : vector<128xf32>
    %70 = vector.multi_reduction <maximumf>, %69, %cst_23 [1] : vector<128x128xf32> to vector<128xf32>
    %71 = vector.shape_cast %70 : vector<128xf32> to vector<128x1xf32>
    %72 = vector.broadcast %71 : vector<128x1xf32> to vector<128x128xf32>
    %73 = arith.subf %69, %72 : vector<128x128xf32>
    %74 = math.exp %73 : vector<128x128xf32>
    %cst_24 = arith.constant dense<0.000000e+00> : vector<128xf32>
    %75 = vector.multi_reduction <add>, %74, %cst_24 [1] : vector<128x128xf32> to vector<128xf32>
    %76 = vector.shape_cast %75 : vector<128xf32> to vector<128x1xf32>
    %77 = tpu.reciprocal %76 {approx = true} : vector<128x1xf32> -> vector<128x1xf32>
    %78 = vector.broadcast %77 : vector<128x1xf32> to vector<128x128xf32>
    %79 = arith.mulf %74, %78 : vector<128x128xf32>
    %80 = arith.truncf %79 : vector<128x128xf32> to vector<128x128xbf16>
    %cst_25 = arith.constant dense<0.000000e+00> : vector<128x16xf32>
    %81 = tpu.matmul %80, %67, %cst_25 {dimension_numbers = #tpu.dot_dimension_numbers<[1], [0], [0], [1], [0, 0, 1, 1], [], []>} : vector<128x128xbf16>, vector<128x16xbf16>, vector<128x16xf32> -> vector<128x16xf32>
    %c0_26 = arith.constant 0 : index
    %c16 = arith.constant 16 : index
    %82 = vector.load %arg15[%c0_26, %c16] : memref<128x64xf32, #tpu.memory_space<vmem>>, vector<128x16xf32>
    tpu.vector_store %arg15[%c0_26, %c16], %81 {strides = array<i32>} : memref<128x64xf32, #tpu.memory_space<vmem>>, vector<128x16xf32>,
    %83 = vector.extract_strided_slice %42 {offsets = [0, 32], sizes = [128, 16], strides = [1, 1]} : vector<128x64xbf16> to vector<128x16xbf16>
    %84 = vector.extract_strided_slice %44 {offsets = [0, 32], sizes = [128, 16], strides = [1, 1]} : vector<128x64xbf16> to vector<128x16xbf16>
    %85 = vector.extract_strided_slice %46 {offsets = [0, 32], sizes = [128, 16], strides = [1, 1]} : vector<128x64xbf16> to vector<128x16xbf16>
    %cst_27 = arith.constant dense<0.000000e+00> : vector<128x128xf32>
    %86 = tpu.matmul %83, %84, %cst_27 {dimension_numbers = #tpu.dot_dimension_numbers<[1], [1], [0], [0], [0, 0, 1, 0], [], []>} : vector<128x16xbf16>, vector<128x16xbf16>, vector<128x128xf32> -> vector<128x128xf32>
    %87 = arith.addf %86, %40 : vector<128x128xf32>
    %cst_28 = arith.constant dense<0xFF800000> : vector<128xf32>
    %88 = vector.multi_reduction <maximumf>, %87, %cst_28 [1] : vector<128x128xf32> to vector<128xf32>
    %89 = vector.shape_cast %88 : vector<128xf32> to vector<128x1xf32>
    %90 = vector.broadcast %89 : vector<128x1xf32> to vector<128x128xf32>
    %91 = arith.subf %87, %90 : vector<128x128xf32>
    %92 = math.exp %91 : vector<128x128xf32>
    %cst_29 = arith.constant dense<0.000000e+00> : vector<128xf32>
    %93 = vector.multi_reduction <add>, %92, %cst_29 [1] : vector<128x128xf32> to vector<128xf32>
    %94 = vector.shape_cast %93 : vector<128xf32> to vector<128x1xf32>
    %95 = tpu.reciprocal %94 {approx = true} : vector<128x1xf32> -> vector<128x1xf32>
    %96 = vector.broadcast %95 : vector<128x1xf32> to vector<128x128xf32>
    %97 = arith.mulf %92, %96 : vector<128x128xf32>
    %98 = arith.truncf %97 : vector<128x128xf32> to vector<128x128xbf16>
    %cst_30 = arith.constant dense<0.000000e+00> : vector<128x16xf32>
    %99 = tpu.matmul %98, %85, %cst_30 {dimension_numbers = #tpu.dot_dimension_numbers<[1], [0], [0], [1], [0, 0, 1, 1], [], []>} : vector<128x128xbf16>, vector<128x16xbf16>, vector<128x16xf32> -> vector<128x16xf32>
    %c0_31 = arith.constant 0 : index
    %c32 = arith.constant 32 : index
    %100 = vector.load %arg15[%c0_31, %c32] : memref<128x64xf32, #tpu.memory_space<vmem>>, vector<128x16xf32>
    tpu.vector_store %arg15[%c0_31, %c32], %99 {strides = array<i32>} : memref<128x64xf32, #tpu.memory_space<vmem>>, vector<128x16xf32>,
    %101 = vector.extract_strided_slice %42 {offsets = [0, 48], sizes = [128, 16], strides = [1, 1]} : vector<128x64xbf16> to vector<128x16xbf16>
    %102 = vector.extract_strided_slice %44 {offsets = [0, 48], sizes = [128, 16], strides = [1, 1]} : vector<128x64xbf16> to vector<128x16xbf16>
    %103 = vector.extract_strided_slice %46 {offsets = [0, 48], sizes = [128, 16], strides = [1, 1]} : vector<128x64xbf16> to vector<128x16xbf16>
    %cst_32 = arith.constant dense<0.000000e+00> : vector<128x128xf32>
    %104 = tpu.matmul %101, %102, %cst_32 {dimension_numbers = #tpu.dot_dimension_numbers<[1], [1], [0], [0], [0, 0, 1, 0], [], []>} : vector<128x16xbf16>, vector<128x16xbf16>, vector<128x128xf32> -> vector<128x128xf32>
    %105 = arith.addf %104, %40 : vector<128x128xf32>
    %cst_33 = arith.constant dense<0xFF800000> : vector<128xf32>
    %106 = vector.multi_reduction <maximumf>, %105, %cst_33 [1] : vector<128x128xf32> to vector<128xf32>
    %107 = vector.shape_cast %106 : vector<128xf32> to vector<128x1xf32>
    %108 = vector.broadcast %107 : vector<128x1xf32> to vector<128x128xf32>
    %109 = arith.subf %105, %108 : vector<128x128xf32>
    %110 = math.exp %109 : vector<128x128xf32>
    %cst_34 = arith.constant dense<0.000000e+00> : vector<128xf32>
    %111 = vector.multi_reduction <add>, %110, %cst_34 [1] : vector<128x128xf32> to vector<128xf32>
    %112 = vector.shape_cast %111 : vector<128xf32> to vector<128x1xf32>
    %113 = tpu.reciprocal %112 {approx = true} : vector<128x1xf32> -> vector<128x1xf32>
    %114 = vector.broadcast %113 : vector<128x1xf32> to vector<128x128xf32>
    %115 = arith.mulf %110, %114 : vector<128x128xf32>
    %116 = arith.truncf %115 : vector<128x128xf32> to vector<128x128xbf16>
    %cst_35 = arith.constant dense<0.000000e+00> : vector<128x16xf32>
    %117 = tpu.matmul %116, %103, %cst_35 {dimension_numbers = #tpu.dot_dimension_numbers<[1], [0], [0], [1], [0, 0, 1, 1], [], []>} : vector<128x128xbf16>, vector<128x16xbf16>, vector<128x16xf32> -> vector<128x16xf32>
    %c0_36 = arith.constant 0 : index
    %c48 = arith.constant 48 : index
    %118 = vector.load %arg15[%c0_36, %c48] : memref<128x64xf32, #tpu.memory_space<vmem>>, vector<128x16xf32>
    tpu.vector_store %arg15[%c0_36, %c48], %117 {strides = array<i32>} : memref<128x64xf32, #tpu.memory_space<vmem>>, vector<128x16xf32>,
    %c0_37 = arith.constant 0 : index
    %c0_38 = arith.constant 0 : index
    %119 = vector.load %arg15[%c0_37, %c0_38] : memref<128x64xf32, #tpu.memory_space<vmem>>, vector<128x64xf32>
    %120 = arith.truncf %119 : vector<128x64xf32> to vector<128x64xbf16>
    %c0_39 = arith.constant 0 : index
    %c0_40 = arith.constant 0 : index
    %121 = vector.load %arg6[%c0_39, %c0_40] : memref<64x64xbf16, #tpu.memory_space<vmem>>, vector<64x64xbf16>
    %cst_41 = arith.constant dense<0.000000e+00> : vector<128x64xf32>
    %122 = tpu.matmul %120, %121, %cst_41 {dimension_numbers = #tpu.dot_dimension_numbers<[1], [0], [0], [1], [0, 0, 1, 1], [], []>} : vector<128x64xbf16>, vector<64x64xbf16>, vector<128x64xf32> -> vector<128x64xf32>
    %c0_42 = arith.constant 0 : index
    %c0_43 = arith.constant 0 : index
    %123 = vector.load %arg7[%c0_42, %c0_43] : memref<1x64xf32, #tpu.memory_space<vmem>>, vector<1x64xf32>
    %124 = vector.shape_cast %123 : vector<1x64xf32> to vector<64xf32>
    %125 = vector.shape_cast %124 : vector<64xf32> to vector<1x64xf32>
    %126 = vector.broadcast %125 : vector<1x64xf32> to vector<128x64xf32>
    %127 = arith.addf %122, %126 : vector<128x64xf32>
    %128 = arith.addf %0, %127 : vector<128x64xf32>
    %c0_44 = arith.constant 0 : index
    %c0_45 = arith.constant 0 : index
    %129 = vector.load %arg8[%c0_44, %c0_45] : memref<1x64xf32, #tpu.memory_space<vmem>>, vector<1x64xf32>
    %130 = vector.shape_cast %129 : vector<1x64xf32> to vector<64xf32>
    %c0_46 = arith.constant 0 : index
    %c0_47 = arith.constant 0 : index
    %131 = vector.load %arg9[%c0_46, %c0_47] : memref<1x64xf32, #tpu.memory_space<vmem>>, vector<1x64xf32>
    %132 = vector.shape_cast %131 : vector<1x64xf32> to vector<64xf32>
    %cst_48 = arith.constant dense<0.000000e+00> : vector<128xf32>
    %133 = vector.multi_reduction <add>, %128, %cst_48 [1] : vector<128x64xf32> to vector<128xf32>
    %134 = vector.shape_cast %133 : vector<128xf32> to vector<128x1xf32>
    %cst_49 = arith.constant 6.400000e+01 : f32
    %135 = vector.broadcast %cst_49 : f32 to vector<128x1xf32>
    %136 = arith.divf %134, %135 : vector<128x1xf32>
    %137 = vector.broadcast %136 : vector<128x1xf32> to vector<128x64xf32>
    %138 = arith.subf %128, %137 : vector<128x64xf32>
    %139 = arith.mulf %138, %138 : vector<128x64xf32>
    %cst_50 = arith.constant dense<0.000000e+00> : vector<128xf32>
    %140 = vector.multi_reduction <add>, %139, %cst_50 [1] : vector<128x64xf32> to vector<128xf32>
    %141 = vector.shape_cast %140 : vector<128xf32> to vector<128x1xf32>
    %cst_51 = arith.constant 6.400000e+01 : f32
    %142 = vector.broadcast %cst_51 : f32 to vector<128x1xf32>
    %143 = arith.divf %141, %142 : vector<128x1xf32>
    %cst_52 = arith.constant 9.99999974E-6 : f32
    %144 = vector.broadcast %cst_52 : f32 to vector<128x1xf32>
    %145 = arith.addf %143, %144 : vector<128x1xf32>
    %146 = math.rsqrt %145 : vector<128x1xf32>
    %147 = vector.broadcast %146 : vector<128x1xf32> to vector<128x64xf32>
    %148 = arith.mulf %138, %147 : vector<128x64xf32>
    %149 = vector.shape_cast %130 : vector<64xf32> to vector<1x64xf32>
    %150 = vector.broadcast %149 : vector<1x64xf32> to vector<128x64xf32>
    %151 = arith.mulf %148, %150 : vector<128x64xf32>
    %152 = vector.shape_cast %132 : vector<64xf32> to vector<1x64xf32>
    %153 = vector.broadcast %152 : vector<1x64xf32> to vector<128x64xf32>
    %154 = arith.addf %151, %153 : vector<128x64xf32>
    %155 = arith.truncf %154 : vector<128x64xf32> to vector<128x64xbf16>
    %c0_53 = arith.constant 0 : index
    %c0_54 = arith.constant 0 : index
    %156 = vector.load %arg10[%c0_53, %c0_54] : memref<64x256xbf16, #tpu.memory_space<vmem>>, vector<64x256xbf16>
    %cst_55 = arith.constant dense<0.000000e+00> : vector<128x256xf32>
    %157 = tpu.matmul %155, %156, %cst_55 {dimension_numbers = #tpu.dot_dimension_numbers<[1], [0], [0], [1], [0, 0, 1, 1], [], []>} : vector<128x64xbf16>, vector<64x256xbf16>, vector<128x256xf32> -> vector<128x256xf32>
    %c0_56 = arith.constant 0 : index
    %c0_57 = arith.constant 0 : index
    %158 = vector.load %arg11[%c0_56, %c0_57] : memref<1x256xf32, #tpu.memory_space<vmem>>, vector<1x256xf32>
    %159 = vector.shape_cast %158 : vector<1x256xf32> to vector<256xf32>
    %160 = vector.shape_cast %159 : vector<256xf32> to vector<1x256xf32>
    %161 = vector.broadcast %160 : vector<1x256xf32> to vector<128x256xf32>
    %162 = arith.addf %157, %161 : vector<128x256xf32>
    %cst_58 = arith.constant 5.000000e-01 : f32
    %163 = vector.broadcast %cst_58 : f32 to vector<128x256xf32>
    %164 = arith.mulf %163, %162 : vector<128x256xf32>
    %cst_59 = arith.constant 4.471500e-02 : f32
    %165 = vector.broadcast %cst_59 : f32 to vector<128x256xf32>
    %166 = arith.mulf %165, %162 : vector<128x256xf32>
    %167 = arith.mulf %166, %162 : vector<128x256xf32>
    %168 = arith.mulf %167, %162 : vector<128x256xf32>
    %169 = arith.addf %162, %168 : vector<128x256xf32>
    %cst_60 = arith.constant 0.797884583 : f32
    %170 = vector.broadcast %cst_60 : f32 to vector<128x256xf32>
    %171 = arith.mulf %170, %169 : vector<128x256xf32>
    %172 = math.tanh %171 : vector<128x256xf32>
    %cst_61 = arith.constant 1.000000e+00 : f32
    %173 = vector.broadcast %cst_61 : f32 to vector<128x256xf32>
    %174 = arith.addf %173, %172 : vector<128x256xf32>
    %175 = arith.mulf %164, %174 : vector<128x256xf32>
    %176 = arith.truncf %175 : vector<128x256xf32> to vector<128x256xbf16>
    %c0_62 = arith.constant 0 : index
    %c0_63 = arith.constant 0 : index
    %177 = vector.load %arg12[%c0_62, %c0_63] : memref<256x64xbf16, #tpu.memory_space<vmem>>, vector<256x64xbf16>
    %cst_64 = arith.constant dense<0.000000e+00> : vector<128x64xf32>
    %178 = tpu.matmul %176, %177, %cst_64 {dimension_numbers = #tpu.dot_dimension_numbers<[1], [0], [0], [1], [0, 0, 1, 1], [], []>} : vector<128x256xbf16>, vector<256x64xbf16>, vector<128x64xf32> -> vector<128x64xf32>
    %c0_65 = arith.constant 0 : index
    %c0_66 = arith.constant 0 : index
    %179 = vector.load %arg13[%c0_65, %c0_66] : memref<1x64xf32, #tpu.memory_space<vmem>>, vector<1x64xf32>
    %180 = vector.shape_cast %179 : vector<1x64xf32> to vector<64xf32>
    %181 = vector.shape_cast %180 : vector<64xf32> to vector<1x64xf32>
    %182 = vector.broadcast %181 : vector<1x64xf32> to vector<128x64xf32>
    %183 = arith.addf %178, %182 : vector<128x64xf32>
    %184 = arith.addf %128, %183 : vector<128x64xf32>
    %c0_67 = arith.constant 0 : index
    %c0_68 = arith.constant 0 : index
    %185 = vector.load %arg14[%c0_67, %c0_68] : memref<128x64xf32, #tpu.memory_space<vmem>>, vector<128x64xf32>
    tpu.vector_store %arg14[%c0_67, %c0_68], %184 {strides = array<i32>} : memref<128x64xf32, #tpu.memory_space<vmem>>, vector<128x64xf32>,
    return
  }
  func.func @transform_0(%arg0: i32) -> (i32, i32) {
    %c0_i32 = arith.constant 0 : i32
    %c0_i32_0 = arith.constant 0 : i32
    return %arg0, %c0_i32 : i32, i32
  }
  func.func @transform_1(%arg0: i32) -> (i32, i32) {
    %c0_i32 = arith.constant 0 : i32
    %c0_i32_0 = arith.constant 0 : i32
    %c0_i32_1 = arith.constant 0 : i32
    return %c0_i32, %c0_i32_0 : i32, i32
  }
  func.func @transform_2(%arg0: i32) -> (i32, i32) {
    %c0_i32 = arith.constant 0 : i32
    %c0_i32_0 = arith.constant 0 : i32
    %c0_i32_1 = arith.constant 0 : i32
    return %c0_i32, %c0_i32_0 : i32, i32
  }
  func.func @transform_3(%arg0: i32) -> (i32, i32) {
    %c0_i32 = arith.constant 0 : i32
    %c0_i32_0 = arith.constant 0 : i32
    %c0_i32_1 = arith.constant 0 : i32
    return %c0_i32, %c0_i32_0 : i32, i32
  }
  func.func @transform_4(%arg0: i32) -> (i32, i32) {
    %c0_i32 = arith.constant 0 : i32
    %c0_i32_0 = arith.constant 0 : i32
    %c0_i32_1 = arith.constant 0 : i32
    return %c0_i32, %c0_i32_0 : i32, i32
  }
  func.func @transform_5(%arg0: i32) -> (i32, i32) {
    %c0_i32 = arith.constant 0 : i32
    %c0_i32_0 = arith.constant 0 : i32
    %c0_i32_1 = arith.constant 0 : i32
    return %c0_i32, %c0_i32_0 : i32, i32
  }
  func.func @transform_6(%arg0: i32) -> (i32, i32) {
    %c0_i32 = arith.constant 0 : i32
    %c0_i32_0 = arith.constant 0 : i32
    %c0_i32_1 = arith.constant 0 : i32
    return %c0_i32, %c0_i32_0 : i32, i32
  }
  func.func @transform_7(%arg0: i32) -> (i32, i32) {
    %c0_i32 = arith.constant 0 : i32
    %c0_i32_0 = arith.constant 0 : i32
    %c0_i32_1 = arith.constant 0 : i32
    return %c0_i32, %c0_i32_0 : i32, i32
  }
  func.func @transform_8(%arg0: i32) -> (i32, i32) {
    %c0_i32 = arith.constant 0 : i32
    %c0_i32_0 = arith.constant 0 : i32
    %c0_i32_1 = arith.constant 0 : i32
    return %c0_i32, %c0_i32_0 : i32, i32
  }
  func.func @transform_9(%arg0: i32) -> (i32, i32) {
    %c0_i32 = arith.constant 0 : i32
    %c0_i32_0 = arith.constant 0 : i32
    %c0_i32_1 = arith.constant 0 : i32
    return %c0_i32, %c0_i32_0 : i32, i32
  }
  func.func @transform_10(%arg0: i32) -> (i32, i32) {
    %c0_i32 = arith.constant 0 : i32
    %c0_i32_0 = arith.constant 0 : i32
    %c0_i32_1 = arith.constant 0 : i32
    return %c0_i32, %c0_i32_0 : i32, i32
  }
  func.func @transform_11(%arg0: i32) -> (i32, i32) {
    %c0_i32 = arith.constant 0 : i32
    %c0_i32_0 = arith.constant 0 : i32
    %c0_i32_1 = arith.constant 0 : i32
    return %c0_i32, %c0_i32_0 : i32, i32
  }
  func.func @transform_12(%arg0: i32) -> (i32, i32) {
    %c0_i32 = arith.constant 0 : i32
    %c0_i32_0 = arith.constant 0 : i32
    %c0_i32_1 = arith.constant 0 : i32
    return %c0_i32, %c0_i32_0 : i32, i32
  }
  func.func @transform_13(%arg0: i32) -> (i32, i32) {
    %c0_i32 = arith.constant 0 : i32
    %c0_i32_0 = arith.constant 0 : i32
    return %arg0, %c0_i32 : i32, i32
  }
}

</mosaic_0001>

<bundles_post_ra>
// kernel: tpu_custom_call.1
= control target key start
LH: loop header
LB: loop body
LE: loop exit
PB: predicated region body
PF: predicated region fallthrough
CT: control target
= control target key end

     0   :  { %s5497_s25 = smov 0   ;;  %s7649_s0 = inlined_call_operand.vmem [shape: f32[256,64], index: 0, kind: input, shape index: {}]   ;;  %s7650_s1 = inlined_call_operand.vmem [shape: f32[1,64], index: 1, kind: input, shape index: {}]   ;;  %s7651_s2 = inlined_call_operand.vmem [shape: f32[1,64], index: 2, kind: input, shape index: {}]   ;;  %s7652_s3 = inlined_call_operand.vmem [shape: bf16[64,192], index: 3, kind: input, shape index: {}]   ;;  %s7653_s4 = inlined_call_operand.vmem [shape: f32[1,192], index: 4, kind: input, shape index: {}]   ;;  %s7654_s5 = inlined_call_operand.vmem [shape: bf16[64,64], index: 5, kind: input, shape index: {}]   ;;  %s7655_s6 = inlined_call_operand.vmem [shape: f32[1,64], index: 6, kind: input, shape index: {}]   ;;  %s7656_s7 = inlined_call_operand.vmem [shape: f32[1,64], index: 7, kind: input, shape index: {}]   ;;  %s7657_s8 = inlined_call_operand.vmem [shape: f32[1,64], index: 8, kind: input, shape index: {}]   ;;  %s7658_s9 = inlined_call_operand.vmem [shape: bf16[64,256], index: 9, kind: input, shape index: {}]   ;;  %s7659_s10 = inlined_call_operand.vmem [shape: f32[1,256], index: 10, kind: input, shape index: {}]   ;;  %s7660_s11 = inlined_call_operand.vmem [shape: bf16[256,64], index: 11, kind: input, shape index: {}]   ;;  %s7661_s12 = inlined_call_operand.vmem [shape: f32[1,64], index: 12, kind: input, shape index: {}]   ;;  %s7662_s13 = inlined_call_operand.vmem [shape: f32[256,64], index: 13, kind: output, shape index: {}]  }
   0x1 LB: > { %s4308_s26 = sadd.s32 4294967295, %s5416_s25   ;;  %p4312_p0 = scmp.ge.s32.totalorder %s5416_s25, 1  ;;  %s5416_s25 = sphi %s5497_s25, %s23_s25  }
   0x2   : > { %p388_p1 = scmp.lt.s32.totalorder %s5416_s25, 3 }
   0x4   : > { %p389_p2 = pnand %p4312_p0, %p388_p1 }
   0x6   : > { %392 = sbr.rel (%p389_p2) target bundleno = 4039 (0xfc7), region = 72 }
   0xd   : > { %s4313_s27 = sshll.u32 %s4308_s26, 4  ;;  %vm463_vm0 = vcmask 523264   ;;  %vm1013_vm1 = vcmask 130048   ;;  %s5419_s24 = smov 64  }
   0xe   : > { %p433_p3 = scmp.lt.s32.totalorder %s4313_s27, 31  ;;  %s5420_s26 = smov 48  }
   0xf   : > { %s5421_s29 = smov 112   ;;  %s5422_s30 = smov 32  }
  0x10   : > { %s7817_s27 = smov (!%p433_p3, %s4313_s27), 31  ;;  %s5424_s15 = smov 96  }
  0x11   : > { %s4314_s28 = sshll.u32 %s7817_s27, 3  ;;  %s5425_s16 = smov 16  }
  0x12   : > { %s5513_s14 = scalar_lea.vmem %s7649_s0, %s4314_s28  ;;  %s5426_s17 = smov 80  }
  0x13   : > { %v445_v0 = vld [vmem:[%s5513_s14] sm:$0xff]  ;;  %v447_v1 = vld [vmem:[%s5513_s14 + $0x10] sm:$0xff]  ;;  %v446_v2 = vld [vmem:[%s5513_s14 + $0x8] sm:$0xff] }
  0x14   : > { %v464_v3 = vsel %vm463_vm0, %v445_v0, 0.0  ;;  %v470_v4 = vsel %vm463_vm0, %v447_v1, 0.0  ;;  %v448_v5 = vld [vmem:[%s5513_s14 + $0x18] sm:$0xff]  ;;  %v5522_v6 = vld [vmem:[%s5513_s14 + $0x20] sm:$0xff]  ;;  %v5525_v7 = vld [vmem:[%s5513_s14 + $0x28] sm:$0xff]  ;;  %v467_v11 = vsel %vm463_vm0, %v446_v2, 0.0 }
  0x15   : > { %465 = vadd.xlane.f32.xlu0 %v464_v3  ;;  %471 = vadd.xlane.f32.xlu1 %v470_v4  ;;  %v5528_v8 = vld [vmem:[%s5513_s14 + $0x30] sm:$0xff]  ;;  %v5531_v9 = vld [vmem:[%s5513_s14 + $0x38] sm:$0xff]  ;;  %v5534_v10 = vld [vmem:[%s5513_s14 + $0x40] sm:$0xff]  ;;  %v473_v12 = vsel %vm463_vm0, %v448_v5, 0.0  ;;  %v476_v14 = vsel %vm463_vm0, %v5522_v6, 0.0  ;;  %v479_v15 = vsel %vm463_vm0, %v5525_v7, 0.0 }
  0x16   : > { %v5539_v13 = vld [vmem:[%s5513_s14 + $0x48] sm:$0xff]  ;;  %v482_v16 = vsel %vm463_vm0, %v5528_v8, 0.0  ;;  %v485_v17 = vsel %vm463_vm0, %v5531_v9, 0.0  ;;  %v488_v18 = vsel %vm463_vm0, %v5534_v10, 0.0  ;;  %v5554_v20 = vld [vmem:[%s5513_s14 + $0x50] sm:$0xff]  ;;  %v5557_v21 = vld [vmem:[%s5513_s14 + $0x58] sm:$0xff] }
  0x17   : > { %v491_v19 = vsel %vm463_vm0, %v5539_v13, 0.0  ;;  %v494_v22 = vsel %vm463_vm0, %v5554_v20, 0.0  ;;  %v497_v23 = vsel %vm463_vm0, %v5557_v21, 0.0  ;;  %v5564_v24 = vld [vmem:[%s5513_s14 + $0x60] sm:$0xff]  ;;  %v5567_v25 = vld [vmem:[%s5513_s14 + $0x68] sm:$0xff]  ;;  %v5574_v28 = vld [vmem:[%s5513_s14 + $0x70] sm:$0xff] }
  0x18   : > { %v500_v26 = vsel %vm463_vm0, %v5564_v24, 0.0  ;;  %v503_v27 = vsel %vm463_vm0, %v5567_v25, 0.0  ;;  %v5577_v29 = vld [vmem:[%s5513_s14 + $0x78] sm:$0xff]  ;;  %v506_v30 = vsel %vm463_vm0, %v5574_v28, 0.0 }
  0x19   : > { %468 = vadd.xlane.f32.xlu0 %v467_v11  ;;  %474 = vadd.xlane.f32.xlu1 %v473_v12  ;;  %v509_v31 = vsel %vm463_vm0, %v5577_v29, 0.0 }
  0x1d   : > { %477 = vadd.xlane.f32.xlu0 %v476_v14  ;;  %480 = vadd.xlane.f32.xlu1 %v479_v15 }
  0x21   : > { %483 = vadd.xlane.f32.xlu0 %v482_v16  ;;  %486 = vadd.xlane.f32.xlu1 %v485_v17 }
  0x25   : > { %489 = vadd.xlane.f32.xlu0 %v488_v18  ;;  %492 = vadd.xlane.f32.xlu1 %v491_v19 }
  0x29   : > { %495 = vadd.xlane.f32.xlu0 %v494_v22  ;;  %498 = vadd.xlane.f32.xlu1 %v497_v23 }
  0x2d   : > { %501 = vadd.xlane.f32.xlu0 %v500_v26  ;;  %504 = vadd.xlane.f32.xlu1 %v503_v27 }
  0x31   : > { %507 = vadd.xlane.f32.xlu0 %v506_v30  ;;  %510 = vadd.xlane.f32.xlu1 %v509_v31 }
  0xa2   : > { %v466_v32 = vpop.xlane.xlu0 %465  ;;  %v472_v33 = vpop.xlane.xlu1 %471 }
  0xa3   : > { %v513_v34 = vmul.f32 0.015625, %v466_v32  ;;  %v515_v35 = vmul.f32 0.015625, %v472_v33 }
  0xa5   : > { %v5583_v36 = vsub.f32 %v445_v0, %v513_v34  ;;  %v5585_v37 = vsub.f32 %v447_v1, %v515_v35 }
  0xa6   : > { %v469_v38 = vpop.xlane.xlu0 %468  ;;  %v475_v39 = vpop.xlane.xlu1 %474 }
  0xa7   : > { %v514_v40 = vmul.f32 0.015625, %v469_v38  ;;  %v516_v41 = vmul.f32 0.015625, %v475_v39  ;;  %v545_v42 = vmul.f32 %v5583_v36, %v5583_v36  ;;  %v547_v43 = vmul.f32 %v5585_v37, %v5585_v37 }
  0xa9   : > { %v5591_v44 = vsub.f32 %v446_v2, %v514_v40  ;;  %v5593_v45 = vsub.f32 %v448_v5, %v516_v41  ;;  %v561_v46 = vsel %vm463_vm0, %v545_v42, 0.0  ;;  %v567_v49 = vsel %vm463_vm0, %v547_v43, 0.0 }
  0xaa   : > { %562 = vadd.xlane.f32.xlu0 %v561_v46  ;;  %v478_v47 = vpop.xlane.xlu0 %477  ;;  %v481_v48 = vpop.xlane.xlu1 %480 }
  0xab   : > { %v517_v50 = vmul.f32 0.015625, %v478_v47  ;;  %v518_v51 = vmul.f32 0.015625, %v481_v48  ;;  %v546_v52 = vmul.f32 %v5591_v44, %v5591_v44  ;;  %v548_v53 = vmul.f32 %v5593_v45, %v5593_v45 }
  0xad   : > { %v5602_v54 = vsub.f32 %v5522_v6, %v517_v50  ;;  %v5605_v55 = vsub.f32 %v5525_v7, %v518_v51  ;;  %v564_v56 = vsel %vm463_vm0, %v546_v52, 0.0  ;;  %v570_v59 = vsel %vm463_vm0, %v548_v53, 0.0  ;;  %v4969_v53 = vld [vmem:[%s7652_s3 + $0x14] ss:$8 sps:$4 sm:$0xff]  }
  0xae   : > { %568 = vadd.xlane.f32.xlu0 %v567_v49  ;;  %565 = vadd.xlane.f32.xlu1 %v564_v56  ;;  %v484_v57 = vpop.xlane.xlu0 %483  ;;  %v487_v58 = vpop.xlane.xlu1 %486  ;;  %v4966_v49 = vld [vmem:[%s7652_s3 + $0x4] ss:$8 sps:$4 sm:$0xff]  }
  0xaf   : > { %v519_v60 = vmul.f32 0.015625, %v484_v57  ;;  %v520_v61 = vmul.f32 0.015625, %v487_v58  ;;  %v549_v62 = vmul.f32 %v5602_v54, %v5602_v54  ;;  %v550_v63 = vmul.f32 %v5605_v55, %v5605_v55  ;;  %809 = vmatprep.subr.bf16.mxu0 %v4966_v49  ;;  %v4971_v57 = vld [vmem:[%s7652_s3 + $0x10] ss:$8 sps:$4 sm:$0xff]   ;;  %v4972_v58 = vld [vmem:[%s7652_s3 + $0x24] ss:$8 sps:$4 sm:$0xff]  }
  0xb1   : > { %v5614_v0 = vsub.f32 %v5528_v8, %v519_v60  ;;  %v5617_v1 = vsub.f32 %v5531_v9, %v520_v61  ;;  %v573_v2 = vsel %vm463_vm0, %v549_v62, 0.0  ;;  %v576_v5 = vsel %vm463_vm0, %v550_v63, 0.0  ;;  %v4975_v60 = vld [vmem:[%s7652_s3 + $0x34] ss:$8 sps:$4 sm:$0xff]   ;;  %v4977_v61 = vld [vmem:[%s7652_s3 + $0x30] ss:$8 sps:$4 sm:$0xff]  }
  0xb2   : > { %571 = vadd.xlane.f32.xlu1 %v570_v59  ;;  %574 = vadd.xlane.f32.xlu0 %v573_v2  ;;  %v490_v3 = vpop.xlane.xlu0 %489  ;;  %v493_v4 = vpop.xlane.xlu1 %492  ;;  %v4974_v59 = vld [vmem:[%s7652_s3 + $0x20] ss:$8 sps:$4 sm:$0xff]   ;;  %v7665_v62 = vmov 0  }
  0xb3   : > { %v521_v6 = vmul.f32 0.015625, %v490_v3  ;;  %v522_v7 = vmul.f32 0.015625, %v493_v4  ;;  %v551_v11 = vmul.f32 %v5614_v0, %v5614_v0  ;;  %v552_v8 = vmul.f32 %v5617_v1, %v5617_v1  ;;  %841 = vmatprep.mubr.bf16.mxu0 %v7665_v62 }
  0xb5   : > { %v5626_v12 = vsub.f32 %v5534_v10, %v521_v6  ;;  %v5629_v9 = vsub.f32 %v5539_v13, %v522_v7  ;;  %v579_v14 = vsel %vm463_vm0, %v551_v11, 0.0  ;;  %v582_v17 = vsel %vm463_vm0, %v552_v8, 0.0 }
  0xb6   : > { %577 = vadd.xlane.f32.xlu1 %v576_v5  ;;  %580 = vadd.xlane.f32.xlu0 %v579_v14  ;;  %v496_v15 = vpop.xlane.xlu0 %495  ;;  %v499_v16 = vpop.xlane.xlu1 %498 }
  0xb7   : > { %v523_v18 = vmul.f32 0.015625, %v496_v15  ;;  %v524_v19 = vmul.f32 0.015625, %v499_v16  ;;  %v553_v22 = vmul.f32 %v5626_v12, %v5626_v12  ;;  %v554_v10 = vmul.f32 %v5629_v9, %v5629_v9 }
  0xb9   : > { %v5638_v23 = vsub.f32 %v5554_v20, %v523_v18  ;;  %v5641_v13 = vsub.f32 %v5557_v21, %v524_v19  ;;  %v585_v26 = vsel %vm463_vm0, %v553_v22, 0.0  ;;  %v588_v31 = vsel %vm463_vm0, %v554_v10, 0.0 }
  0xba   : > { %583 = vadd.xlane.f32.xlu1 %v582_v17  ;;  %586 = vadd.xlane.f32.xlu0 %v585_v26  ;;  %v502_v27 = vpop.xlane.xlu0 %501  ;;  %v505_v30 = vpop.xlane.xlu1 %504 }
  0xbb   : > { %v525_v32 = vmul.f32 0.015625, %v502_v27  ;;  %v526_v33 = vmul.f32 0.015625, %v505_v30  ;;  %v555_v34 = vmul.f32 %v5638_v23, %v5638_v23  ;;  %v556_v20 = vmul.f32 %v5641_v13, %v5641_v13 }
  0xbd   : > { %v5650_v35 = vsub.f32 %v5564_v24, %v525_v32  ;;  %v5653_v21 = vsub.f32 %v5567_v25, %v526_v33  ;;  %v591_v38 = vsel %vm463_vm0, %v555_v34, 0.0  ;;  %v594_v41 = vsel %vm463_vm0, %v556_v20, 0.0  ;;  %v5704_v34 = vld [vmem:[%s7650_s1] ss:$0 sm:$0xff] }
  0xbe   : > { %589 = vadd.xlane.f32.xlu1 %v588_v31  ;;  %592 = vadd.xlane.f32.xlu0 %v591_v38  ;;  %v508_v39 = vpop.xlane.xlu0 %507  ;;  %v511_v40 = vpop.xlane.xlu1 %510 }
  0xbf   : > { %v527_v42 = vmul.f32 0.015625, %v508_v39  ;;  %v528_v43 = vmul.f32 0.015625, %v511_v40  ;;  %v557_v46 = vmul.f32 %v5650_v35, %v5650_v35  ;;  %v558_v24 = vmul.f32 %v5653_v21, %v5653_v21 }
  0xc1   : > { %v5662_v47 = vsub.f32 %v5574_v28, %v527_v42  ;;  %v5665_v25 = vsub.f32 %v5577_v29, %v528_v43  ;;  %v597_v48 = vsel %vm463_vm0, %v557_v46, 0.0  ;;  %v600_v50 = vsel %vm463_vm0, %v558_v24, 0.0  ;;  %v4968_v29 = vld [vmem:[%s7652_s3] ss:$8 sps:$4 sm:$0xff]  }
  0xc2   : > { %595 = vadd.xlane.f32.xlu1 %v594_v41  ;;  %598 = vadd.xlane.f32.xlu0 %v597_v48 }
  0xc3   : > { %v559_v51 = vmul.f32 %v5662_v47, %v5662_v47  ;;  %v560_v28 = vmul.f32 %v5665_v25, %v5665_v25  ;;  %810 = vmatpush1.bf16.msra.mxu0 %v4968_v29 }
  0xc4   : > { %811 = vmatprep.subr.bf16.mxu0 %v4969_v53 }
  0xc5   : > { %v603_v52 = vsel %vm463_vm0, %v559_v51, 0.0  ;;  %v606_v56 = vsel %vm463_vm0, %v560_v28, 0.0 }
  0xc6   : > { %601 = vadd.xlane.f32.xlu1 %v600_v50  ;;  %604 = vadd.xlane.f32.xlu0 %v603_v52 }
  0xc7   : > { %812 = vmatpush1.bf16.msra.mxu0 %v4971_v57 }
  0xc8   : > { %813 = vmatprep.subr.bf16.mxu0 %v4972_v58 }
  0xca   : > { %607 = vadd.xlane.f32.xlu1 %v606_v56 }
  0xcb   : > { %814 = vmatpush1.bf16.msra.mxu0 %v4974_v59 }
  0xcc   : > { %815 = vmatprep.subr.bf16.mxu0 %v4975_v60 }
  0xcf   : > { %816 = vmatpush1.bf16.msra.mxu0 %v4977_v61 }
 0x137   : > { %v563_v63 = vpop.xlane.xlu0 %562 }
 0x138   : > { %v609_v2 = vmul.f32 0.015625, %v563_v63 }
 0x13a   : > { %v625_v3 = vadd.f32 1e-05, %v609_v2 }
 0x13b   : > { %v566_v4 = vpop.xlane.xlu1 %565  ;;  %v569_v5 = vpop.xlane.xlu0 %568 }
 0x13c   : > { %5010 = vrsqrt.f32 %v625_v3  ;;  %v610_v6 = vmul.f32 0.015625, %v566_v4  ;;  %v611_v7 = vmul.f32 0.015625, %v569_v5 }
 0x13e   : > { %v626_v11 = vadd.f32 1e-05, %v610_v6  ;;  %v627_v8 = vadd.f32 1e-05, %v611_v7 }
 0x13f   : > { %v572_v14 = vpop.xlane.xlu1 %571  ;;  %v575_v15 = vpop.xlane.xlu0 %574 }
 0x140   : > { %5012 = vrsqrt.f32 %v626_v11  ;;  %v612_v16 = vmul.f32 0.015625, %v572_v14  ;;  %v613_v18 = vmul.f32 0.015625, %v575_v15 }
 0x141   : > { %5014 = vrsqrt.f32 %v627_v8 }
 0x142   : > { %v628_v17 = vadd.f32 1e-05, %v612_v16  ;;  %v629_v26 = vadd.f32 1e-05, %v613_v18 }
 0x143   : > { %v578_v19 = vpop.xlane.xlu1 %577  ;;  %v581_v30 = vpop.xlane.xlu0 %580 }
 0x144   : > { %5016 = vrsqrt.f32 %v628_v17  ;;  %v614_v22 = vmul.f32 0.015625, %v578_v19  ;;  %v615_v38 = vmul.f32 0.015625, %v581_v30 }
 0x146   : > { %v5011_v10 = vpop.eup %5010  ;;  %v630_v27 = vadd.f32 1e-05, %v614_v22  ;;  %v631_v48 = vadd.f32 1e-05, %v615_v38 }
 0x147   : > { %v584_v31 = vpop.xlane.xlu1 %583  ;;  %v657_v32 = vmul.f32 %v5011_v10, %v5583_v36  ;;  %v5711_v36 = vld [vmem:[%s7651_s2] ss:$0 sm:$0xff]  ;;  %v587_v49 = vpop.xlane.xlu0 %586 }
 0x148   : > { %5018 = vrsqrt.f32 %v630_v27  ;;  %v616_v33 = vmul.f32 0.015625, %v584_v31  ;;  %v617_v57 = vmul.f32 0.015625, %v587_v49 }
 0x149   : > { %5020 = vrsqrt.f32 %v629_v26  ;;  %v679_v40 = vmul.f32 %v5704_v34, %v657_v32 }
 0x14a   : > { %v5013_v20 = vpop.eup %5012  ;;  %v632_v42 = vadd.f32 1e-05, %v616_v33  ;;  %v633_v63 = vadd.f32 1e-05, %v617_v57 }
 0x14b   : > { %v658_v39 = vmul.f32 %v5013_v20, %v5591_v44  ;;  %v5015_v41 = vpop.eup %5014  ;;  %v590_v43 = vpop.xlane.xlu1 %589  ;;  %v701_v50 = vadd.f32 %v5711_v36, %v679_v40 }
 0x14c   : > { %v659_v44 = vmul.f32 %v5015_v41, %v5585_v37  ;;  %5022 = vrsqrt.f32 %v632_v42  ;;  %v618_v29 = vmul.f32 0.015625, %v590_v43  ;;  %v593_v2 = vpop.xlane.xlu0 %592 }
 0x14d   : > { %v680_v46 = vmul.f32 %v5704_v34, %v658_v39  ;;  %5024 = vrsqrt.f32 %v631_v48  ;;  %v619_v8 = vmul.f32 0.015625, %v593_v2 }
 0x14e   : > { %v5017_v24 = vpop.eup %5016  ;;  %v681_v58 = vmul.f32 %v5704_v34, %v659_v44  ;;  %v634_v60 = vadd.f32 1e-05, %v618_v29 }
 0x14f   : > { %v702_v51 = vadd.f32 %v5711_v36, %v680_v46  ;;  %v660_v28 = vmul.f32 %v5017_v24, %v5593_v45  ;;  %v596_v61 = vpop.xlane.xlu1 %595  ;;  %v635_v18 = vadd.f32 1e-05, %v619_v8 }
 0x150   : > { %v703_v3 = vadd.f32 %v5711_v36, %v681_v58  ;;  %5026 = vrsqrt.f32 %v634_v60  ;;  %v620_v5 = vmul.f32 0.015625, %v596_v61  ;;  %v599_v19 = vpop.xlane.xlu0 %598 }
 0x151   : > { %v717_v52 = vpack.c.bf16 %v702_v51, %v701_v50  ;;  %v682_v53 = vmul.f32 %v5704_v34, %v660_v28  ;;  %5028 = vrsqrt.f32 %v633_v63  ;;  %v621_v32 = vmul.f32 0.015625, %v599_v19 }
 0x152   : > { %v5019_v56 = vpop.eup %5018 }
 0x153   : > { %4327 = vmatmul.mubr.msk.bf16.vlgmr.msra.gmra.mrb[0].mxu0 %vm463_vm0, %v717_v52  ;;  %v5021_v59 = vpop.eup %5020  ;;  %v704_v37 = vadd.f32 %v5711_v36, %v682_v53  ;;  %v662_v45 = vmul.f32 %v5019_v56, %v5605_v55  ;;  %v636_v55 = vadd.f32 1e-05, %v620_v5  ;;  %v602_v16 = vpop.xlane.xlu1 %601  ;;  %v637_v40 = vadd.f32 1e-05, %v621_v32 }
 0x154   : > { %851 = vmatprep.mubr.bf16.mxu0 %v7665_v62  ;;  %v661_v4 = vmul.f32 %v5021_v59, %v5602_v54  ;;  %v622_v26 = vmul.f32 0.015625, %v602_v16  ;;  %v605_v41 = vpop.xlane.xlu0 %604 }
 0x155   : > { %v718_v6 = vpack.c.bf16 %v704_v37, %v703_v3  ;;  %v684_v7 = vmul.f32 %v5704_v34, %v662_v45  ;;  %5030 = vrsqrt.f32 %v636_v55  ;;  %v623_v50 = vmul.f32 0.015625, %v605_v41 }
 0x156   : > { %v5023_v11 = vpop.eup %5022  ;;  %v683_v14 = vmul.f32 %v5704_v34, %v661_v4  ;;  %5032 = vrsqrt.f32 %v635_v18 }
 0x157   : > { %v5025_v15 = vpop.eup %5024  ;;  %v706_v17 = vadd.f32 %v5711_v36, %v684_v7  ;;  %v664_v54 = vmul.f32 %v5023_v11, %v5617_v1  ;;  %v638_v1 = vadd.f32 1e-05, %v622_v26  ;;  %v608_v38 = vpop.xlane.xlu1 %607  ;;  %v639_v29 = vadd.f32 1e-05, %v623_v50 }
 0x158   : > { %v705_v22 = vadd.f32 %v5711_v36, %v683_v14  ;;  %v663_v10 = vmul.f32 %v5025_v15, %v5614_v0  ;;  %v624_v46 = vmul.f32 0.015625, %v608_v38 }
 0x159   : > { %v686_v30 = vmul.f32 %v5704_v34, %v664_v54  ;;  %5034 = vrsqrt.f32 %v638_v1 }
 0x15a   : > { %v719_v27 = vpack.c.bf16 %v706_v17, %v705_v22  ;;  %v5027_v31 = vpop.eup %5026  ;;  %v685_v33 = vmul.f32 %v5704_v34, %v663_v10  ;;  %5036 = vrsqrt.f32 %v637_v40  ;;  %v733_v17 = vld [vmem:[%s7653_s4] sm:$0x3] }
 0x15b   : > { %4328 = vmatmul.mubr.msk.bf16.gmra.mrb[4].mxu0 %vm463_vm0, %v718_v6  ;;  %v5029_v20 = vpop.eup %5028  ;;  %v708_v39 = vadd.f32 %v5711_v36, %v686_v30  ;;  %v666_v0 = vmul.f32 %v5027_v31, %v5629_v9  ;;  %v640_v9 = vadd.f32 1e-05, %v624_v46 }
 0x15c   : > { %861 = vmatprep.mubr.bf16.mxu0 %v7665_v62  ;;  %v707_v42 = vadd.f32 %v5711_v36, %v685_v33  ;;  %v665_v43 = vmul.f32 %v5029_v20, %v5626_v12 }
 0x15d   : > { %v688_v48 = vmul.f32 %v5704_v34, %v666_v0  ;;  %5038 = vrsqrt.f32 %v640_v9 }
 0x15e   : > { %v720_v24 = vpack.c.bf16 %v708_v39, %v707_v42  ;;  %v687_v51 = vmul.f32 %v5704_v34, %v665_v43  ;;  %5040 = vrsqrt.f32 %v639_v29 }
 0x15f   : > { %v5031_v49 = vpop.eup %5030  ;;  %v710_v28 = vadd.f32 %v5711_v36, %v688_v48 }
 0x160   : > { %v5033_v44 = vpop.eup %5032  ;;  %v668_v12 = vmul.f32 %v5031_v49, %v5641_v13  ;;  %v709_v52 = vadd.f32 %v5711_v36, %v687_v51 }
 0x161   : > { %v667_v53 = vmul.f32 %v5033_v44, %v5638_v23 }
 0x162   : > { %v721_v56 = vpack.c.bf16 %v710_v28, %v709_v52  ;;  %v690_v57 = vmul.f32 %v5704_v34, %v668_v12 }
 0x163   : > { %4329 = vmatmul.mubr.msk.bf16.gmra.mrb[8].mxu0 %vm463_vm0, %v719_v27  ;;  %v5035_v58 = vpop.eup %5034  ;;  %v689_v59 = vmul.f32 %v5704_v34, %v667_v53 }
 0x164   : > { %871 = vmatprep.mubr.bf16.mxu0 %v7665_v62  ;;  %v5037_v60 = vpop.eup %5036  ;;  %v712_v13 = vadd.f32 %v5711_v36, %v690_v57  ;;  %v670_v61 = vmul.f32 %v5035_v58, %v5653_v21 }
 0x165   : > { %v711_v37 = vadd.f32 %v5711_v36, %v689_v59  ;;  %v669_v23 = vmul.f32 %v5037_v60, %v5650_v35 }
 0x166   : > { %v692_v63 = vmul.f32 %v5704_v34, %v670_v61 }
 0x167   : > { %v722_v45 = vpack.c.bf16 %v712_v13, %v711_v37  ;;  %v5039_v2 = vpop.eup %5038  ;;  %v691_v3 = vmul.f32 %v5704_v34, %v669_v23 }
 0x168   : > { %v5041_v4 = vpop.eup %5040  ;;  %v714_v5 = vadd.f32 %v5711_v36, %v692_v63  ;;  %v672_v6 = vmul.f32 %v5039_v2, %v5665_v25  ;;  %v735_v25 = vlaneseq }
 0x169   : > { %v713_v21 = vadd.f32 %v5711_v36, %v691_v3  ;;  %v671_v7 = vmul.f32 %v5041_v4, %v5662_v47 }
 0x16a   : > { %v694_v11 = vmul.f32 %v5704_v34, %v672_v6  ;;  %v5774_v16 = vshrl.u32 %v735_v25, 7 }
 0x16b   : > { %4330 = vmatmul.mubr.msk.bf16.gmra.mrb[12].mxu0 %vm463_vm0, %v720_v24  ;;  %v723_v35 = vpack.c.bf16 %v714_v5, %v713_v21  ;;  %v693_v8 = vmul.f32 %v5704_v34, %v671_v7 }
 0x16c   : > { %881 = vmatprep.mubr.bf16.mxu0 %v7665_v62  ;;  %v716_v14 = vadd.f32 %v5711_v36, %v694_v11  ;;  %7719 = vst [vmem:[#allocation3_spill] sm:$0xff] %v5774_v16  ;;  %v7664_v47 = vsub.s32 0, %v5774_v16  ;;  %v7663_v34 = vsub.s32 1, %v5774_v16 }
 0x16d   : > { %v715_v15 = vadd.f32 %v5711_v36, %v693_v8 }
 0x16e   : > { %v5783_v54 = vrot.slane %v733_v17, %v7664_v47  ;;  %v5787_v18 = vrot.slane %v733_v17, %v7663_v34 }
 0x16f   : > { %v724_v55 = vpack.c.bf16 %v716_v14, %v715_v15 }
 0x173   : > { %4331 = vmatmul.mubr.msk.bf16.gmra.mrb[16].mxu0 %vm463_vm0, %v721_v56 }
 0x174   : > { %891 = vmatprep.mubr.bf16.mxu0 %v7665_v62 }
 0x17b   : > { %4332 = vmatmul.mubr.msk.bf16.gmra.mrb[20].mxu0 %vm463_vm0, %v722_v45 }
 0x17c   : > { %901 = vmatprep.mubr.bf16.mxu0 %v7665_v62 }
 0x183   : > { %4333 = vmatmul.mubr.msk.bf16.gmra.mrb[24].mxu0 %vm463_vm0, %v723_v35 }
 0x184   : > { %911 = vmatprep.mubr.bf16.mxu0 %v7665_v62 }
 0x18b   : > { %4334 = vmatmul.mubr.msk.bf16.gmra.mrb[28].mxu0 %vm463_vm0, %v724_v55 }
 0x226   : > { %v843_v36 = vpop.f32.mrb[0].mxu0 }
 0x227   : > { %v845_v19 = vpop.f32.mrb[1].mxu0  ;;  %v844_v10 = vadd.f32 %v843_v36, %v5783_v54 }
 0x228   : > { %v847_v22 = vpop.f32.mrb[2].mxu0  ;;  %v846_v30 = vadd.f32 %v845_v19, %v5787_v18 }
 0x229   : > { %v848_v26 = vadd.f32 %v847_v22, %v5783_v54  ;;  %v849_v27 = vpop.f32.mrb[3].mxu0 }
 0x22a   : > { %v850_v31 = vadd.f32 %v849_v27, %v5787_v18 }
 0x22b   : > { %v5793_v32 = vpack.c.bf16 %v848_v26, %v844_v10 }
 0x22c   : > { %v5795_v33 = vpack.c.bf16 %v850_v31, %v846_v30 }
 0x22d   : > { %997 = vrot.lane.b32.xlu0 %v5793_v32, %s5419_s24  ;;  %4637 = vmatprep.mubr.msk.bf16.mxu1 %vm1013_vm1, %v5793_v32 }
 0x22e   : > { %v853_v20 = vpop.f32.mrb[4].mxu0  ;;  %4653 = vmatprep.subr.bf16.mxu0 %v5795_v33 }
 0x22f   : > { %v855_v1 = vpop.f32.mrb[5].mxu0  ;;  %4654 = vmatpush3.bf16.msra.mxu0 %v5795_v33  ;;  %v854_v39 = vadd.f32 %v853_v20, %v5783_v54 }
 0x230   : > { %v857_v38 = vpop.f32.mrb[6].mxu0  ;;  %v856_v41 = vadd.f32 %v855_v1, %v5787_v18 }
 0x231   : > { %v858_v0 = vadd.f32 %v857_v38, %v5783_v54  ;;  %v859_v40 = vpop.f32.mrb[7].mxu0 }
 0x232   : > { %v860_v42 = vadd.f32 %v859_v40, %v5787_v18 }
 0x233   : > { %v5807_v43 = vpack.c.bf16 %v858_v0, %v854_v39 }
 0x234   : > { %v5809_v46 = vpack.c.bf16 %v860_v42, %v856_v41 }
 0x235   : > { %999 = vrot.lane.b32.xlu1 %v5807_v43, %s5419_s24 }
 0x236   : > { %7720 = vst [vmem:[#allocation4_spill] sm:$0xff] %v5809_v46  ;;  %v863_v24 = vpop.f32.mrb[8].mxu0  ;;  %4655 = vmatprep.subr.bf16.mxu0 %v5809_v46 }
 0x237   : > { %v865_v48 = vpop.f32.mrb[9].mxu0  ;;  %4656 = vmatpush3.bf16.msra.mxu0 %v5809_v46  ;;  %v864_v50 = vadd.f32 %v863_v24, %v5783_v54 }
 0x238   : > { %v867_v49 = vpop.f32.mrb[10].mxu0  ;;  %v866_v9 = vadd.f32 %v865_v48, %v5787_v18 }
 0x239   : > { %v868_v51 = vadd.f32 %v867_v49, %v5783_v54  ;;  %v869_v44 = vpop.f32.mrb[11].mxu0 }
 0x23a   : > { %v870_v28 = vadd.f32 %v869_v44, %v5787_v18 }
 0x23b   : > { %v5819_v12 = vpack.c.bf16 %v868_v51, %v864_v50 }
 0x23c   : > { %v5821_v29 = vpack.c.bf16 %v870_v28, %v866_v9 }
 0x23d   : > { %1001 = vrot.lane.b32.xlu1 %v5819_v12, %s5419_s24 }
 0x23e   : > { %v873_v52 = vpop.f32.mrb[12].mxu0  ;;  %4657 = vmatprep.subr.bf16.mxu0 %v5821_v29 }
 0x23f   : > { %v875_v53 = vpop.f32.mrb[13].mxu0  ;;  %4658 = vmatpush3.bf16.msra.mxu0 %v5821_v29  ;;  %v874_v57 = vadd.f32 %v873_v52, %v5783_v54 }
 0x240   : > { %v877_v56 = vpop.f32.mrb[14].mxu0  ;;  %v876_v60 = vadd.f32 %v875_v53, %v5787_v18 }
 0x241   : > { %v878_v58 = vadd.f32 %v877_v56, %v5783_v54  ;;  %v879_v59 = vpop.f32.mrb[15].mxu0 }
 0x242   : > { %v880_v13 = vadd.f32 %v879_v59, %v5787_v18 }
 0x243   : > { %v5831_v61 = vpack.c.bf16 %v878_v58, %v874_v57 }
 0x244   : > { %v5833_v37 = vpack.c.bf16 %v880_v13, %v876_v60 }
 0x245   : > { %1003 = vrot.lane.b32.xlu1 %v5831_v61, %s5419_s24 }
 0x246   : > { %7721 = vst [vmem:[#allocation5_spill] sm:$0xff] %v5833_v37  ;;  %v883_v23 = vpop.f32.mrb[16].mxu0  ;;  %4659 = vmatprep.subr.bf16.mxu0 %v5833_v37 }
 0x247   : > { %v885_v45 = vpop.f32.mrb[17].mxu0  ;;  %4660 = vmatpush3.bf16.msra.mxu0 %v5833_v37  ;;  %v884_v2 = vadd.f32 %v883_v23, %v5783_v54 }
 0x248   : > { %v887_v63 = vpop.f32.mrb[18].mxu0  ;;  %v886_v5 = vadd.f32 %v885_v45, %v5787_v18 }
 0x249   : > { %v888_v3 = vadd.f32 %v887_v63, %v5783_v54  ;;  %v889_v4 = vpop.f32.mrb[19].mxu0 }
 0x24a   : > { %v890_v6 = vadd.f32 %v889_v4, %v5787_v18 }
 0x24b   : > { %v5843_v21 = vpack.c.bf16 %v888_v3, %v884_v2 }
 0x24c   : > { %v5845_v7 = vpack.c.bf16 %v890_v6, %v886_v5 }
 0x24d   : > { %1005 = vrot.lane.b32.xlu0 %v5843_v21, %s5419_s24 }
 0x24e   : > { %7722 = vst [vmem:[#allocation6_spill] sm:$0xff] %v5845_v7  ;;  %v893_v35 = vpop.f32.mrb[20].mxu0  ;;  %4661 = vmatprep.subr.bf16.mxu0 %v5845_v7 }
 0x24f   : > { %v895_v11 = vpop.f32.mrb[21].mxu0  ;;  %4662 = vmatpush3.bf16.msra.mxu0 %v5845_v7  ;;  %v894_v14 = vadd.f32 %v893_v35, %v5783_v54 }
 0x250   : > { %v897_v8 = vpop.f32.mrb[22].mxu0  ;;  %v896_v17 = vadd.f32 %v895_v11, %v5787_v18 }
 0x251   : > { %v898_v15 = vadd.f32 %v897_v8, %v5783_v54  ;;  %v899_v55 = vpop.f32.mrb[23].mxu0 }
 0x252   : > { %v900_v36 = vadd.f32 %v899_v55, %v5787_v18 }
 0x253   : > { %v5855_v19 = vpack.c.bf16 %v898_v15, %v894_v14 }
 0x254   : > { %v5857_v22 = vpack.c.bf16 %v900_v36, %v896_v17 }
 0x255   : > { %1007 = vrot.lane.b32.xlu1 %v5855_v19, %s5419_s24 }
 0x256   : > { %7723 = vst [vmem:[#allocation7_spill] sm:$0xff] %v5857_v22  ;;  %v903_v10 = vpop.f32.mrb[24].mxu0  ;;  %4663 = vmatprep.subr.bf16.mxu0 %v5857_v22 }
 0x257   : > { %v905_v26 = vpop.f32.mrb[25].mxu0  ;;  %4664 = vmatpush3.bf16.msra.mxu0 %v5857_v22  ;;  %v904_v30 = vadd.f32 %v903_v10, %v5783_v54 }
 0x258   : > { %v907_v27 = vpop.f32.mrb[26].mxu0  ;;  %v906_v1 = vadd.f32 %v905_v26, %v5787_v18 }
 0x259   : > { %v908_v31 = vadd.f32 %v907_v27, %v5783_v54  ;;  %v909_v20 = vpop.f32.mrb[27].mxu0 }
 0x25a   : > { %v910_v38 = vadd.f32 %v909_v20, %v5787_v18 }
 0x25b   : > { %v5867_v39 = vpack.c.bf16 %v908_v31, %v904_v30 }
 0x25c   : > { %v5869_v0 = vpack.c.bf16 %v910_v38, %v906_v1 }
 0x25d   : > { %1009 = vrot.lane.b32.xlu0 %v5867_v39, %s5419_s24 }
 0x25e   : > { %7724 = vst [vmem:[#allocation8_spill] sm:$0xff] %v5869_v0  ;;  %v913_v40 = vpop.f32.mrb[28].mxu0  ;;  %4665 = vmatprep.subr.bf16.mxu0 %v5869_v0 }
 0x25f   : > { %v915_v41 = vpop.f32.mrb[29].mxu0  ;;  %4666 = vmatpush3.bf16.msra.mxu0 %v5869_v0  ;;  %v914_v24 = vadd.f32 %v913_v40, %v5783_v54 }
 0x260   : > { %v917_v42 = vpop.f32.mrb[30].mxu0  ;;  %v916_v50 = vadd.f32 %v915_v41, %v5787_v18 }
 0x261   : > { %v918_v48 = vadd.f32 %v917_v42, %v5783_v54  ;;  %1440 = vrot.lane.b32.xlu0 %v5793_v32, %s5420_s26  ;;  %v919_v49 = vpop.f32.mrb[31].mxu0 }
 0x262   : > { %v920_v51 = vadd.f32 %v919_v49, %v5787_v18 }
 0x263   : > { %v5881_v44 = vpack.c.bf16 %v918_v48, %v914_v24 }
 0x264   : > { %v5883_v9 = vpack.c.bf16 %v920_v51, %v916_v50  ;;  %v925_v50 = vadd.s32 16, %v5774_v16  ;;  %v5982_v51 = vand.u32 127, %v735_v25 }
 0x265   : > { %1444 = vrot.lane.b32.xlu0 %v5819_v12, %s5420_s26  ;;  %1011 = vrot.lane.b32.xlu1 %v5881_v44, %s5419_s24 }
 0x266   : > { %7725 = vst [vmem:[#allocation9_spill] sm:$0xff] %v5883_v9  ;;  %4667 = vmatprep.subr.bf16.mxu0 %v5883_v9  ;;  %vm943_vm2 = vcmp.ge.s32.totalorder %v925_v50, %v5982_v51  ;;  %vm941_vm4 = vcmp.ge.s32.totalorder %v5774_v16, %v5982_v51 }
 0x267   : > { %4668 = vmatpush3.bf16.msra.mxu0 %v5883_v9 }
 0x269   : > { %1448 = vrot.lane.b32.xlu0 %v5843_v21, %s5420_s26  ;;  %1442 = vrot.lane.b32.xlu1 %v5807_v43, %s5420_s26 }
 0x26d   : > { %1452 = vrot.lane.b32.xlu0 %v5867_v39, %s5420_s26  ;;  %1446 = vrot.lane.b32.xlu1 %v5831_v61, %s5420_s26 }
 0x271   : > { %1424 = vrot.lane.b32.xlu0 %v5793_v32, %s5421_s29  ;;  %1450 = vrot.lane.b32.xlu1 %v5855_v19, %s5420_s26 }
 0x275   : > { %1428 = vrot.lane.b32.xlu0 %v5819_v12, %s5421_s29  ;;  %1454 = vrot.lane.b32.xlu1 %v5881_v44, %s5420_s26 }
 0x279   : > { %1432 = vrot.lane.b32.xlu0 %v5843_v21, %s5421_s29  ;;  %1426 = vrot.lane.b32.xlu1 %v5807_v43, %s5421_s29 }
 0x27d   : > { %1436 = vrot.lane.b32.xlu0 %v5867_v39, %s5421_s29  ;;  %1430 = vrot.lane.b32.xlu1 %v5831_v61, %s5421_s29 }
 0x281   : > { %1761 = vrot.lane.b32.xlu0 %v5795_v33, %s5421_s29  ;;  %1434 = vrot.lane.b32.xlu1 %v5855_v19, %s5421_s29 }
 0x285   : > { %1765 = vrot.lane.b32.xlu0 %v5821_v29, %s5421_s29  ;;  %1438 = vrot.lane.b32.xlu1 %v5881_v44, %s5421_s29 }
 0x289   : > { %1769 = vrot.lane.b32.xlu0 %v5845_v7, %s5421_s29  ;;  %1763 = vrot.lane.b32.xlu1 %v5809_v46, %s5421_s29 }
 0x28d   : > { %1771 = vrot.lane.b32.xlu0 %v5857_v22, %s5421_s29  ;;  %1767 = vrot.lane.b32.xlu1 %v5833_v37, %s5421_s29 }
 0x291   : > { %1773 = vrot.lane.b32.xlu0 %v5869_v0, %s5421_s29  ;;  %1981 = vrot.lane.b32.xlu1 %v5807_v43, %s5422_s30 }
 0x295   : > { %1979 = vrot.lane.b32.xlu0 %v5793_v32, %s5422_s30  ;;  %1775 = vrot.lane.b32.xlu1 %v5883_v9, %s5421_s29 }
 0x29f   : > { %v998_v54 = vpop.permute.xlu0 %997 }
 0x2a0   : > { %4917 = vmatprep.subr.msk.bf16.mxu1 %vm1013_vm1, %v998_v54  ;;  %v1039_v18 = vsel %vm1013_vm1, %v998_v54, 0  ;;  %v924_v54 = vadd.s32 8, %v5774_v16 }
 0x2a1   : > { %4622 = vmatpush3.bf16.xpose.msra.mxu1 %v1039_v18  ;;  %v5423_v18 = vmov -1e+30  }
 0x2a2   : > { %vm942_vm3 = vcmp.ge.s32.totalorder %v924_v54, %v5982_v51 }
 0x2a7   : > { %v1000_v28 = vpop.permute.xlu1 %999 }
 0x2a8   : > { %4918 = vmatprep.subr.msk.bf16.mxu1 %vm1013_vm1, %v1000_v28  ;;  %v1042_v52 = vsel %vm1013_vm1, %v1000_v28, 0  ;;  %v5987_v28 = vsel %vm943_vm2, 0.0, %v5423_v18 }
 0x2a9   : > { %4624 = vmatpush3.bf16.xpose.msra.mxu1 %v1042_v52  ;;  %7726 = vst [vmem:[#allocation10_spill] sm:$0xff] %v5987_v28  ;;  %v926_v52 = vadd.s32 24, %v5774_v16 }
 0x2ab   : > { %vm944_vm5 = vcmp.ge.s32.totalorder %v926_v52, %v5982_v51  ;;  %v937_v52 = vadd.s32 112, %v5774_v16 }
 0x2ad   : > { %vm955_vm15 = vcmp.ge.s32.totalorder %v937_v52, %v5982_v51 }
 0x2af   : > { %v1002_v53 = vpop.permute.xlu1 %1001 }
 0x2b0   : > { %4919 = vmatprep.subr.msk.bf16.mxu1 %vm1013_vm1, %v1002_v53  ;;  %v1045_v56 = vsel %vm1013_vm1, %v1002_v53, 0 }
 0x2b1   : > { %4626 = vmatpush3.bf16.xpose.msra.mxu1 %v1045_v56 }
 0x2b7   : > { %v1004_v57 = vpop.permute.xlu1 %1003 }
 0x2b8   : > { %4920 = vmatprep.subr.msk.bf16.mxu1 %vm1013_vm1, %v1004_v57  ;;  %v1048_v58 = vsel %vm1013_vm1, %v1004_v57, 0  ;;  %v5997_v57 = vsel %vm942_vm3, 0.0, %v5423_v18 }
 0x2b9   : > { %4628 = vmatpush3.bf16.xpose.msra.mxu1 %v1048_v58  ;;  %7727 = vst [vmem:[#allocation11_spill] sm:$0xff] %v5997_v57  ;;  %v930_v58 = vadd.s32 56, %v5774_v16 }
 0x2bb   : > { %vm948_vm6 = vcmp.ge.s32.totalorder %v930_v58, %v5982_v51  ;;  %v936_v58 = vadd.s32 104, %v5774_v16 }
 0x2bd   : > { %vm954_vm2 = vcmp.ge.s32.totalorder %v936_v58, %v5982_v51 }
 0x2bf   : > { %v1006_v59 = vpop.permute.xlu0 %1005 }
 0x2c0   : > { %4921 = vmatprep.subr.msk.bf16.mxu1 %vm1013_vm1, %v1006_v59  ;;  %v1051_v60 = vsel %vm1013_vm1, %v1006_v59, 0  ;;  %v6001_v59 = vsel %vm941_vm4, 0.0, %v5423_v18  ;;  %vm2477_vm4 = vcmask 392448  }
 0x2c1   : > { %4630 = vmatpush3.bf16.xpose.msra.mxu1 %v1051_v60  ;;  %7728 = vst [vmem:[#allocation12_spill] sm:$0xff] %v6001_v59 }
 0x2c7   : > { %v1008_v13 = vpop.permute.xlu1 %1007 }
 0x2c8   : > { %4922 = vmatprep.subr.msk.bf16.mxu1 %vm1013_vm1, %v1008_v13  ;;  %v1054_v23 = vsel %vm1013_vm1, %v1008_v13, 0 }
 0x2c9   : > { %4632 = vmatpush3.bf16.xpose.msra.mxu1 %v1054_v23  ;;  %v929_v23 = vadd.s32 48, %v5774_v16 }
 0x2cb   : > { %vm947_vm7 = vcmp.ge.s32.totalorder %v929_v23, %v5982_v51  ;;  %v935_v23 = vadd.s32 96, %v5774_v16 }
 0x2cd   : > { %vm953_vm3 = vcmp.ge.s32.totalorder %v935_v23, %v5982_v51 }
 0x2cf   : > { %v1010_v45 = vpop.permute.xlu0 %1009 }
 0x2d0   : > { %4923 = vmatprep.subr.msk.bf16.mxu1 %vm1013_vm1, %v1010_v45  ;;  %v1057_v63 = vsel %vm1013_vm1, %v1010_v45, 0 }
 0x2d1   : > { %4634 = vmatpush3.bf16.xpose.msra.mxu1 %v1057_v63 }
 0x2d3   : > { %v1441_v2 = vpop.permute.xlu0 %1440 }
 0x2d4   : > { %v1481_v11 = vsel %vm1013_vm1, %v1441_v2, 0 }
 0x2d7   : > { %v1012_v3 = vpop.permute.xlu1 %1011  ;;  %v1445_v4 = vpop.permute.xlu0 %1444 }
 0x2d8   : > { %4924 = vmatprep.subr.msk.bf16.mxu1 %vm1013_vm1, %v1012_v3  ;;  %v1060_v5 = vsel %vm1013_vm1, %v1012_v3, 0  ;;  %v1487_v10 = vsel %vm1013_vm1, %v1445_v4, 0  ;;  %v6015_v3 = vsel %vm944_vm5, 0.0, %v5423_v18  ;;  %vm3008_vm5 = vcmask 523648  }
 0x2d9   : > { %4636 = vmatpush3.bf16.xpose.msra.mxu1 %v1060_v5  ;;  %7729 = vst [vmem:[#allocation13_spill] sm:$0xff] %v6015_v3 }
 0x2da   : > { %4925 = vmatprep.subr.msk.bf16.mxu1 %vm1013_vm1, %v1441_v2  ;;  %v928_v2 = vadd.s32 40, %v5774_v16 }
 0x2db   : > { %v1449_v6 = vpop.permute.xlu0 %1448  ;;  %v1443_v8 = vpop.permute.xlu1 %1442 }
 0x2dc   : > { %v1484_v55 = vsel %vm1013_vm1, %v1443_v8, 0  ;;  %v1493_v31 = vsel %vm1013_vm1, %v1449_v6, 0  ;;  %vm946_vm8 = vcmp.ge.s32.totalorder %v928_v2, %v5982_v51 }
 0x2df   : > { %v1453_v35 = vpop.permute.xlu0 %1452  ;;  %v1447_v26 = vpop.permute.xlu1 %1446 }
 0x2e0   : > { %4638 = vmatmul.mubr.msk.bf16.vlgmr.msra.gmra.mrb[0].mxu1 %vm1013_vm1, %v5807_v43  ;;  %v1490_v30 = vsel %vm1013_vm1, %v1447_v26, 0  ;;  %v1499_v38 = vsel %vm1013_vm1, %v1453_v35, 0 }
 0x2e1   : > { %4641 = vmatprep.mubr.msk.bf16.mxu1 %vm1013_vm1, %v5819_v12  ;;  %4686 = vmatpush3.bf16.xpose.msra.mxu1 %v1481_v11 }
 0x2e2   : > { %4926 = vmatprep.subr.msk.bf16.mxu1 %vm1013_vm1, %v1443_v8  ;;  %v934_v8 = vadd.s32 88, %v5774_v16 }
 0x2e3   : > { %v1425_v14 = vpop.permute.xlu0 %1424  ;;  %v1451_v20 = vpop.permute.xlu1 %1450 }
 0x2e4   : > { %v1496_v1 = vsel %vm1013_vm1, %v1451_v20, 0  ;;  %vm952_vm10 = vcmp.ge.s32.totalorder %v934_v8, %v5982_v51  ;;  %v6101_v8 = vsel %vm955_vm15, 0.0, %v5423_v18 }
 0x2e5   : > { %7739 = vst [vmem:[#allocation23_spill] sm:$0xff] %v6101_v8 }
 0x2e7   : > { %v1429_v15 = vpop.permute.xlu0 %1428  ;;  %v1455_v40 = vpop.permute.xlu1 %1454 }
 0x2e8   : > { %4642 = vmatmul.mubr.msk.bf16.gmra.mrb[4].mxu1 %vm1013_vm1, %v5831_v61  ;;  %v1502_v41 = vsel %vm1013_vm1, %v1455_v40, 0 }
 0x2e9   : > { %4645 = vmatprep.mubr.msk.bf16.mxu1 %vm1013_vm1, %v5843_v21  ;;  %4688 = vmatpush3.bf16.xpose.msra.mxu1 %v1484_v55 }
 0x2ea   : > { %4927 = vmatprep.subr.msk.bf16.mxu1 %vm1013_vm1, %v1445_v4  ;;  %v927_v4 = vadd.s32 32, %v5774_v16 }
 0x2eb   : > { %v1433_v17 = vpop.permute.xlu0 %1432  ;;  %v1427_v42 = vpop.permute.xlu1 %1426 }
 0x2ec   : > { %vm945_vm9 = vcmp.ge.s32.totalorder %v927_v4, %v5982_v51 }
 0x2ef   : > { %v1437_v36 = vpop.permute.xlu0 %1436  ;;  %v1431_v24 = vpop.permute.xlu1 %1430 }
 0x2f0   : > { %4646 = vmatmul.mubr.msk.bf16.gmra.mrb[8].mxu1 %vm1013_vm1, %v5855_v19 }
 0x2f1   : > { %4649 = vmatprep.mubr.msk.bf16.mxu1 %vm1013_vm1, %v5867_v39  ;;  %4690 = vmatpush3.bf16.xpose.msra.mxu1 %v1487_v10  ;;  %v6039_v10 = vsel %vm946_vm8, 0.0, %v5423_v18 }
 0x2f2   : > { %4928 = vmatprep.subr.msk.bf16.mxu1 %vm1013_vm1, %v1447_v26  ;;  %7732 = vst [vmem:[#allocation16_spill] sm:$0xff] %v6039_v10 }
 0x2f3   : > { %v5958_v27 = vpop.permute.xlu0 %1761  ;;  %v1435_v48 = vpop.permute.xlu1 %1434 }
 0x2f4   : > { %4717 = vmatprep.subr.bf16.mxu0 %v5958_v27 }
 0x2f7   : > { %v1439_v49 = vpop.permute.xlu1 %1438 }
 0x2f8   : > { %4650 = vmatmul.mubr.msk.bf16.gmra.mrb[12].mxu1 %vm1013_vm1, %v5881_v44 }
 0x2f9   : > { %4692 = vmatpush3.bf16.xpose.msra.mxu1 %v1490_v30  ;;  %4701 = vmatprep.mubr.msk.bf16.mxu1 %vm1013_vm1, %v1425_v14  ;;  %v6030_v14 = vsel %vm947_vm7, 0.0, %v5423_v18  ;;  %v932_v30 = vadd.s32 72, %v5774_v16 }
 0x2fa   : > { %4929 = vmatprep.subr.msk.bf16.mxu1 %vm1013_vm1, %v1449_v6  ;;  %v6022_v6 = vsel %vm948_vm6, 0.0, %v5423_v18  ;;  %7731 = vst [vmem:[#allocation15_spill] sm:$0xff] %v6030_v14 }
 0x2fb   : > { %7730 = vst [vmem:[#allocation14_spill] sm:$0xff] %v6022_v6  ;;  %vm950_vm12 = vcmp.ge.s32.totalorder %v932_v30, %v5982_v51  ;;  %v6109_v30 = vsel %vm954_vm2, 0.0, %v5423_v18 }
 0x2fc   : > { %7740 = vst [vmem:[#allocation24_spill] sm:$0xff] %v6109_v30 }
 0x301   : > { %4694 = vmatpush3.bf16.xpose.msra.mxu1 %v1493_v31  ;;  %v6048_v31 = vsel %vm945_vm9, 0.0, %v5423_v18 }
 0x302   : > { %4930 = vmatprep.subr.msk.bf16.mxu1 %vm1013_vm1, %v1451_v20  ;;  %7733 = vst [vmem:[#allocation17_spill] sm:$0xff] %v6048_v31 }
 0x309   : > { %4696 = vmatpush3.bf16.xpose.msra.mxu1 %v1496_v1  ;;  %v931_v1 = vadd.s32 64, %v5774_v16 }
 0x30a   : > { %4931 = vmatprep.subr.msk.bf16.mxu1 %vm1013_vm1, %v1453_v35 }
 0x30b   : > { %vm949_vm13 = vcmp.ge.s32.totalorder %v931_v1, %v5982_v51 }
 0x311   : > { %4698 = vmatpush3.bf16.xpose.msra.mxu1 %v1499_v38 }
 0x312   : > { %4932 = vmatprep.subr.msk.bf16.mxu1 %vm1013_vm1, %v1455_v40  ;;  %v6057_v40 = vsel %vm952_vm10, 0.0, %v5423_v18 }
 0x313   : > { %7734 = vst [vmem:[#allocation18_spill] sm:$0xff] %v6057_v40 }
 0x319   : > { %4700 = vmatpush3.bf16.xpose.msra.mxu1 %v1502_v41 }
 0x320   : > { %4702 = vmatmul.mubr.msk.bf16.vlgmr.msra.gmra.mrb[16].mxu1 %vm1013_vm1, %v1427_v42 }
 0x321   : > { %4705 = vmatprep.mubr.msk.bf16.mxu1 %vm1013_vm1, %v1429_v15 }
 0x328   : > { %4706 = vmatmul.mubr.msk.bf16.gmra.mrb[20].mxu1 %vm1013_vm1, %v1431_v24  ;;  %v938_v24 = vadd.s32 120, %v5774_v16 }
 0x329   : > { %4709 = vmatprep.mubr.msk.bf16.mxu1 %vm1013_vm1, %v1433_v17 }
 0x32a   : > { %vm956_vm14 = vcmp.ge.s32.totalorder %v938_v24, %v5982_v51 }
 0x32b   : > { %v6093_v4 = vsel %vm956_vm14, 0.0, %v5423_v18 }
 0x32c   : > { %7738 = vst [vmem:[#allocation22_spill] sm:$0xff] %v6093_v4 }
 0x330   : > { %4710 = vmatmul.mubr.msk.bf16.gmra.mrb[24].mxu1 %vm1013_vm1, %v1435_v48 }
 0x331   : > { %4713 = vmatprep.mubr.msk.bf16.mxu1 %vm1013_vm1, %v1437_v36  ;;  %v933_v36 = vadd.s32 80, %v5774_v16 }
 0x333   : > { %vm951_vm11 = vcmp.ge.s32.totalorder %v933_v36, %v5982_v51 }
 0x334   : > { %v6066_v48 = vsel %vm951_vm11, 0.0, %v5423_v18 }
 0x335   : > { %7735 = vst [vmem:[#allocation19_spill] sm:$0xff] %v6066_v48 }
 0x338   : > { %4714 = vmatmul.mubr.msk.bf16.gmra.mrb[28].mxu1 %vm1013_vm1, %v1439_v49 }
 0x3b3   : > { %v4639_v53 = vpop.f32.mrb[0].mxu1 }
 0x3b4   : > { %v5994_v56 = vadd.f32 %v4639_v53, %v5987_v28  ;;  %v1096_v25 = vpop.f32.mrb[1].mxu1  ;;  %v6075_v53 = vsel %vm950_vm12, 0.0, %v5423_v18 }
 0x3b5   : > { %v4640_v60 = vpop.f32.mrb[2].mxu1  ;;  %v6010_v63 = vadd.f32 %v1096_v25, %v6001_v59  ;;  %7736 = vst [vmem:[#allocation20_spill] sm:$0xff] %v6075_v53 }
 0x3b6   : > { %1163 = vmax.xlane.f32.xlu0 %v5994_v56  ;;  %v1099_v13 = vpop.f32.mrb[3].mxu1  ;;  %v6025_v35 = vadd.f32 %v4640_v60, %v6015_v3  ;;  %v6084_v60 = vsel %vm949_vm13, 0.0, %v5423_v18 }
 0x3b7   : > { %v6007_v45 = vadd.f32 %v1099_v13, %v5997_v57  ;;  %7737 = vst [vmem:[#allocation21_spill] sm:$0xff] %v6084_v60 }
 0x3b9   : > { %1161 = vmax.xlane.f32.xlu1 %v6007_v45 }
 0x3ba   : > { %1159 = vmax.xlane.f32.xlu0 %v6010_v63 }
 0x3bb   : > { %v4643_v5 = vpop.f32.mrb[4].mxu1 }
 0x3bc   : > { %v1112_v11 = vpop.f32.mrb[5].mxu1  ;;  %v6042_v26 = vadd.f32 %v4643_v5, %v6030_v14 }
 0x3bd   : > { %v4644_v15 = vpop.f32.mrb[6].mxu1  ;;  %v6060_v41 = vadd.f32 %v1112_v11, %v6048_v31 }
 0x3be   : > { %v6034_v55 = vadd.f32 %v4644_v15, %v6022_v6  ;;  %v1115_v17 = vpop.f32.mrb[7].mxu1  ;;  %1165 = vmax.xlane.f32.xlu0 %v6025_v35 }
 0x3bf   : > { %v6051_v20 = vadd.f32 %v1115_v17, %v6039_v10 }
 0x3c0   : > { %1173 = vmax.xlane.f32.xlu1 %v6034_v55 }
 0x3c2   : > { %1171 = vmax.xlane.f32.xlu0 %v6042_v26 }
 0x3c3   : > { %v4647_v38 = vpop.f32.mrb[8].mxu1 }
 0x3c4   : > { %v1128_v42 = vpop.f32.mrb[9].mxu1  ;;  %1169 = vmax.xlane.f32.xlu1 %v6051_v20  ;;  %v6078_v25 = vadd.f32 %v4647_v38, %v6066_v48  ;;  %v6116_v38 = vsel %vm953_vm3, 0.0, %v5423_v18 }
 0x3c5   : > { %v4648_v49 = vpop.f32.mrb[10].mxu1  ;;  %v6096_v5 = vadd.f32 %v1128_v42, %v6084_v60  ;;  %7741 = vst [vmem:[#allocation25_spill] sm:$0xff] %v6116_v38 }
 0x3c6   : > { %v6070_v50 = vadd.f32 %v4648_v49, %v6057_v40  ;;  %v1131_v54 = vpop.f32.mrb[11].mxu1  ;;  %1167 = vmax.xlane.f32.xlu0 %v6060_v41 }
 0x3c7   : > { %v6087_v13 = vadd.f32 %v1131_v54, %v6075_v53 }
 0x3c8   : > { %1181 = vmax.xlane.f32.xlu1 %v6070_v50 }
 0x3ca   : > { %1179 = vmax.xlane.f32.xlu0 %v6078_v25 }
 0x3cb   : > { %v4651_v2 = vpop.f32.mrb[12].mxu1 }
 0x3cc   : > { %v1144_v11 = vpop.f32.mrb[13].mxu1  ;;  %1177 = vmax.xlane.f32.xlu1 %v6087_v13  ;;  %v6112_v1 = vadd.f32 %v4651_v2, %v6101_v8 }
 0x3cd   : > { %v4652_v15 = vpop.f32.mrb[14].mxu1  ;;  %v6123_v51 = vadd.f32 %v1144_v11, %v6116_v38 }
 0x3ce   : > { %v6105_v17 = vadd.f32 %v4652_v15, %v6093_v4  ;;  %v1147_v36 = vpop.f32.mrb[15].mxu1  ;;  %1175 = vmax.xlane.f32.xlu0 %v6096_v5 }
 0x3cf   : > { %v6119_v42 = vadd.f32 %v1147_v36, %v6109_v30 }
 0x3d0   : > { %1189 = vmax.xlane.f32.xlu1 %v6105_v17 }
 0x3d2   : > { %1187 = vmax.xlane.f32.xlu0 %v6112_v1 }
 0x3d4   : > { %1185 = vmax.xlane.f32.xlu1 %v6119_v42 }
 0x3d6   : > { %1183 = vmax.xlane.f32.xlu0 %v6123_v51 }
 0x3e5   : > { %1985 = vrot.lane.b32.xlu1 %v5831_v61, %s5422_s30 }
 0x3f3   : > { %v4703_v24 = vpop.f32.mrb[16].mxu1 }
 0x3f4   : > { %v6130_v49 = vadd.f32 %v4703_v24, %v5987_v28  ;;  %v1538_v18 = vpop.f32.mrb[17].mxu1 }
 0x3f5   : > { %v4704_v54 = vpop.f32.mrb[18].mxu1  ;;  %v6134_v58 = vadd.f32 %v1538_v18, %v6001_v59 }
 0x3f6   : > { %1605 = vmax.xlane.f32.xlu0 %v6130_v49  ;;  %v1541_v52 = vpop.f32.mrb[19].mxu1  ;;  %v6138_v24 = vadd.f32 %v4704_v54, %v6015_v3 }
 0x3f7   : > { %v6142_v16 = vadd.f32 %v1541_v52, %v5997_v57 }
 0x3fa   : > { %1601 = vmax.xlane.f32.xlu0 %v6134_v58 }
 0x3fb   : > { %v4707_v23 = vpop.f32.mrb[20].mxu1 }
 0x3fc   : > { %v1554_v2 = vpop.f32.mrb[21].mxu1 }
 0x3fd   : > { %v4708_v11 = vpop.f32.mrb[22].mxu1 }
 0x3fe   : > { %v1557_v15 = vpop.f32.mrb[23].mxu1  ;;  %v6146_v22 = vadd.f32 %v4708_v11, %v6022_v6 }
 0x3ff   : > { %v6152_v54 = vadd.f32 %v1557_v15, %v6039_v10  ;;  %v6171_v10 = vpop.permute.xlu0 %1765 }
 0x403   : > { %v4711_v36 = vpop.f32.mrb[24].mxu1 }
 0x404   : > { %v1570_v34 = vpop.f32.mrb[25].mxu1 }
 0x405   : > { %v4712_v47 = vpop.f32.mrb[26].mxu1 }
 0x406   : > { %v1573_v62 = vpop.f32.mrb[27].mxu1  ;;  %v6156_v52 = vadd.f32 %v4712_v47, %v6057_v40  ;;  %v6173_v47 = vpop.permute.xlu0 %1769  ;;  %v6176_v40 = vadd.f32 %v4707_v23, %v6030_v14 }
 0x407   : > { %v6160_v3 = vadd.f32 %v1573_v62, %v6075_v53  ;;  %v6180_v62 = vadd.f32 %v1554_v2, %v6048_v31  ;;  %v6196_v53 = vadd.f32 %v1570_v34, %v6084_v60 }
 0x409   : > { %1607 = vmax.xlane.f32.xlu1 %v6138_v24 }
 0x40b   : > { %v4715_v18 = vpop.f32.mrb[28].mxu1 }
 0x40c   : > { %v1586_v59 = vpop.f32.mrb[29].mxu1  ;;  %v6200_v2 = vadd.f32 %v4715_v18, %v6101_v8 }
 0x40d   : > { %1603 = vmax.xlane.f32.xlu1 %v6142_v16  ;;  %v4716_v28 = vpop.f32.mrb[30].mxu1 }
 0x40e   : > { %v1589_v9 = vpop.f32.mrb[31].mxu1  ;;  %v6164_v11 = vadd.f32 %v4716_v28, %v6093_v4  ;;  %v6182_v28 = vpop.permute.xlu1 %1763 }
 0x40f   : > { %v6168_v15 = vadd.f32 %v1589_v9, %v6109_v30  ;;  %v6184_v4 = vpop.permute.xlu0 %1771  ;;  %v6188_v9 = vadd.f32 %v4711_v36, %v6066_v48  ;;  %v6208_v36 = vadd.f32 %v1586_v59, %v6116_v38 }
 0x410   : > { %1983 = vrot.lane.b32.xlu0 %v5819_v12, %s5422_s30 }
 0x411   : > { %1615 = vmax.xlane.f32.xlu1 %v6146_v22 }
 0x412   : > { %v6191_v30 = vpop.permute.xlu1 %1767 }
 0x413   : > { %v6193_v23 = vpop.permute.xlu0 %1773 }
 0x415   : > { %1611 = vmax.xlane.f32.xlu1 %v6152_v54 }
 0x416   : > { %v6202_v31 = vpop.permute.xlu1 %1981 }
 0x417   : > { %7742 = vst [vmem:[#allocation26_spill] sm:$0xff] %v6202_v31  ;;  %v6204_v14 = vpop.permute.xlu0 %1979 }
 0x418   : > { %7743 = vst [vmem:[#allocation27_spill] sm:$0xff] %v6204_v14 }
 0x419   : > { %1623 = vmax.xlane.f32.xlu1 %v6156_v52 }
 0x41a   : > { %v6211_v6 = vpop.permute.xlu1 %1775 }
 0x41b   : > { %7744 = vst [vmem:[#allocation28_spill] sm:$0xff] %v6211_v6 }
 0x41d   : > { %1619 = vmax.xlane.f32.xlu1 %v6160_v3 }
 0x421   : > { %1631 = vmax.xlane.f32.xlu1 %v6164_v11 }
 0x425   : > { %1627 = vmax.xlane.f32.xlu1 %v6168_v15 }
 0x42f   : > { %1613 = vmax.xlane.f32.xlu0 %v6176_v40 }
 0x433   : > { %1609 = vmax.xlane.f32.xlu0 %v6180_v62 }
 0x437   : > { %1621 = vmax.xlane.f32.xlu0 %v6188_v9 }
 0x43b   : > { %1617 = vmax.xlane.f32.xlu0 %v6196_v53 }
 0x43f   : > { %1629 = vmax.xlane.f32.xlu0 %v6200_v2 }
 0x443   : > { %1625 = vmax.xlane.f32.xlu0 %v6208_v36  ;;  %v1164_v48 = vpop.xlane.xlu0 %1163 }
 0x444   : > { %v1193_v34 = vsub.f32 %v5994_v56, %v1164_v48 }
 0x446   : > { %v1211_v60 = vmul.f32 1.442695, %v1193_v34  ;;  %v1162_v18 = vpop.xlane.xlu1 %1161 }
 0x447   : > { %v1160_v57 = vpop.xlane.xlu0 %1159  ;;  %v1192_v37 = vsub.f32 %v6007_v45, %v1162_v18 }
 0x448   : > { %5042 = vpow2.f32 %v1211_v60  ;;  %v1191_v8 = vsub.f32 %v6010_v63, %v1160_v57 }
 0x449   : > { %v1209_v46 = vmul.f32 1.442695, %v1192_v37 }
 0x44a   : > { %v1207_v31 = vmul.f32 1.442695, %v1191_v8 }
 0x44b   : > { %v1166_v14 = vpop.xlane.xlu0 %1165 }
 0x44c   : > { %5044 = vpow2.f32 %v1207_v31  ;;  %v1194_v59 = vsub.f32 %v6025_v35, %v1166_v14 }
 0x44d   : > { %v1174_v38 = vpop.xlane.xlu1 %1173 }
 0x44e   : > { %v1213_v0 = vmul.f32 1.442695, %v1194_v59  ;;  %v1198_v6 = vsub.f32 %v6034_v55, %v1174_v38 }
 0x44f   : > { %v1172_v7 = vpop.xlane.xlu0 %1171 }
 0x450   : > { %5046 = vpow2.f32 %v1213_v0  ;;  %v1197_v56 = vsub.f32 %v6042_v26, %v1172_v7  ;;  %v1221_v63 = vmul.f32 1.442695, %v1198_v6 }
 0x451   : > { %v1170_v48 = vpop.xlane.xlu1 %1169  ;;  %5048 = vpow2.f32 %v1209_v46 }
 0x452   : > { %v6219_v60 = vpop.eup %5042  ;;  %v1219_v57 = vmul.f32 1.442695, %v1197_v56  ;;  %v1196_v45 = vsub.f32 %v6051_v20, %v1170_v48 }
 0x453   : > { %1243 = vadd.xlane.f32.xlu0 %v6219_v60  ;;  %v1168_v35 = vpop.xlane.xlu0 %1167 }
 0x454   : > { %5050 = vpow2.f32 %v1219_v57  ;;  %v1195_v37 = vsub.f32 %v6060_v41, %v1168_v35  ;;  %v1217_v7 = vmul.f32 1.442695, %v1196_v45 }
 0x455   : > { %v1182_v14 = vpop.xlane.xlu1 %1181  ;;  %5052 = vpow2.f32 %v1221_v63 }
 0x456   : > { %v6224_v55 = vpop.eup %5044  ;;  %v1215_v0 = vmul.f32 1.442695, %v1195_v37  ;;  %v1202_v26 = vsub.f32 %v6070_v50, %v1182_v14 }
 0x457   : > { %1239 = vadd.xlane.f32.xlu0 %v6224_v55  ;;  %v1180_v46 = vpop.xlane.xlu0 %1179 }
 0x458   : > { %5054 = vpow2.f32 %v1215_v0  ;;  %v1201_v6 = vsub.f32 %v6078_v25, %v1180_v46  ;;  %v1229_v41 = vmul.f32 1.442695, %v1202_v26 }
 0x459   : > { %v1178_v31 = vpop.xlane.xlu1 %1177  ;;  %5056 = vpow2.f32 %v1217_v7 }
 0x45a   : > { %v6229_v20 = vpop.eup %5046  ;;  %v1227_v8 = vmul.f32 1.442695, %v1201_v6  ;;  %v1200_v34 = vsub.f32 %v6087_v13, %v1178_v31 }
 0x45b   : > { %1245 = vadd.xlane.f32.xlu1 %v6229_v20  ;;  %v1176_v38 = vpop.xlane.xlu0 %1175  ;;  %v6234_v18 = vpop.eup %5048 }
 0x45c   : > { %5058 = vpow2.f32 %v1227_v8  ;;  %v1199_v50 = vsub.f32 %v6096_v5, %v1176_v38  ;;  %v1225_v57 = vmul.f32 1.442695, %v1200_v34 }
 0x45d   : > { %5060 = vpow2.f32 %v1229_v41  ;;  %v1190_v25 = vpop.xlane.xlu1 %1189 }
 0x45e   : > { %v6236_v59 = vpop.eup %5050  ;;  %v1223_v56 = vmul.f32 1.442695, %v1199_v50  ;;  %v1206_v37 = vsub.f32 %v6105_v17, %v1190_v25 }
 0x45f   : > { %1241 = vadd.xlane.f32.xlu1 %v6234_v18  ;;  %1251 = vadd.xlane.f32.xlu0 %v6236_v59  ;;  %v1188_v48 = vpop.xlane.xlu0 %1187  ;;  %v6241_v45 = vpop.eup %5052 }
 0x460   : > { %5062 = vpow2.f32 %v1223_v56  ;;  %v1205_v63 = vsub.f32 %v6112_v1, %v1188_v48  ;;  %v1237_v46 = vmul.f32 1.442695, %v1206_v37 }
 0x461   : > { %5064 = vpow2.f32 %v1225_v57  ;;  %v1186_v7 = vpop.xlane.xlu1 %1185 }
 0x462   : > { %v6243_v13 = vpop.eup %5054  ;;  %v1235_v5 = vmul.f32 1.442695, %v1205_v63  ;;  %v1204_v6 = vsub.f32 %v6119_v42, %v1186_v7 }
 0x463   : > { %1253 = vadd.xlane.f32.xlu1 %v6241_v45  ;;  %1247 = vadd.xlane.f32.xlu0 %v6243_v13  ;;  %v1184_v35 = vpop.xlane.xlu0 %1183  ;;  %v6249_v0 = vpop.eup %5056 }
 0x464   : > { %v1203_v14 = vsub.f32 %v6123_v51, %v1184_v35  ;;  %5066 = vpow2.f32 %v1235_v5  ;;  %v1233_v51 = vmul.f32 1.442695, %v1204_v6 }
 0x465   : > { %v6281_v35 = vpop.permute.xlu1 %1985 }
 0x466   : > { %v6251_v26 = vpop.eup %5058  ;;  %v1231_v1 = vmul.f32 1.442695, %v1203_v14  ;;  %7746 = vst [vmem:[#allocation30_spill] sm:$0xff] %v6281_v35 }
 0x467   : > { %1249 = vadd.xlane.f32.xlu1 %v6249_v0  ;;  %1259 = vadd.xlane.f32.xlu0 %v6251_v26  ;;  %v6256_v31 = vpop.eup %5060 }
 0x468   : > { %5068 = vpow2.f32 %v1231_v1 }
 0x469   : > { %5070 = vpow2.f32 %v1237_v46 }
 0x46a   : > { %v6258_v17 = vpop.eup %5062  ;;  %5072 = vpow2.f32 %v1233_v51 }
 0x46b   : > { %1261 = vadd.xlane.f32.xlu1 %v6256_v31  ;;  %1255 = vadd.xlane.f32.xlu0 %v6258_v17  ;;  %v6262_v8 = vpop.eup %5064 }
 0x46e   : > { %v6265_v41 = vpop.eup %5066 }
 0x46f   : > { %1257 = vadd.xlane.f32.xlu1 %v6262_v8 }
 0x472   : > { %v6267_v38 = vpop.eup %5068 }
 0x473   : > { %1267 = vadd.xlane.f32.xlu1 %v6265_v41  ;;  %1263 = vadd.xlane.f32.xlu0 %v6267_v38  ;;  %v6271_v42 = vpop.eup %5070 }
 0x474   : > { %v6274_v34 = vpop.eup %5072 }
 0x477   : > { %1269 = vadd.xlane.f32.xlu1 %v6271_v42 }
 0x47b   : > { %1265 = vadd.xlane.f32.xlu1 %v6274_v34 }
 0x483   : > { %v1606_v50 = vpop.xlane.xlu0 %1605 }
 0x484   : > { %v1635_v56 = vsub.f32 %v6130_v49, %v1606_v50 }
 0x486   : > { %v1653_v25 = vmul.f32 1.442695, %v1635_v56 }
 0x487   : > { %v1602_v48 = vpop.xlane.xlu0 %1601 }
 0x488   : > { %5074 = vpow2.f32 %v1653_v25  ;;  %v1633_v57 = vsub.f32 %v6134_v58, %v1602_v48 }
 0x48a   : > { %v1649_v63 = vmul.f32 1.442695, %v1633_v57 }
 0x48b   : > { %v6297_v50 = vpop.permute.xlu0 %1983 }
 0x48c   : > { %5076 = vpow2.f32 %v1649_v63  ;;  %7747 = vst [vmem:[#allocation31_spill] sm:$0xff] %v6297_v50 }
 0x492   : > { %v6279_v5 = vpop.eup %5074 }
 0x493   : > { %7745 = vst [vmem:[#allocation29_spill] sm:$0xff] %v6279_v5  ;;  %1685 = vadd.xlane.f32.xlu1 %v6279_v5 }
 0x496   : > { %v6284_v37 = vpop.eup %5076  ;;  %v1608_v14 = vpop.xlane.xlu1 %1607 }
 0x497   : > { %v1636_v7 = vsub.f32 %v6138_v24, %v1608_v14  ;;  %1681 = vadd.xlane.f32.xlu0 %v6284_v37 }
 0x499   : > { %v1655_v49 = vmul.f32 1.442695, %v1636_v7 }
 0x49a   : > { %v1604_v1 = vpop.xlane.xlu1 %1603 }
 0x49b   : > { %5078 = vpow2.f32 %v1655_v49  ;;  %v1634_v58 = vsub.f32 %v6142_v16, %v1604_v1 }
 0x49d   : > { %v1651_v46 = vmul.f32 1.442695, %v1634_v58 }
 0x49e   : > { %v1616_v24 = vpop.xlane.xlu1 %1615 }
 0x49f   : > { %5080 = vpow2.f32 %v1651_v46  ;;  %v1640_v63 = vsub.f32 %v6146_v22, %v1616_v24 }
 0x4a1   : > { %v1663_v58 = vmul.f32 1.442695, %v1640_v63 }
 0x4a2   : > { %v1612_v16 = vpop.xlane.xlu1 %1611 }
 0x4a3   : > { %v1638_v5 = vsub.f32 %v6152_v54, %v1612_v16 }
 0x4a5   : > { %v6289_v6 = vpop.eup %5078 }
 0x4a6   : > { %1687 = vadd.xlane.f32.xlu1 %v6289_v6  ;;  %v1624_v7 = vpop.xlane.xlu1 %1623 }
 0x4a9   : > { %v6292_v51 = vpop.eup %5080 }
 0x4aa   : > { %1683 = vadd.xlane.f32.xlu1 %v6292_v51  ;;  %v1620_v46 = vpop.xlane.xlu1 %1619 }
 0x4ad   : > { %1987 = vrot.lane.b32.xlu0 %v5843_v21, %s5422_s30 }
 0x4ae   : > { %v1632_v24 = vpop.xlane.xlu1 %1631 }
 0x4af   : > { %v1648_v63 = vsub.f32 %v6164_v11, %v1632_v24 }
 0x4bb   : > { %1989 = vrot.lane.b32.xlu1 %v5855_v19, %s5422_s30 }
 0x4bc   : > { %v1614_v56 = vpop.xlane.xlu0 %1613 }
 0x4bd   : > { %v1639_v25 = vsub.f32 %v6176_v40, %v1614_v56 }
 0x4bf   : > { %v1661_v48 = vmul.f32 1.442695, %v1639_v25  ;;  %v1659_v25 = vmul.f32 1.442695, %v1638_v5  ;;  %v1679_v5 = vmul.f32 1.442695, %v1648_v63 }
 0x4c0   : > { %v1610_v57 = vpop.xlane.xlu0 %1609 }
 0x4c1   : > { %5082 = vpow2.f32 %v1661_v48  ;;  %v1637_v14 = vsub.f32 %v6180_v62, %v1610_v57 }
 0x4c3   : > { %v1657_v49 = vmul.f32 1.442695, %v1637_v14 }
 0x4c4   : > { %v1622_v1 = vpop.xlane.xlu0 %1621 }
 0x4c5   : > { %5084 = vpow2.f32 %v1657_v49  ;;  %v1643_v48 = vsub.f32 %v6188_v9, %v1622_v1  ;;  %v1644_v9 = vsub.f32 %v6156_v52, %v1624_v7 }
 0x4c6   : > { %5086 = vpow2.f32 %v1663_v58 }
 0x4c7   : > { %v1671_v58 = vmul.f32 1.442695, %v1644_v9 }
 0x4c8   : > { %v1618_v35 = vpop.xlane.xlu0 %1617 }
 0x4c9   : > { %v1641_v49 = vsub.f32 %v6196_v53, %v1618_v35 }
 0x4cb   : > { %v6304_v50 = vpop.eup %5082  ;;  %v1665_v1 = vmul.f32 1.442695, %v1641_v49 }
 0x4cc   : > { %1693 = vadd.xlane.f32.xlu0 %v6304_v50  ;;  %v1630_v40 = vpop.xlane.xlu0 %1629 }
 0x4cd   : > { %v1647_v22 = vsub.f32 %v6200_v2, %v1630_v40  ;;  %v1669_v2 = vmul.f32 1.442695, %v1643_v48  ;;  %v1628_v40 = vpop.xlane.xlu1 %1627 }
 0x4ce   : > { %v1646_v35 = vsub.f32 %v6168_v15, %v1628_v40 }
 0x4cf   : > { %v6309_v56 = vpop.eup %5084  ;;  %v1677_v62 = vmul.f32 1.442695, %v1647_v22 }
 0x4d0   : > { %1689 = vadd.xlane.f32.xlu0 %v6309_v56  ;;  %v1626_v57 = vpop.xlane.xlu0 %1625  ;;  %v6315_v16 = vpop.eup %5086 }
 0x4d1   : > { %5088 = vpow2.f32 %v1677_v62  ;;  %v1645_v54 = vsub.f32 %v6208_v36, %v1626_v57  ;;  %v1642_v36 = vsub.f32 %v6160_v3, %v1620_v46  ;;  %v1675_v46 = vmul.f32 1.442695, %v1646_v35 }
 0x4d2   : > { %5090 = vpow2.f32 %v1659_v25 }
 0x4d3   : > { %v1673_v14 = vmul.f32 1.442695, %v1645_v54  ;;  %v1667_v52 = vmul.f32 1.442695, %v1642_v36 }
 0x4d4   : > { %1695 = vadd.xlane.f32.xlu0 %v6315_v16 }
 0x4d5   : > { %5092 = vpow2.f32 %v1673_v14 }
 0x4d6   : > { %5094 = vpow2.f32 %v1669_v2 }
 0x4d7   : > { %5096 = vpow2.f32 %v1679_v5 }
 0x4d8   : > { %5098 = vpow2.f32 %v1665_v1 }
 0x4d9   : > { %5100 = vpow2.f32 %v1671_v58 }
 0x4da   : > { %5102 = vpow2.f32 %v1667_v52 }
 0x4db   : > { %v6320_v11 = vpop.eup %5088  ;;  %5104 = vpow2.f32 %v1675_v46 }
 0x4dc   : > { %1709 = vadd.xlane.f32.xlu0 %v6320_v11  ;;  %v6324_v22 = vpop.eup %5090 }
 0x4df   : > { %v6326_v53 = vpop.eup %5092  ;;  %1691 = vadd.xlane.f32.xlu1 %v6324_v22 }
 0x4e0   : > { %1705 = vadd.xlane.f32.xlu0 %v6326_v53  ;;  %v6331_v7 = vpop.eup %5094  ;;  %v1244_v24 = vpop.xlane.xlu0 %1243 }
 0x4e1   : > { %v6333_v3 = vpop.eup %5096 }
 0x4e2   : > { %v6337_v62 = vpop.eup %5098 }
 0x4e3   : > { %1701 = vadd.xlane.f32.xlu1 %v6331_v7  ;;  %v6340_v48 = vpop.eup %5100 }
 0x4e4   : > { %1711 = vadd.xlane.f32.xlu0 %v6333_v3  ;;  %v1240_v25 = vpop.xlane.xlu0 %1239  ;;  %v6343_v54 = vpop.eup %5102 }
 0x4e5   : > { %v6346_v49 = vpop.eup %5104 }
 0x4e7   : > { %1697 = vadd.xlane.f32.xlu1 %v6337_v62 }
 0x4e8   : > { %v1246_v15 = vpop.xlane.xlu1 %1245 }
 0x4e9   : > { %5106 = vrcp.f32 %v1246_v15 }
 0x4ea   : > { %5108 = vrcp.f32 %v1240_v25 }
 0x4eb   : > { %1703 = vadd.xlane.f32.xlu1 %v6340_v48  ;;  %5110 = vrcp.f32 %v1244_v24 }
 0x4ec   : > { %v1242_v57 = vpop.xlane.xlu1 %1241  ;;  %v1252_v63 = vpop.xlane.xlu0 %1251 }
 0x4ed   : > { %5112 = vrcp.f32 %v1242_v57 }
 0x4ef   : > { %1699 = vadd.xlane.f32.xlu1 %v6343_v54 }
 0x4f0   : > { %v1254_v14 = vpop.xlane.xlu1 %1253  ;;  %v1248_v2 = vpop.xlane.xlu0 %1247 }
 0x4f1   : > { %5114 = vrcp.f32 %v1254_v14 }
 0x4f2   : > { %5116 = vrcp.f32 %v1248_v2 }
 0x4f3   : > { %1707 = vadd.xlane.f32.xlu1 %v6346_v49  ;;  %v5107_v5 = vpop.eup %5106  ;;  %5118 = vrcp.f32 %v1252_v63 }
 0x4f4   : > { %v1250_v9 = vpop.xlane.xlu1 %1249  ;;  %v1260_v1 = vpop.xlane.xlu0 %1259  ;;  %v1290_v52 = vmul.f32 %v5107_v5, %v6229_v20 }
 0x4f5   : > { %v5109_v58 = vpop.eup %5108  ;;  %5120 = vrcp.f32 %v1250_v9 }
 0x4f6   : > { %v5111_v36 = vpop.eup %5110  ;;  %v1287_v46 = vmul.f32 %v5109_v58, %v6224_v55 }
 0x4f7   : > { %v5113_v40 = vpop.eup %5112  ;;  %v1289_v15 = vmul.f32 %v5111_v36, %v6219_v60 }
 0x4f8   : > { %v1262_v35 = vpop.xlane.xlu1 %1261  ;;  %v1256_v24 = vpop.xlane.xlu0 %1255  ;;  %v1288_v25 = vmul.f32 %v5113_v40, %v6234_v18 }
 0x4f9   : > { %5122 = vrcp.f32 %v1262_v35  ;;  %v1304_v63 = vpack.c.bf16 %v1290_v52, %v1289_v15 }
 0x4fa   : > { %1991 = vrot.lane.b32.xlu0 %v5867_v39, %s5422_s30  ;;  %v1303_v57 = vpack.c.bf16 %v1288_v25, %v1287_v46  ;;  %5124 = vrcp.f32 %v1256_v24 }
 0x4fb   : > { %v5115_v14 = vpop.eup %5114  ;;  %5126 = vrcp.f32 %v1260_v1 }
 0x4fc   : > { %v1258_v2 = vpop.xlane.xlu1 %1257  ;;  %4669 = vmatprep.mubr.bf16.mxu0 %v1303_v57  ;;  %v5117_v20 = vpop.eup %5116  ;;  %v1294_v55 = vmul.f32 %v5115_v14, %v6241_v45 }
 0x4fd   : > { %5128 = vrcp.f32 %v1258_v2  ;;  %4670 = vmatmul.mubr.bf16.vlgmr.msra.gmra.mrb[32].mxu0 %v1304_v63  ;;  %v5119_v5 = vpop.eup %5118  ;;  %v1291_v9 = vmul.f32 %v5117_v20, %v6243_v13  ;;  %v7749_v2 = vld [vmem:[#allocation28_spill] sm:$0xff] }
 0x4fe   : > { %4718 = vmatpush3.bf16.msra.mxu0 %v5958_v27  ;;  %1963 = vrot.lane.b32.xlu0 %v5793_v32, %s5424_s15  ;;  %v1293_v58 = vmul.f32 %v5119_v5, %v6236_v59  ;;  %v7755_v5 = vld [vmem:[#allocation9_spill] sm:$0xff] }
 0x4ff   : > { %v5121_v60 = vpop.eup %5120  ;;  %4719 = vmatprep.subr.bf16.mxu0 %v6182_v28 }
 0x500   : > { %v1268_v18 = vpop.xlane.xlu1 %1267  ;;  %v1292_v1 = vmul.f32 %v5121_v60, %v6249_v0  ;;  %v1306_v36 = vpack.c.bf16 %v1294_v55, %v1293_v58  ;;  %v1264_v52 = vpop.xlane.xlu0 %1263 }
 0x502   : > { %4720 = vmatpush3.bf16.msra.mxu0 %v6182_v28  ;;  %1967 = vrot.lane.b32.xlu0 %v5819_v12, %s5424_s15  ;;  %v1305_v27 = vpack.c.bf16 %v1292_v1, %v1291_v9 }
 0x503   : > { %4721 = vmatprep.subr.bf16.mxu0 %v6171_v10  ;;  %v5123_v40 = vpop.eup %5122 }
 0x504   : > { %v1270_v35 = vpop.xlane.xlu1 %1269  ;;  %1993 = vrot.lane.b32.xlu1 %v5881_v44, %s5422_s30  ;;  %4673 = vmatprep.mubr.bf16.mxu0 %v1305_v27  ;;  %v5125_v45 = vpop.eup %5124  ;;  %v1298_v59 = vmul.f32 %v5123_v40, %v6256_v31 }
 0x505   : > { %4674 = vmatmul.mubr.bf16.gmra.mrb[36].mxu0 %v1306_v36  ;;  %v5127_v13 = vpop.eup %5126  ;;  %5130 = vrcp.f32 %v1270_v35  ;;  %v1295_v24 = vmul.f32 %v5125_v45, %v6258_v17  ;;  %v7756_v45 = vld [vmem:[#allocation29_spill] sm:$0xff] }
 0x506   : > { %4722 = vmatpush3.bf16.msra.mxu0 %v6171_v10  ;;  %1971 = vrot.lane.b32.xlu0 %v5843_v21, %s5424_s15  ;;  %5132 = vrcp.f32 %v1264_v52  ;;  %v1297_v10 = vmul.f32 %v5127_v13, %v6251_v26 }
 0x507   : > { %v5129_v28 = vpop.eup %5128  ;;  %4723 = vmatprep.subr.bf16.mxu0 %v6191_v30  ;;  %5134 = vrcp.f32 %v1268_v18 }
 0x508   : > { %v1266_v0 = vpop.xlane.xlu1 %1265  ;;  %1965 = vrot.lane.b32.xlu1 %v5807_v43, %s5424_s15  ;;  %v1296_v46 = vmul.f32 %v5129_v28, %v6262_v8  ;;  %v1308_v31 = vpack.c.bf16 %v1298_v59, %v1297_v10 }
 0x509   : > { %5136 = vrcp.f32 %v1266_v0 }
 0x50a   : > { %4724 = vmatpush3.bf16.msra.mxu0 %v6191_v30  ;;  %1975 = vrot.lane.b32.xlu0 %v5867_v39, %s5424_s15  ;;  %v1307_v25 = vpack.c.bf16 %v1296_v46, %v1295_v24  ;;  %v7757_v24 = vld [vmem:[#allocation26_spill] sm:$0xff] }
 0x50b   : > { %4725 = vmatprep.subr.bf16.mxu0 %v6173_v47 }
 0x50c   : > { %1969 = vrot.lane.b32.xlu1 %v5831_v61, %s5424_s15  ;;  %4677 = vmatprep.mubr.bf16.mxu0 %v1307_v25  ;;  %v7759_v25 = vld [vmem:[#allocation30_spill] sm:$0xff] }
 0x50d   : > { %4678 = vmatmul.mubr.bf16.gmra.mrb[40].mxu0 %v1308_v31 }
 0x50e   : > { %4726 = vmatpush3.bf16.msra.mxu0 %v6173_v47  ;;  %2292 = vrot.lane.b32.xlu0 %v5795_v33, %s5424_s15 }
 0x50f   : > { %4727 = vmatprep.subr.bf16.mxu0 %v6184_v4  ;;  %v5131_v30 = vpop.eup %5130 }
 0x510   : > { %1973 = vrot.lane.b32.xlu1 %v5855_v19, %s5424_s15  ;;  %v5133_v26 = vpop.eup %5132  ;;  %v1302_v47 = vmul.f32 %v5131_v30, %v6271_v42  ;;  %v7750_v42 = vld [vmem:[#allocation4_spill] sm:$0xff]  ;;  %v2029_v30 = vsel %vm1013_vm1, %v7759_v25, 0 }
 0x511   : > { %v5135_v17 = vpop.eup %5134  ;;  %v1299_v15 = vmul.f32 %v5133_v26, %v6267_v38  ;;  %v7751_v38 = vld [vmem:[#allocation8_spill] sm:$0xff] }
 0x512   : > { %4728 = vmatpush3.bf16.msra.mxu0 %v6184_v4  ;;  %2296 = vrot.lane.b32.xlu0 %v5821_v29, %s5424_s15  ;;  %v1301_v63 = vmul.f32 %v5135_v17, %v6265_v41  ;;  %v7748_v4 = vld [vmem:[#allocation6_spill] sm:$0xff]  ;;  %v7752_v41 = vld [vmem:[#allocation27_spill] sm:$0xff] }
 0x513   : > { %v5137_v8 = vpop.eup %5136  ;;  %4729 = vmatprep.subr.bf16.mxu0 %v6193_v23  ;;  %v2020_v0 = vsel %vm1013_vm1, %v7752_v41, 0 }
 0x514   : > { %1977 = vrot.lane.b32.xlu1 %v5881_v44, %s5424_s15  ;;  %v1300_v57 = vmul.f32 %v5137_v8, %v6274_v34  ;;  %v1310_v20 = vpack.c.bf16 %v1302_v47, %v1301_v63  ;;  %v7754_v34 = vld [vmem:[#allocation7_spill] sm:$0xff] }
 0x516   : > { %4730 = vmatpush3.bf16.msra.mxu0 %v6193_v23  ;;  %2300 = vrot.lane.b32.xlu0 %v7748_v4, %s5424_s15  ;;  %v1309_v14 = vpack.c.bf16 %v1300_v57, %v1299_v15  ;;  %v7753_v23 = vld [vmem:[#allocation5_spill] sm:$0xff] }
 0x517   : > { %4731 = vmatprep.subr.bf16.mxu0 %v7749_v2 }
 0x518   : > { %2294 = vrot.lane.b32.xlu1 %v7750_v42, %s5424_s15  ;;  %4681 = vmatprep.mubr.bf16.mxu0 %v1309_v14 }
 0x519   : > { %4682 = vmatmul.mubr.bf16.gmra.mrb[44].mxu0 %v1310_v20 }
 0x51a   : > { %4732 = vmatpush3.bf16.msra.mxu0 %v7749_v2  ;;  %2304 = vrot.lane.b32.xlu0 %v7751_v38, %s5424_s15 }
 0x51b   : > { %4933 = vmatprep.subr.msk.bf16.mxu0 %vm1013_vm1, %v7752_v41 }
 0x51c   : > { %2298 = vrot.lane.b32.xlu1 %v7753_v23, %s5424_s15 }
 0x51e   : > { %2510 = vrot.lane.b32.xlu0 %v5793_v32, %s5425_s16 }
 0x520   : > { %2302 = vrot.lane.b32.xlu1 %v7754_v34, %s5424_s15  ;;  %v1686_v60 = vpop.xlane.xlu1 %1685 }
 0x524   : > { %2306 = vrot.lane.b32.xlu1 %v7755_v5, %s5424_s15  ;;  %v1682_v55 = vpop.xlane.xlu0 %1681 }
 0x528   : > { %2512 = vrot.lane.b32.xlu1 %v5807_v43, %s5425_s16 }
 0x533   : > { %v1688_v18 = vpop.xlane.xlu1 %1687 }
 0x534   : > { %5138 = vrcp.f32 %v1688_v18 }
 0x535   : > { %5140 = vrcp.f32 %v1682_v55 }
 0x536   : > { %5142 = vrcp.f32 %v1686_v60 }
 0x537   : > { %v1684_v9 = vpop.xlane.xlu1 %1683 }
 0x538   : > { %5144 = vrcp.f32 %v1684_v9 }
 0x53b   : > { %v1990_v17 = vpop.permute.xlu1 %1989 }
 0x53c   : > { %v2035_v14 = vsel %vm1013_vm1, %v1990_v17, 0 }
 0x53e   : > { %v5139_v1 = vpop.eup %5138 }
 0x53f   : > { %v5141_v58 = vpop.eup %5140  ;;  %v1732_v40 = vmul.f32 %v5139_v1, %v6289_v6  ;;  %v2023_v6 = vsel %vm1013_vm1, %v7757_v24, 0 }
 0x540   : > { %v5143_v27 = vpop.eup %5142  ;;  %v1729_v52 = vmul.f32 %v5141_v58, %v6284_v37  ;;  %v7758_v37 = vld [vmem:[#allocation31_spill] sm:$0xff] }
 0x541   : > { %v1731_v13 = vmul.f32 %v5143_v27, %v7756_v45  ;;  %v2026_v46 = vsel %vm1013_vm1, %v7758_v37, 0 }
 0x542   : > { %v5145_v36 = vpop.eup %5144 }
 0x543   : > { %v1730_v35 = vmul.f32 %v5145_v36, %v6292_v51  ;;  %v1746_v59 = vpack.c.bf16 %v1732_v40, %v1731_v13  ;;  %v1988_v51 = vpop.permute.xlu0 %1987 }
 0x544   : > { %v2032_v8 = vsel %vm1013_vm1, %v1988_v51, 0 }
 0x545   : > { %v1745_v28 = vpack.c.bf16 %v1730_v35, %v1729_v52 }
 0x547   : > { %4733 = vmatprep.mubr.bf16.mxu0 %v1745_v28 }
 0x548   : > { %4734 = vmatmul.mubr.bf16.vlgmr.msra.gmra.mrb[48].mxu0 %v1746_v59 }
 0x549   : > { %4750 = vmatpush3.bf16.xpose.msra.mxu0 %v2020_v0 }
 0x54a   : > { %4934 = vmatprep.subr.msk.bf16.mxu0 %vm1013_vm1, %v7757_v24 }
 0x551   : > { %4752 = vmatpush3.bf16.xpose.msra.mxu0 %v2023_v6 }
 0x552   : > { %4935 = vmatprep.subr.msk.bf16.mxu0 %vm1013_vm1, %v7758_v37 }
 0x559   : > { %4754 = vmatpush3.bf16.xpose.msra.mxu0 %v2026_v46  ;;  %v1694_v10 = vpop.xlane.xlu0 %1693 }
 0x55a   : > { %4936 = vmatprep.subr.msk.bf16.mxu0 %vm1013_vm1, %v7759_v25 }
 0x55d   : > { %v1690_v31 = vpop.xlane.xlu0 %1689 }
 0x561   : > { %4756 = vmatpush3.bf16.xpose.msra.mxu0 %v2029_v30  ;;  %v1696_v26 = vpop.xlane.xlu0 %1695 }
 0x562   : > { %4937 = vmatprep.subr.msk.bf16.mxu0 %vm1013_vm1, %v1988_v51  ;;  %5146 = vrcp.f32 %v1696_v26 }
 0x563   : > { %5148 = vrcp.f32 %v1690_v31 }
 0x564   : > { %5150 = vrcp.f32 %v1694_v10 }
 0x569   : > { %4758 = vmatpush3.bf16.xpose.msra.mxu0 %v2032_v8  ;;  %v1710_v47 = vpop.xlane.xlu0 %1709 }
 0x56a   : > { %4938 = vmatprep.subr.msk.bf16.mxu0 %vm1013_vm1, %v1990_v17 }
 0x56c   : > { %v1692_v15 = vpop.xlane.xlu1 %1691  ;;  %v5147_v20 = vpop.eup %5146 }
 0x56d   : > { %5152 = vrcp.f32 %v1692_v15  ;;  %v1706_v57 = vpop.xlane.xlu0 %1705  ;;  %v5149_v60 = vpop.eup %5148  ;;  %v1736_v58 = vmul.f32 %v5147_v20, %v6315_v16 }
 0x56e   : > { %v5151_v18 = vpop.eup %5150  ;;  %v1733_v36 = vmul.f32 %v5149_v60, %v6309_v56 }
 0x56f   : > { %v1735_v35 = vmul.f32 %v5151_v18, %v6304_v50 }
 0x570   : > { %v1702_v63 = vpop.xlane.xlu1 %1701 }
 0x571   : > { %4760 = vmatpush3.bf16.xpose.msra.mxu0 %v2035_v14  ;;  %v1712_v2 = vpop.xlane.xlu0 %1711  ;;  %v1748_v13 = vpack.c.bf16 %v1736_v58, %v1735_v35 }
 0x574   : > { %v1698_v41 = vpop.xlane.xlu1 %1697 }
 0x575   : > { %v1992_v55 = vpop.permute.xlu0 %1991 }
 0x576   : > { %4939 = vmatprep.subr.msk.bf16.mxu0 %vm1013_vm1, %v1992_v55  ;;  %v2038_v9 = vsel %vm1013_vm1, %v1992_v55, 0 }
 0x577   : > { %v5153_v1 = vpop.eup %5152 }
 0x578   : > { %v1704_v27 = vpop.xlane.xlu1 %1703  ;;  %v1734_v40 = vmul.f32 %v5153_v1, %v6324_v22 }
 0x579   : > { %4762 = vmatpush3.bf16.xpose.msra.mxu0 %v2038_v9  ;;  %v1964_v52 = vpop.permute.xlu0 %1963  ;;  %5154 = vrcp.f32 %v1704_v27 }
 0x57a   : > { %v1747_v45 = vpack.c.bf16 %v1734_v40, %v1733_v36  ;;  %5156 = vrcp.f32 %v1698_v41 }
 0x57b   : > { %5158 = vrcp.f32 %v1702_v63 }
 0x57c   : > { %v1700_v28 = vpop.xlane.xlu1 %1699  ;;  %4737 = vmatprep.mubr.bf16.mxu0 %v1747_v45 }
 0x57d   : > { %5160 = vrcp.f32 %v1700_v28  ;;  %4738 = vmatmul.mubr.bf16.gmra.mrb[52].mxu0 %v1748_v13  ;;  %v1968_v59 = vpop.permute.xlu0 %1967 }
 0x57e   : > { %5162 = vrcp.f32 %v1706_v57 }
 0x580   : > { %v1708_v16 = vpop.xlane.xlu1 %1707 }
 0x581   : > { %5164 = vrcp.f32 %v1708_v16  ;;  %v1972_v56 = vpop.permute.xlu0 %1971 }
 0x582   : > { %5166 = vrcp.f32 %v1712_v2 }
 0x583   : > { %v5155_v22 = vpop.eup %5154  ;;  %5168 = vrcp.f32 %v1710_v47 }
 0x584   : > { %v1994_v0 = vpop.permute.xlu1 %1993  ;;  %v5157_v24 = vpop.eup %5156  ;;  %v1740_v46 = vmul.f32 %v5155_v22, %v6340_v48 }
 0x585   : > { %4940 = vmatprep.subr.msk.bf16.mxu0 %vm1013_vm1, %v1994_v0  ;;  %v1976_v50 = vpop.permute.xlu0 %1975  ;;  %v2041_v6 = vsel %vm1013_vm1, %v1994_v0, 0  ;;  %v5159_v37 = vpop.eup %5158  ;;  %v1737_v25 = vmul.f32 %v5157_v24, %v6337_v62 }
 0x586   : > { %4764 = vmatpush3.bf16.xpose.msra.mxu0 %v2041_v6  ;;  %v1739_v17 = vmul.f32 %v5159_v37, %v6331_v7 }
 0x587   : > { %v5161_v51 = vpop.eup %5160 }
 0x588   : > { %v1966_v10 = vpop.permute.xlu1 %1965  ;;  %v1738_v31 = vmul.f32 %v5161_v51, %v6343_v54  ;;  %v5163_v30 = vpop.eup %5162  ;;  %v1750_v15 = vpack.c.bf16 %v1740_v46, %v1739_v17 }
 0x589   : > { %v2293_v26 = vpop.permute.xlu0 %2292  ;;  %v1741_v14 = vmul.f32 %v5163_v30, %v6326_v53 }
 0x58a   : > { %4781 = vmatprep.subr.bf16.mxu1 %v2293_v26  ;;  %v1749_v8 = vpack.c.bf16 %v1738_v31, %v1737_v25 }
 0x58b   : > { %v5165_v47 = vpop.eup %5164  ;;  %4782 = vmatpush3.bf16.msra.mxu1 %v2293_v26 }
 0x58c   : > { %v5167_v57 = vpop.eup %5166  ;;  %v1970_v63 = vpop.permute.xlu1 %1969  ;;  %4741 = vmatprep.mubr.bf16.mxu0 %v1749_v8  ;;  %v1742_v48 = vmul.f32 %v5165_v47, %v6346_v49 }
 0x58d   : > { %4742 = vmatmul.mubr.bf16.gmra.mrb[56].mxu0 %v1750_v15  ;;  %v5169_v62 = vpop.eup %5168  ;;  %v1744_v54 = vmul.f32 %v5167_v57, %v6333_v3  ;;  %v2297_v18 = vpop.permute.xlu0 %2296 }
 0x58e   : > { %v1751_v2 = vpack.c.bf16 %v1742_v48, %v1741_v14  ;;  %v1743_v7 = vmul.f32 %v5169_v62, %v6320_v11  ;;  %v7776_v62 = vld [vmem:[#allocation10_spill] sm:$0xff] }
 0x590   : > { %v1974_v20 = vpop.permute.xlu1 %1973  ;;  %4745 = vmatprep.mubr.bf16.mxu0 %v1751_v2  ;;  %v1752_v41 = vpack.c.bf16 %v1744_v54, %v1743_v7 }
 0x591   : > { %v2301_v3 = vpop.permute.xlu0 %2300 }
 0x594   : > { %v1978_v60 = vpop.permute.xlu1 %1977 }
 0x595   : > { %4746 = vmatmul.mubr.bf16.gmra.mrb[60].mxu0 %v1752_v41  ;;  %v2305_v49 = vpop.permute.xlu0 %2304  ;;  %v7777_v41 = vld [vmem:[#allocation11_spill] sm:$0xff] }
 0x596   : > { %4765 = vmatprep.mubr.msk.bf16.mxu0 %vm1013_vm1, %v1964_v52 }
 0x598   : > { %v2295_v55 = vpop.permute.xlu1 %2294 }
 0x599   : > { %4783 = vmatprep.subr.bf16.mxu1 %v2295_v55  ;;  %v6467_v1 = vpop.permute.xlu0 %2510 }
 0x59a   : > { %4784 = vmatpush3.bf16.msra.mxu1 %v2295_v55  ;;  %v7778_v55 = vld [vmem:[#allocation12_spill] sm:$0xff] }
 0x59b   : > { %4785 = vmatprep.subr.bf16.mxu1 %v2297_v18 }
 0x59c   : > { %v2299_v53 = vpop.permute.xlu1 %2298 }
 0x59d   : > { %4766 = vmatmul.mubr.msk.bf16.vlgmr.msra.gmra.mrb[64].mxu0 %vm1013_vm1, %v1966_v10 }
 0x59e   : > { %4769 = vmatprep.mubr.msk.bf16.mxu0 %vm1013_vm1, %v1968_v59  ;;  %4786 = vmatpush3.bf16.msra.mxu1 %v2297_v18 }
 0x59f   : > { %4787 = vmatprep.subr.bf16.mxu1 %v2299_v53 }
 0x5a0   : > { %v2303_v11 = vpop.permute.xlu1 %2302 }
 0x5a2   : > { %4788 = vmatpush3.bf16.msra.mxu1 %v2299_v53 }
 0x5a3   : > { %4789 = vmatprep.subr.bf16.mxu1 %v2301_v3 }
 0x5a4   : > { %v2307_v9 = vpop.permute.xlu1 %2306 }
 0x5a5   : > { %4770 = vmatmul.mubr.msk.bf16.gmra.mrb[68].mxu0 %vm1013_vm1, %v1970_v63 }
 0x5a6   : > { %4773 = vmatprep.mubr.msk.bf16.mxu0 %vm1013_vm1, %v1972_v56  ;;  %4790 = vmatpush3.bf16.msra.mxu1 %v2301_v3  ;;  %v7779_v3 = vld [vmem:[#allocation13_spill] sm:$0xff] }
 0x5a7   : > { %4791 = vmatprep.subr.bf16.mxu1 %v2303_v11 }
 0x5aa   : > { %4792 = vmatpush3.bf16.msra.mxu1 %v2303_v11 }
 0x5ab   : > { %4793 = vmatprep.subr.bf16.mxu1 %v2305_v49 }
 0x5ad   : > { %4774 = vmatmul.mubr.msk.bf16.gmra.mrb[72].mxu0 %vm1013_vm1, %v1974_v20 }
 0x5ae   : > { %4777 = vmatprep.mubr.msk.bf16.mxu0 %vm1013_vm1, %v1976_v50  ;;  %4794 = vmatpush3.bf16.msra.mxu1 %v2305_v49 }
 0x5af   : > { %4795 = vmatprep.subr.bf16.mxu1 %v2307_v9 }
 0x5b2   : > { %4796 = vmatpush3.bf16.msra.mxu1 %v2307_v9 }
 0x5b3   : > { %4941 = vmatprep.subr.msk.bf16.mxu1 %vm1013_vm1, %v6467_v1 }
 0x5b5   : > { %4778 = vmatmul.mubr.msk.bf16.gmra.mrb[76].mxu0 %vm1013_vm1, %v1978_v60 }
 0x5d0   : > { %v4671_v58 = vpop.f32.mrb[32].mxu0 }
 0x5d1   : > { %1410 = vst.msk [vmem:[#allocation2 + $0x10] sm:$0xff] %vm1013_vm1, %v4671_v58  ;;  %v1345_v27 = vpop.f32.mrb[33].mxu0  ;;  %v7780_v58 = vld [vmem:[#allocation14_spill] sm:$0xff] }
 0x5d2   : > { %1408 = vst.msk [vmem:[#allocation2] sm:$0xff] %vm1013_vm1, %v1345_v27  ;;  %v4672_v36 = vpop.f32.mrb[34].mxu0 }
 0x5d3   : > { %1411 = vst.msk [vmem:[#allocation2 + $0x18] sm:$0xff] %vm1013_vm1, %v4672_v36  ;;  %v1348_v40 = vpop.f32.mrb[35].mxu0 }
 0x5d4   : > { %1409 = vst.msk [vmem:[#allocation2 + $0x8] sm:$0xff] %vm1013_vm1, %v1348_v40  ;;  %v7781_v40 = vld [vmem:[#allocation15_spill] sm:$0xff] }
 0x5d8   : > { %v4675_v52 = vpop.f32.mrb[36].mxu0 }
 0x5d9   : > { %1414 = vst.msk [vmem:[#allocation2 + $0x30] sm:$0xff] %vm1013_vm1, %v4675_v52  ;;  %v1361_v35 = vpop.f32.mrb[37].mxu0 }
 0x5da   : > { %1412 = vst.msk [vmem:[#allocation2 + $0x20] sm:$0xff] %vm1013_vm1, %v1361_v35  ;;  %v4676_v45 = vpop.f32.mrb[38].mxu0  ;;  %v7782_v35 = vld [vmem:[#allocation16_spill] sm:$0xff] }
 0x5db   : > { %1415 = vst.msk [vmem:[#allocation2 + $0x38] sm:$0xff] %vm1013_vm1, %v4676_v45  ;;  %v1364_v13 = vpop.f32.mrb[39].mxu0 }
 0x5dc   : > { %1413 = vst.msk [vmem:[#allocation2 + $0x28] sm:$0xff] %vm1013_vm1, %v1364_v13 }
 0x5e0   : > { %v4679_v28 = vpop.f32.mrb[40].mxu0 }
 0x5e1   : > { %1418 = vst.msk [vmem:[#allocation2 + $0x50] sm:$0xff] %vm1013_vm1, %v4679_v28  ;;  %v1377_v59 = vpop.f32.mrb[41].mxu0  ;;  %v7783_v28 = vld [vmem:[#allocation17_spill] sm:$0xff] }
 0x5e2   : > { %1416 = vst.msk [vmem:[#allocation2 + $0x40] sm:$0xff] %vm1013_vm1, %v1377_v59  ;;  %v4680_v16 = vpop.f32.mrb[42].mxu0 }
 0x5e3   : > { %1419 = vst.msk [vmem:[#allocation2 + $0x58] sm:$0xff] %vm1013_vm1, %v4680_v16  ;;  %v1380_v56 = vpop.f32.mrb[43].mxu0 }
 0x5e4   : > { %1417 = vst.msk [vmem:[#allocation2 + $0x48] sm:$0xff] %vm1013_vm1, %v1380_v56 }
 0x5ec   : > { %v4683_v22 = vpop.f32.mrb[44].mxu0 }
 0x5ed   : > { %1422 = vst.msk [vmem:[#allocation2 + $0x70] sm:$0xff] %vm1013_vm1, %v4683_v22  ;;  %v1393_v0 = vpop.f32.mrb[45].mxu0  ;;  %v7784_v22 = vld [vmem:[#allocation18_spill] sm:$0xff] }
 0x5ee   : > { %1420 = vst.msk [vmem:[#allocation2 + $0x60] sm:$0xff] %vm1013_vm1, %v1393_v0  ;;  %v4684_v24 = vpop.f32.mrb[46].mxu0 }
 0x5ef   : > { %1423 = vst.msk [vmem:[#allocation2 + $0x78] sm:$0xff] %vm1013_vm1, %v4684_v24  ;;  %v1396_v50 = vpop.f32.mrb[47].mxu0 }
 0x5f0   : > { %1421 = vst.msk [vmem:[#allocation2 + $0x68] sm:$0xff] %vm1013_vm1, %v1396_v50  ;;  %v7785_v50 = vld [vmem:[#allocation19_spill] sm:$0xff] }
 0x61b   : > { %v6488_v6 = vpop.f32.mrb[48].mxu0 }
 0x61c   : > { %7760 = vst [vmem:[#allocation6_spill] sm:$0xff] %v6488_v6  ;;  %v6490_v37 = vpop.f32.mrb[49].mxu0 }
 0x61d   : > { %7761 = vst [vmem:[#allocation28_spill] sm:$0xff] %v6490_v37  ;;  %v6492_v51 = vpop.f32.mrb[50].mxu0 }
 0x61e   : > { %7762 = vst [vmem:[#allocation4_spill] sm:$0xff] %v6492_v51  ;;  %v6494_v46 = vpop.f32.mrb[51].mxu0 }
 0x61f   : > { %7763 = vst [vmem:[#allocation27_spill] sm:$0xff] %v6494_v46 }
 0x650   : > { %v6496_v10 = vpop.f32.mrb[52].mxu0 }
 0x651   : > { %7764 = vst [vmem:[#allocation5_spill] sm:$0xff] %v6496_v10  ;;  %v6498_v25 = vpop.f32.mrb[53].mxu0 }
 0x652   : > { %7765 = vst [vmem:[#allocation7_spill] sm:$0xff] %v6498_v25  ;;  %v6500_v31 = vpop.f32.mrb[54].mxu0 }
 0x653   : > { %7766 = vst [vmem:[#allocation29_spill] sm:$0xff] %v6500_v31  ;;  %v6502_v30 = vpop.f32.mrb[55].mxu0 }
 0x654   : > { %7767 = vst [vmem:[#allocation26_spill] sm:$0xff] %v6502_v30 }
 0x660   : > { %v6504_v26 = vpop.f32.mrb[56].mxu0 }
 0x661   : > { %7768 = vst [vmem:[#allocation31_spill] sm:$0xff] %v6504_v26  ;;  %v6506_v17 = vpop.f32.mrb[57].mxu0 }
 0x662   : > { %7769 = vst [vmem:[#allocation30_spill] sm:$0xff] %v6506_v17  ;;  %v6508_v8 = vpop.f32.mrb[58].mxu0 }
 0x663   : > { %7770 = vst [vmem:[#allocation32_spill] sm:$0xff] %v6508_v8  ;;  %v6510_v47 = vpop.f32.mrb[59].mxu0 }
 0x664   : > { %7771 = vst [vmem:[#allocation33_spill] sm:$0xff] %v6510_v47 }
 0x668   : > { %v6512_v15 = vpop.f32.mrb[60].mxu0 }
 0x669   : > { %7772 = vst [vmem:[#allocation34_spill] sm:$0xff] %v6512_v15  ;;  %v6514_v57 = vpop.f32.mrb[61].mxu0 }
 0x66a   : > { %7773 = vst [vmem:[#allocation35_spill] sm:$0xff] %v6514_v57  ;;  %v6516_v63 = vpop.f32.mrb[62].mxu0 }
 0x66b   : > { %7774 = vst [vmem:[#allocation36_spill] sm:$0xff] %v6516_v63  ;;  %v6518_v14 = vpop.f32.mrb[63].mxu0 }
 0x66c   : > { %7775 = vst [vmem:[#allocation37_spill] sm:$0xff] %v6518_v14 }
 0x670   : > { %v4767_v48 = vpop.f32.mrb[64].mxu0 }
 0x671   : > { %v2086_v2 = vadd.f32 %v4767_v48, %v7776_v62  ;;  %v2077_v54 = vpop.f32.mrb[65].mxu0 }
 0x672   : > { %v4768_v20 = vpop.f32.mrb[66].mxu0  ;;  %v2078_v18 = vadd.f32 %v2077_v54, %v7778_v55  ;;  %v7786_v54 = vld [vmem:[#allocation20_spill] sm:$0xff] }
 0x673   : > { %2144 = vmax.xlane.f32.xlu0 %v2086_v2  ;;  %v2080_v7 = vpop.f32.mrb[67].mxu0  ;;  %v2089_v11 = vadd.f32 %v4768_v20, %v7779_v3 }
 0x674   : > { %v2081_v60 = vadd.f32 %v2080_v7, %v7777_v41 }
 0x676   : > { %2142 = vmax.xlane.f32.xlu1 %v2081_v60 }
 0x677   : > { %2140 = vmax.xlane.f32.xlu0 %v2078_v18 }
 0x678   : > { %v4771_v53 = vpop.f32.mrb[68].mxu0 }
 0x679   : > { %v2093_v49 = vpop.f32.mrb[69].mxu0  ;;  %v6528_v52 = vadd.f32 %v4771_v53, %v7781_v40  ;;  %v7787_v53 = vld [vmem:[#allocation21_spill] sm:$0xff] }
 0x67a   : > { %v4772_v9 = vpop.f32.mrb[70].mxu0  ;;  %v6536_v59 = vadd.f32 %v2093_v49, %v7783_v28 }
 0x67b   : > { %v6525_v27 = vadd.f32 %v4772_v9, %v7780_v58  ;;  %2146 = vmax.xlane.f32.xlu0 %v2089_v11  ;;  %v2096_v36 = vpop.f32.mrb[71].mxu0 }
 0x67c   : > { %v6532_v45 = vadd.f32 %v2096_v36, %v7782_v35 }
 0x67d   : > { %2154 = vmax.xlane.f32.xlu1 %v6525_v27 }
 0x67f   : > { %2152 = vmax.xlane.f32.xlu0 %v6528_v52 }
 0x680   : > { %v4775_v13 = vpop.f32.mrb[72].mxu0 }
 0x681   : > { %2150 = vmax.xlane.f32.xlu1 %v6532_v45  ;;  %v2109_v16 = vpop.f32.mrb[73].mxu0  ;;  %v6544_v48 = vadd.f32 %v4775_v13, %v7785_v50  ;;  %v7788_v13 = vld [vmem:[#allocation23_spill] sm:$0xff] }
 0x682   : > { %v4776_v56 = vpop.f32.mrb[74].mxu0  ;;  %v6552_v49 = vadd.f32 %v2109_v16, %v7787_v53  ;;  %v7790_v16 = vld [vmem:[#allocation22_spill] sm:$0xff] }
 0x683   : > { %v6540_v0 = vadd.f32 %v4776_v56, %v7784_v22  ;;  %2148 = vmax.xlane.f32.xlu0 %v6536_v59  ;;  %v2112_v24 = vpop.f32.mrb[75].mxu0 }
 0x684   : > { %v6548_v20 = vadd.f32 %v2112_v24, %v7786_v54  ;;  %v7789_v24 = vld [vmem:[#allocation25_spill] sm:$0xff] }
 0x685   : > { %2162 = vmax.xlane.f32.xlu1 %v6540_v0 }
 0x687   : > { %2160 = vmax.xlane.f32.xlu0 %v6544_v48 }
 0x688   : > { %v4779_v7 = vpop.f32.mrb[76].mxu0 }
 0x689   : > { %2158 = vmax.xlane.f32.xlu1 %v6548_v20  ;;  %v2125_v9 = vpop.f32.mrb[77].mxu0  ;;  %v6557_v63 = vadd.f32 %v4779_v7, %v7788_v13  ;;  %v7791_v7 = vld [vmem:[#allocation24_spill] sm:$0xff] }
 0x68a   : > { %v4780_v36 = vpop.f32.mrb[78].mxu0  ;;  %v6561_v15 = vadd.f32 %v2125_v9, %v7789_v24  ;;  %v6576_v9 = vpop.permute.xlu1 %2512 }
 0x68b   : > { %2156 = vmax.xlane.f32.xlu0 %v6552_v49  ;;  %v2128_v56 = vpop.f32.mrb[79].mxu0  ;;  %v6569_v14 = vadd.f32 %v4780_v36, %v7790_v16 }
 0x68c   : > { %v6573_v57 = vadd.f32 %v2128_v56, %v7791_v7 }
 0x68f   : > { %2168 = vmax.xlane.f32.xlu0 %v6557_v63 }
 0x693   : > { %2164 = vmax.xlane.f32.xlu0 %v6561_v15 }
 0x69a   : > { %2516 = vrot.lane.b32.xlu1 %v5831_v61, %s5425_s16 }
 0x6a9   : > { %2514 = vrot.lane.b32.xlu0 %v5819_v12, %s5425_s16 }
 0x6be   : > { %2170 = vmax.xlane.f32.xlu1 %v6569_v14 }
 0x6c2   : > { %2166 = vmax.xlane.f32.xlu1 %v6573_v57 }
 0x700   : > { %v2145_v8 = vpop.xlane.xlu0 %2144 }
 0x701   : > { %v2174_v26 = vsub.f32 %v2086_v2, %v2145_v8 }
 0x703   : > { %v2192_v47 = vmul.f32 1.442695, %v2174_v26  ;;  %v2143_v17 = vpop.xlane.xlu1 %2142 }
 0x704   : > { %v2173_v31 = vsub.f32 %v2081_v60, %v2143_v17  ;;  %v2141_v10 = vpop.xlane.xlu0 %2140 }
 0x705   : > { %5170 = vpow2.f32 %v2192_v47  ;;  %v2172_v30 = vsub.f32 %v2078_v18, %v2141_v10 }
 0x706   : > { %v2190_v25 = vmul.f32 1.442695, %v2173_v31 }
 0x707   : > { %v2188_v36 = vmul.f32 1.442695, %v2172_v30 }
 0x708   : > { %5172 = vpow2.f32 %v2190_v25  ;;  %v2147_v51 = vpop.xlane.xlu0 %2146 }
 0x709   : > { %5174 = vpow2.f32 %v2188_v36  ;;  %v2175_v37 = vsub.f32 %v2089_v11, %v2147_v51 }
 0x70a   : > { %v2155_v51 = vpop.xlane.xlu1 %2154 }
 0x70b   : > { %v2194_v56 = vmul.f32 1.442695, %v2175_v37  ;;  %v2179_v36 = vsub.f32 %v6525_v27, %v2155_v51 }
 0x70c   : > { %v2153_v25 = vpop.xlane.xlu0 %2152 }
 0x70d   : > { %5176 = vpow2.f32 %v2194_v56  ;;  %v2178_v30 = vsub.f32 %v6528_v52, %v2153_v25  ;;  %v2202_v7 = vmul.f32 1.442695, %v2179_v36 }
 0x70e   : > { %v2151_v17 = vpop.xlane.xlu1 %2150 }
 0x70f   : > { %v6578_v6 = vpop.eup %5170  ;;  %v2200_v47 = vmul.f32 1.442695, %v2178_v30  ;;  %v2177_v60 = vsub.f32 %v6532_v45, %v2151_v17 }
 0x710   : > { %2224 = vadd.xlane.f32.xlu1 %v6578_v6  ;;  %v2149_v37 = vpop.xlane.xlu0 %2148 }
 0x711   : > { %v2176_v2 = vsub.f32 %v6536_v59, %v2149_v37  ;;  %5178 = vpow2.f32 %v2200_v47  ;;  %v2198_v38 = vmul.f32 1.442695, %v2177_v60 }
 0x712   : > { %v6581_v46 = vpop.eup %5172  ;;  %v2163_v18 = vpop.xlane.xlu1 %2162 }
 0x713   : > { %v6583_v26 = vpop.eup %5174  ;;  %2222 = vadd.xlane.f32.xlu0 %v6581_v46  ;;  %v2196_v56 = vmul.f32 1.442695, %v2176_v2  ;;  %v2183_v27 = vsub.f32 %v6540_v0, %v2163_v18 }
 0x714   : > { %2220 = vadd.xlane.f32.xlu1 %v6583_v26  ;;  %v2161_v31 = vpop.xlane.xlu0 %2160 }
 0x715   : > { %v2182_v5 = vsub.f32 %v6544_v48, %v2161_v31  ;;  %5180 = vpow2.f32 %v2196_v56 }
 0x716   : > { %v2159_v16 = vpop.xlane.xlu1 %2158  ;;  %5182 = vpow2.f32 %v2198_v38 }
 0x717   : > { %v6587_v10 = vpop.eup %5176  ;;  %v2208_v25 = vmul.f32 1.442695, %v2182_v5  ;;  %5184 = vpow2.f32 %v2202_v7  ;;  %v2210_v5 = vmul.f32 1.442695, %v2183_v27 }
 0x718   : > { %2226 = vadd.xlane.f32.xlu1 %v6587_v10  ;;  %v2157_v8 = vpop.xlane.xlu0 %2156 }
 0x719   : > { %v2180_v59 = vsub.f32 %v6552_v49, %v2157_v8  ;;  %5186 = vpow2.f32 %v2208_v25 }
 0x71a   : > { %v6605_v48 = vpop.permute.xlu1 %2516 }
 0x71b   : > { %v2204_v51 = vmul.f32 1.442695, %v2180_v59  ;;  %v6603_v17 = vpop.eup %5178 }
 0x71c   : > { %v2169_v11 = vpop.xlane.xlu0 %2168 }
 0x71d   : > { %v2186_v52 = vsub.f32 %v6557_v63, %v2169_v11  ;;  %v2181_v63 = vsub.f32 %v6548_v20, %v2159_v16 }
 0x71f   : > { %v2216_v45 = vmul.f32 1.442695, %v2186_v52  ;;  %v6609_v49 = vpop.eup %5180  ;;  %v2206_v31 = vmul.f32 1.442695, %v2181_v63 }
 0x720   : > { %v2165_v37 = vpop.xlane.xlu0 %2164 }
 0x721   : > { %v2184_v30 = vsub.f32 %v6561_v15, %v2165_v37  ;;  %5188 = vpow2.f32 %v2216_v45  ;;  %v6611_v15 = vpop.eup %5182  ;;  %v2551_v45 = vsel %vm1013_vm1, %v6467_v1, 0 }
 0x722   : > { %5190 = vpow2.f32 %v2204_v51  ;;  %v6616_v47 = vpop.eup %5184 }
 0x723   : > { %v2212_v38 = vmul.f32 1.442695, %v2184_v30  ;;  %v6618_v20 = vpop.eup %5186 }
 0x725   : > { %5192 = vpow2.f32 %v2212_v38 }
 0x726   : > { %5194 = vpow2.f32 %v2210_v5 }
 0x729   : > { %2518 = vrot.lane.b32.xlu0 %v5843_v21, %s5425_s16  ;;  %2520 = vrot.lane.b32.xlu1 %v5855_v19, %s5425_s16 }
 0x72b   : > { %v6623_v60 = vpop.eup %5188 }
 0x72c   : > { %v6625_v18 = vpop.eup %5190 }
 0x72f   : > { %v6629_v11 = vpop.eup %5192 }
 0x730   : > { %v6631_v36 = vpop.eup %5194 }
 0x748   : > { %2232 = vadd.xlane.f32.xlu0 %v6603_v17 }
 0x74b   : > { %v2171_v7 = vpop.xlane.xlu1 %2170 }
 0x74c   : > { %v2187_v0 = vsub.f32 %v6569_v14, %v2171_v7  ;;  %2228 = vadd.xlane.f32.xlu0 %v6609_v49 }
 0x74d   : > { %2230 = vadd.xlane.f32.xlu1 %v6611_v15 }
 0x74e   : > { %v2218_v8 = vmul.f32 1.442695, %v2187_v0 }
 0x74f   : > { %v2167_v2 = vpop.xlane.xlu1 %2166 }
 0x750   : > { %5196 = vpow2.f32 %v2218_v8  ;;  %v2185_v16 = vsub.f32 %v6573_v57, %v2167_v2  ;;  %2234 = vadd.xlane.f32.xlu0 %v6616_v47 }
 0x751   : > { %2240 = vadd.xlane.f32.xlu1 %v6618_v20  ;;  %5198 = vpow2.f32 %v2206_v31 }
 0x752   : > { %v2214_v14 = vmul.f32 1.442695, %v2185_v16 }
 0x754   : > { %2248 = vadd.xlane.f32.xlu0 %v6623_v60  ;;  %5200 = vpow2.f32 %v2214_v14 }
 0x755   : > { %2236 = vadd.xlane.f32.xlu1 %v6625_v18 }
 0x758   : > { %2244 = vadd.xlane.f32.xlu0 %v6629_v11 }
 0x759   : > { %2242 = vadd.xlane.f32.xlu1 %v6631_v36 }
 0x75a   : > { %v6635_v57 = vpop.eup %5196 }
 0x75b   : > { %v6637_v56 = vpop.eup %5198 }
 0x75c   : > { %2250 = vadd.xlane.f32.xlu0 %v6635_v57 }
 0x75d   : > { %2238 = vadd.xlane.f32.xlu1 %v6637_v56 }
 0x75e   : > { %v6641_v52 = vpop.eup %5200 }
 0x761   : > { %2246 = vadd.xlane.f32.xlu1 %v6641_v52 }
 0x772   : > { %2524 = vrot.lane.b32.xlu1 %v5881_v44, %s5425_s16  ;;  %2522 = vrot.lane.b32.xlu0 %v5867_v39, %s5425_s16 }
 0x776   : > { %2496 = vrot.lane.b32.xlu1 %v5807_v43, %s5426_s17  ;;  %2494 = vrot.lane.b32.xlu0 %v5793_v32, %s5426_s17  ;;  %v2515_v32 = vpop.permute.xlu0 %2514 }
 0x77a   : > { %2500 = vrot.lane.b32.xlu1 %v5831_v61, %s5426_s17  ;;  %2498 = vrot.lane.b32.xlu0 %v5819_v12, %s5426_s17 }
 0x77e   : > { %2504 = vrot.lane.b32.xlu1 %v5855_v19, %s5426_s17  ;;  %2502 = vrot.lane.b32.xlu0 %v5843_v21, %s5426_s17 }
 0x782   : > { %2508 = vrot.lane.b32.xlu1 %v5881_v44, %s5426_s17  ;;  %2506 = vrot.lane.b32.xlu0 %v5867_v39, %s5426_s17 }
 0x786   : > { %2825 = vrot.lane.b32.xlu1 %v7750_v42, %s5426_s17  ;;  %2823 = vrot.lane.b32.xlu0 %v5795_v33, %s5426_s17 }
 0x78a   : > { %2827 = vrot.lane.b32.xlu0 %v5821_v29, %s5426_s17 }
 0x78e   : > { %2829 = vrot.lane.b32.xlu0 %v7753_v23, %s5426_s17 }
 0x79d   : > { %v2225_v43 = vpop.xlane.xlu1 %2224 }
 0x7a0   : > { %v2223_v12 = vpop.xlane.xlu0 %2222 }
 0x7a1   : > { %5202 = vrcp.f32 %v2223_v12  ;;  %v2221_v61 = vpop.xlane.xlu1 %2220 }
 0x7a2   : > { %5204 = vrcp.f32 %v2221_v61 }
 0x7a3   : > { %5206 = vrcp.f32 %v2225_v43 }
 0x7a4   : > { %v2519_v1 = vpop.permute.xlu0 %2518 }
 0x7a5   : > { %v2227_v21 = vpop.xlane.xlu1 %2226 }
 0x7a6   : > { %5208 = vrcp.f32 %v2227_v21 }
 0x7ab   : > { %v5203_v19 = vpop.eup %5202 }
 0x7ac   : > { %v5205_v39 = vpop.eup %5204  ;;  %v2269_v44 = vmul.f32 %v5203_v19, %v6581_v46  ;;  %v2554_v46 = vsel %vm1013_vm1, %v6576_v9, 0 }
 0x7ad   : > { %v2268_v33 = vmul.f32 %v5205_v39, %v6583_v26  ;;  %v5207_v42 = vpop.eup %5206  ;;  %v2560_v26 = vsel %vm1013_vm1, %v6605_v48, 0 }
 0x7ae   : > { %v2270_v23 = vmul.f32 %v5207_v42, %v6578_v6  ;;  %v2557_v6 = vsel %vm1013_vm1, %v2515_v32, 0 }
 0x7af   : > { %v2284_v29 = vpack.c.bf16 %v2269_v44, %v2268_v33 }
 0x7b0   : > { %v5209_v25 = vpop.eup %5208 }
 0x7b1   : > { %v2271_v59 = vmul.f32 %v5209_v25, %v6587_v10  ;;  %4797 = vmatprep.mubr.bf16.mxu1 %v2284_v29  ;;  %v2563_v10 = vsel %vm1013_vm1, %v2519_v1, 0 }
 0x7b3   : > { %v2285_v37 = vpack.c.bf16 %v2271_v59, %v2270_v23 }
 0x7b5   : > { %4798 = vmatmul.mubr.bf16.vlgmr.msra.gmra.mrb[32].mxu1 %v2285_v37 }
 0x7b6   : > { %4814 = vmatpush3.bf16.xpose.msra.mxu1 %v2551_v45 }
 0x7b7   : > { %4942 = vmatprep.subr.msk.bf16.mxu1 %vm1013_vm1, %v6576_v9  ;;  %v2521_v9 = vpop.permute.xlu1 %2520 }
 0x7b8   : > { %v2566_v38 = vsel %vm1013_vm1, %v2521_v9, 0 }
 0x7be   : > { %4816 = vmatpush3.bf16.xpose.msra.mxu1 %v2554_v46 }
 0x7bf   : > { %4943 = vmatprep.subr.msk.bf16.mxu1 %vm1013_vm1, %v2515_v32 }
 0x7c6   : > { %4818 = vmatpush3.bf16.xpose.msra.mxu1 %v2557_v6 }
 0x7c7   : > { %4944 = vmatprep.subr.msk.bf16.mxu1 %vm1013_vm1, %v6605_v48 }
 0x7ce   : > { %4820 = vmatpush3.bf16.xpose.msra.mxu1 %v2560_v26 }
 0x7cf   : > { %4945 = vmatprep.subr.msk.bf16.mxu1 %vm1013_vm1, %v2519_v1 }
 0x7d5   : > { %v2233_v30 = vpop.xlane.xlu0 %2232 }
 0x7d6   : > { %4822 = vmatpush3.bf16.xpose.msra.mxu1 %v2563_v10 }
 0x7d7   : > { %4946 = vmatprep.subr.msk.bf16.mxu1 %vm1013_vm1, %v2521_v9 }
 0x7d9   : > { %v2229_v27 = vpop.xlane.xlu0 %2228 }
 0x7da   : > { %5210 = vrcp.f32 %v2229_v27  ;;  %v2231_v51 = vpop.xlane.xlu1 %2230 }
 0x7db   : > { %5212 = vrcp.f32 %v2231_v51 }
 0x7dc   : > { %5214 = vrcp.f32 %v2233_v30 }
 0x7dd   : > { %v2235_v5 = vpop.xlane.xlu0 %2234 }
 0x7de   : > { %4824 = vmatpush3.bf16.xpose.msra.mxu1 %v2566_v38  ;;  %5216 = vrcp.f32 %v2235_v5  ;;  %v2241_v48 = vpop.xlane.xlu1 %2240 }
 0x7e1   : > { %v2249_v63 = vpop.xlane.xlu0 %2248 }
 0x7e2   : > { %v2237_v7 = vpop.xlane.xlu1 %2236 }
 0x7e4   : > { %v5211_v0 = vpop.eup %5210 }
 0x7e5   : > { %v5213_v31 = vpop.eup %5212  ;;  %v2245_v8 = vpop.xlane.xlu0 %2244  ;;  %v2272_v2 = vmul.f32 %v5211_v0, %v6609_v49 }
 0x7e6   : > { %v5215_v16 = vpop.eup %5214  ;;  %v2243_v14 = vpop.xlane.xlu1 %2242  ;;  %v2273_v32 = vmul.f32 %v5213_v31, %v6611_v15 }
 0x7e7   : > { %5218 = vrcp.f32 %v2243_v14  ;;  %v2274_v21 = vmul.f32 %v5215_v16, %v6603_v17 }
 0x7e8   : > { %v5217_v43 = vpop.eup %5216  ;;  %v2286_v12 = vpack.c.bf16 %v2273_v32, %v2272_v2  ;;  %5220 = vrcp.f32 %v2237_v7 }
 0x7e9   : > { %v2251_v61 = vpop.xlane.xlu0 %2250  ;;  %v2275_v19 = vmul.f32 %v5217_v43, %v6616_v47  ;;  %5222 = vrcp.f32 %v2241_v48 }
 0x7ea   : > { %v2239_v39 = vpop.xlane.xlu1 %2238  ;;  %4801 = vmatprep.mubr.bf16.mxu1 %v2286_v12 }
 0x7eb   : > { %5224 = vrcp.f32 %v2239_v39  ;;  %v2287_v44 = vpack.c.bf16 %v2275_v19, %v2274_v21 }
 0x7ec   : > { %5226 = vrcp.f32 %v2245_v8 }
 0x7ed   : > { %4802 = vmatmul.mubr.bf16.gmra.mrb[36].mxu1 %v2287_v44  ;;  %v2523_v49 = vpop.permute.xlu0 %2522 }
 0x7ee   : > { %v2247_v33 = vpop.xlane.xlu1 %2246  ;;  %4947 = vmatprep.subr.msk.bf16.mxu1 %vm1013_vm1, %v2523_v49  ;;  %v2569_v15 = vsel %vm1013_vm1, %v2523_v49, 0 }
 0x7ef   : > { %5228 = vrcp.f32 %v2247_v33  ;;  %4826 = vmatpush3.bf16.xpose.msra.mxu1 %v2569_v15 }
 0x7f0   : > { %5230 = vrcp.f32 %v2251_v61 }
 0x7f1   : > { %v2495_v42 = vpop.permute.xlu0 %2494  ;;  %v5219_v17 = vpop.eup %5218  ;;  %5232 = vrcp.f32 %v2249_v63 }
 0x7f2   : > { %v2525_v47 = vpop.permute.xlu1 %2524  ;;  %v5221_v29 = vpop.eup %5220  ;;  %v2279_v37 = vmul.f32 %v5219_v17, %v6631_v36 }
 0x7f3   : > { %4948 = vmatprep.subr.msk.bf16.mxu1 %vm1013_vm1, %v2525_v47  ;;  %v5223_v25 = vpop.eup %5222  ;;  %v2572_v46 = vsel %vm1013_vm1, %v2525_v47, 0  ;;  %v2276_v6 = vmul.f32 %v5221_v29, %v6625_v18 }
 0x7f4   : > { %v2278_v10 = vmul.f32 %v5223_v25, %v6618_v20 }
 0x7f5   : > { %v5225_v23 = vpop.eup %5224  ;;  %v2499_v59 = vpop.permute.xlu0 %2498 }
 0x7f6   : > { %v2497_v45 = vpop.permute.xlu1 %2496  ;;  %v2277_v26 = vmul.f32 %v5225_v23, %v6637_v56  ;;  %v5227_v1 = vpop.eup %5226  ;;  %v2289_v51 = vpack.c.bf16 %v2279_v37, %v2278_v10 }
 0x7f7   : > { %4828 = vmatpush3.bf16.xpose.msra.mxu1 %v2572_v46  ;;  %v2280_v36 = vmul.f32 %v5227_v1, %v6629_v11 }
 0x7f8   : > { %v2288_v30 = vpack.c.bf16 %v2277_v26, %v2276_v6 }
 0x7f9   : > { %v5229_v9 = vpop.eup %5228  ;;  %v2503_v27 = vpop.permute.xlu0 %2502 }
 0x7fa   : > { %v5231_v38 = vpop.eup %5230  ;;  %v2501_v5 = vpop.permute.xlu1 %2500  ;;  %4805 = vmatprep.mubr.bf16.mxu1 %v2288_v30  ;;  %v2281_v48 = vmul.f32 %v5229_v9, %v6641_v52 }
 0x7fb   : > { %4806 = vmatmul.mubr.bf16.gmra.mrb[40].mxu1 %v2289_v51  ;;  %v5233_v63 = vpop.eup %5232  ;;  %v2283_v56 = vmul.f32 %v5231_v38, %v6635_v57 }
 0x7fc   : > { %v2290_v18 = vpack.c.bf16 %v2281_v48, %v2280_v36  ;;  %v2282_v20 = vmul.f32 %v5233_v63, %v6623_v60  ;;  %v7792_v60 = vmov 0  }
 0x7fd   : > { %v2507_v7 = vpop.permute.xlu0 %2506 }
 0x7fe   : > { %v2505_v0 = vpop.permute.xlu1 %2504  ;;  %4809 = vmatprep.mubr.bf16.mxu1 %v2290_v18  ;;  %v2291_v8 = vpack.c.bf16 %v2283_v56, %v2282_v20 }
 0x801   : > { %v2824_v31 = vpop.permute.xlu0 %2823 }
 0x802   : > { %v2509_v2 = vpop.permute.xlu1 %2508  ;;  %4845 = vmatprep.subr.bf16.mxu0 %v2824_v31 }
 0x803   : > { %4810 = vmatmul.mubr.bf16.gmra.mrb[44].mxu1 %v2291_v8  ;;  %4846 = vmatpush3.bf16.msra.mxu0 %v2824_v31 }
 0x804   : > { %4829 = vmatprep.mubr.msk.bf16.mxu1 %vm1013_vm1, %v2495_v42 }
 0x805   : > { %v2828_v11 = vpop.permute.xlu0 %2827 }
 0x806   : > { %v2826_v52 = vpop.permute.xlu1 %2825 }
 0x807   : > { %4847 = vmatprep.subr.bf16.mxu0 %v2826_v52 }
 0x808   : > { %4848 = vmatpush3.bf16.msra.mxu0 %v2826_v52 }
 0x809   : > { %4849 = vmatprep.subr.bf16.mxu0 %v2828_v11  ;;  %v2830_v57 = vpop.permute.xlu0 %2829 }
 0x80b   : > { %4830 = vmatmul.mubr.msk.bf16.vlgmr.msra.gmra.mrb[48].mxu1 %vm1013_vm1, %v2497_v45 }
 0x80c   : > { %4833 = vmatprep.mubr.msk.bf16.mxu1 %vm1013_vm1, %v2499_v59  ;;  %4850 = vmatpush3.bf16.msra.mxu0 %v2828_v11 }
 0x80d   : > { %4851 = vmatprep.subr.bf16.mxu0 %v2830_v57 }
 0x810   : > { %4852 = vmatpush3.bf16.msra.mxu0 %v2830_v57 }
 0x813   : > { %4834 = vmatmul.mubr.msk.bf16.gmra.mrb[52].mxu1 %vm1013_vm1, %v2501_v5 }
 0x814   : > { %4837 = vmatprep.mubr.msk.bf16.mxu1 %vm1013_vm1, %v2503_v27 }
 0x81b   : > { %4838 = vmatmul.mubr.msk.bf16.gmra.mrb[56].mxu1 %vm1013_vm1, %v2505_v0 }
 0x81c   : > { %4841 = vmatprep.mubr.msk.bf16.mxu1 %vm1013_vm1, %v2507_v7 }
 0x823   : > { %4842 = vmatmul.mubr.msk.bf16.gmra.mrb[60].mxu1 %vm1013_vm1, %v2509_v2  ;;  %vm1946_vm1 = vcmask 261248  }
 0x824   : > { %3603 = vmatprep.mubr.bf16.mxu1 %v7792_v60 }
 0x888   : > { %v6717_v16 = vpop.f32.mrb[32].mxu1 }
 0x889   : > { %v6719_v14 = vpop.f32.mrb[33].mxu1 }
 0x88a   : > { %v6721_v32 = vpop.f32.mrb[34].mxu1 }
 0x88b   : > { %v6723_v43 = vpop.f32.mrb[35].mxu1 }
 0x8c0   : > { %v6725_v12 = vpop.f32.mrb[36].mxu1 }
 0x8c1   : > { %v6727_v61 = vpop.f32.mrb[37].mxu1 }
 0x8c2   : > { %v6729_v21 = vpop.f32.mrb[38].mxu1 }
 0x8c3   : > { %v6731_v19 = vpop.f32.mrb[39].mxu1 }
 0x8ce   : > { %v6733_v39 = vpop.f32.mrb[40].mxu1 }
 0x8cf   : > { %v6735_v44 = vpop.f32.mrb[41].mxu1 }
 0x8d0   : > { %v6737_v49 = vpop.f32.mrb[42].mxu1 }
 0x8d1   : > { %v6739_v33 = vpop.f32.mrb[43].mxu1 }
 0x8d6   : > { %v6741_v15 = vpop.f32.mrb[44].mxu1 }
 0x8d7   : > { %v6743_v42 = vpop.f32.mrb[45].mxu1 }
 0x8d8   : > { %v6745_v17 = vpop.f32.mrb[46].mxu1 }
 0x8d9   : > { %v6747_v47 = vpop.f32.mrb[47].mxu1 }
 0x8de   : > { %v4831_v29 = vpop.f32.mrb[48].mxu1 }
 0x8df   : > { %v2617_v25 = vadd.f32 %v4831_v29, %v7776_v62  ;;  %v2608_v23 = vpop.f32.mrb[49].mxu1 }
 0x8e0   : > { %v4832_v59 = vpop.f32.mrb[50].mxu1  ;;  %v2609_v46 = vadd.f32 %v2608_v23, %v7778_v55 }
 0x8e1   : > { %2675 = vmax.xlane.f32.xlu0 %v2617_v25  ;;  %v2611_v37 = vpop.f32.mrb[51].mxu1  ;;  %v2620_v26 = vadd.f32 %v4832_v59, %v7779_v3 }
 0x8e2   : > { %v2612_v45 = vadd.f32 %v2611_v37, %v7777_v41 }
 0x8e4   : > { %2673 = vmax.xlane.f32.xlu1 %v2612_v45 }
 0x8e5   : > { %2671 = vmax.xlane.f32.xlu0 %v2609_v46 }
 0x8e6   : > { %v4835_v6 = vpop.f32.mrb[52].mxu1 }
 0x8e7   : > { %v2624_v1 = vpop.f32.mrb[53].mxu1  ;;  %v2633_v62 = vadd.f32 %v4835_v6, %v7781_v40 }
 0x8e8   : > { %v4836_v10 = vpop.f32.mrb[54].mxu1  ;;  %v2625_v55 = vadd.f32 %v2624_v1, %v7783_v28 }
 0x8e9   : > { %v2636_v30 = vadd.f32 %v4836_v10, %v7780_v58  ;;  %2677 = vmax.xlane.f32.xlu0 %v2620_v26  ;;  %v2627_v9 = vpop.f32.mrb[55].mxu1 }
 0x8ea   : > { %v6756_v27 = vadd.f32 %v2627_v9, %v7782_v35 }
 0x8eb   : > { %2685 = vmax.xlane.f32.xlu1 %v2636_v30 }
 0x8ed   : > { %2683 = vmax.xlane.f32.xlu0 %v2633_v62 }
 0x8ee   : > { %v4839_v41 = vpop.f32.mrb[56].mxu1 }
 0x8ef   : > { %2681 = vmax.xlane.f32.xlu1 %v6756_v27  ;;  %v2640_v51 = vpop.f32.mrb[57].mxu1  ;;  %v6764_v5 = vadd.f32 %v4839_v41, %v7785_v50 }
 0x8f0   : > { %v4840_v3 = vpop.f32.mrb[58].mxu1  ;;  %v6772_v28 = vadd.f32 %v2640_v51, %v7787_v53  ;;  %v7793_v53 = vld [vmem:[#allocation22_spill] sm:$0xff] }
 0x8f1   : > { %v6761_v38 = vadd.f32 %v4840_v3, %v7784_v22  ;;  %2679 = vmax.xlane.f32.xlu0 %v2625_v55  ;;  %v2643_v58 = vpop.f32.mrb[59].mxu1 }
 0x8f2   : > { %v6768_v40 = vadd.f32 %v2643_v58, %v7786_v54 }
 0x8f3   : > { %2693 = vmax.xlane.f32.xlu1 %v6761_v38 }
 0x8f5   : > { %2691 = vmax.xlane.f32.xlu0 %v6764_v5 }
 0x8f6   : > { %v4843_v35 = vpop.f32.mrb[60].mxu1 }
 0x8f7   : > { %2689 = vmax.xlane.f32.xlu1 %v6768_v40  ;;  %v2656_v22 = vpop.f32.mrb[61].mxu1  ;;  %v6777_v50 = vadd.f32 %v4843_v35, %v7788_v13  ;;  %v7794_v13 = vld [vmem:[#allocation24_spill] sm:$0xff] }
 0x8f8   : > { %v4844_v36 = vpop.f32.mrb[62].mxu1  ;;  %v6781_v54 = vadd.f32 %v2656_v22, %v7789_v24 }
 0x8f9   : > { %2687 = vmax.xlane.f32.xlu0 %v6772_v28  ;;  %v2659_v48 = vpop.f32.mrb[63].mxu1  ;;  %v6789_v63 = vadd.f32 %v4844_v36, %v7793_v53 }
 0x8fa   : > { %v6793_v18 = vadd.f32 %v2659_v48, %v7794_v13 }
 0x8fd   : > { %2699 = vmax.xlane.f32.xlu0 %v6777_v50 }
 0x901   : > { %2695 = vmax.xlane.f32.xlu0 %v6781_v54 }
 0x908   : > { %2833 = vrot.lane.b32.xlu1 %v7754_v34, %s5426_s17 }
 0x917   : > { %2831 = vrot.lane.b32.xlu0 %v7748_v4, %s5426_s17 }
 0x92c   : > { %2701 = vmax.xlane.f32.xlu1 %v6789_v63 }
 0x930   : > { %2697 = vmax.xlane.f32.xlu1 %v6793_v18 }
 0x96e   : > { %v2676_v24 = vpop.xlane.xlu0 %2675 }
 0x96f   : > { %v2705_v7 = vsub.f32 %v2617_v25, %v2676_v24 }
 0x971   : > { %v2723_v56 = vmul.f32 1.442695, %v2705_v7  ;;  %v2674_v20 = vpop.xlane.xlu1 %2673  ;;  %v7795_v7 = vld [vmem:[#allocation9_spill] sm:$0xff] }
 0x972   : > { %v2672_v0 = vpop.xlane.xlu0 %2671  ;;  %v2704_v8 = vsub.f32 %v2612_v45, %v2674_v20 }
 0x973   : > { %5234 = vpow2.f32 %v2723_v56  ;;  %v2703_v34 = vsub.f32 %v2609_v46, %v2672_v0  ;;  %v7796_v56 = vld [vmem:[#allocation8_spill] sm:$0xff] }
 0x974   : > { %v2721_v57 = vmul.f32 1.442695, %v2704_v8 }
 0x975   : > { %v2719_v31 = vmul.f32 1.442695, %v2703_v34 }
 0x976   : > { %v2678_v4 = vpop.xlane.xlu0 %2677 }
 0x977   : > { %5236 = vpow2.f32 %v2719_v31  ;;  %v2706_v2 = vsub.f32 %v2620_v26, %v2678_v4 }
 0x978   : > { %v2686_v11 = vpop.xlane.xlu1 %2685 }
 0x979   : > { %v2725_v52 = vmul.f32 1.442695, %v2706_v2  ;;  %v2710_v29 = vsub.f32 %v2636_v30, %v2686_v11 }
 0x97a   : > { %v2684_v23 = vpop.xlane.xlu0 %2683 }
 0x97b   : > { %5238 = vpow2.f32 %v2725_v52  ;;  %v2709_v59 = vsub.f32 %v2633_v62, %v2684_v23  ;;  %v2733_v1 = vmul.f32 1.442695, %v2710_v29 }
 0x97c   : > { %v2682_v37 = vpop.xlane.xlu1 %2681  ;;  %5240 = vpow2.f32 %v2721_v57 }
 0x97d   : > { %v6796_v6 = vpop.eup %5234  ;;  %v2731_v25 = vmul.f32 1.442695, %v2709_v59  ;;  %v2708_v45 = vsub.f32 %v6756_v27, %v2682_v37 }
 0x97e   : > { %2755 = vadd.xlane.f32.xlu1 %v6796_v6  ;;  %v2680_v46 = vpop.xlane.xlu0 %2679 }
 0x97f   : > { %5242 = vpow2.f32 %v2731_v25  ;;  %v2707_v26 = vsub.f32 %v2625_v55, %v2680_v46  ;;  %v2729_v62 = vmul.f32 1.442695, %v2708_v45 }
 0x980   : > { %5244 = vpow2.f32 %v2733_v1  ;;  %v2694_v58 = vpop.xlane.xlu1 %2693 }
 0x981   : > { %v6800_v10 = vpop.eup %5236  ;;  %v2727_v9 = vmul.f32 1.442695, %v2707_v26  ;;  %v2714_v20 = vsub.f32 %v6761_v38, %v2694_v58  ;;  %v7797_v26 = vld [vmem:[#allocation27_spill] sm:$0xff]  ;;  %v7802_v58 = vld [vmem:[#allocation26_spill] sm:$0xff] }
 0x982   : > { %2751 = vadd.xlane.f32.xlu1 %v6800_v10  ;;  %v2692_v30 = vpop.xlane.xlu0 %2691 }
 0x983   : > { %5246 = vpow2.f32 %v2727_v9  ;;  %v2741_v8 = vmul.f32 1.442695, %v2714_v20  ;;  %v2713_v4 = vsub.f32 %v6764_v5, %v2692_v30  ;;  %v7798_v9 = vld [vmem:[#allocation6_spill] sm:$0xff]  ;;  %v7799_v30 = vld [vmem:[#allocation28_spill] sm:$0xff] }
 0x984   : > { %5248 = vpow2.f32 %v2729_v62  ;;  %v2690_v36 = vpop.xlane.xlu1 %2689  ;;  %v7800_v62 = vld [vmem:[#allocation4_spill] sm:$0xff] }
 0x985   : > { %v6803_v41 = vpop.eup %5238  ;;  %v2712_v34 = vsub.f32 %v6768_v40, %v2690_v36  ;;  %v2739_v52 = vmul.f32 1.442695, %v2713_v4 }
 0x986   : > { %2757 = vadd.xlane.f32.xlu1 %v6803_v41  ;;  %v2688_v51 = vpop.xlane.xlu0 %2687  ;;  %v6806_v3 = vpop.eup %5240 }
 0x987   : > { %v2711_v0 = vsub.f32 %v6772_v28, %v2688_v51  ;;  %v2737_v2 = vmul.f32 1.442695, %v2712_v34  ;;  %v7801_v51 = vld [vmem:[#allocation7_spill] sm:$0xff] }
 0x988   : > { %v2834_v24 = vpop.permute.xlu1 %2833 }
 0x989   : > { %v6808_v27 = vpop.eup %5242  ;;  %v2735_v31 = vmul.f32 1.442695, %v2711_v0 }
 0x98a   : > { %2753 = vadd.xlane.f32.xlu1 %v6806_v3  ;;  %2763 = vadd.xlane.f32.xlu0 %v6808_v27  ;;  %v2700_v55 = vpop.xlane.xlu0 %2699  ;;  %v6812_v35 = vpop.eup %5244 }
 0x98b   : > { %5250 = vpow2.f32 %v2735_v31  ;;  %v2717_v38 = vsub.f32 %v6777_v50, %v2700_v55  ;;  %v7803_v55 = vld [vmem:[#allocation5_spill] sm:$0xff] }
 0x98c   : > { %5252 = vpow2.f32 %v2741_v8 }
 0x98d   : > { %v6814_v22 = vpop.eup %5246  ;;  %5254 = vpow2.f32 %v2737_v2  ;;  %v2747_v25 = vmul.f32 1.442695, %v2717_v38 }
 0x98e   : > { %2765 = vadd.xlane.f32.xlu0 %v6812_v35  ;;  %2759 = vadd.xlane.f32.xlu1 %v6814_v22  ;;  %v2696_v48 = vpop.xlane.xlu0 %2695  ;;  %v6818_v53 = vpop.eup %5248  ;;  %5256 = vpow2.f32 %v2739_v52 }
 0x98f   : > { %v2715_v57 = vsub.f32 %v6781_v54, %v2696_v48 }
 0x991   : > { %v2743_v40 = vmul.f32 1.442695, %v2715_v57 }
 0x992   : > { %2761 = vadd.xlane.f32.xlu0 %v6818_v53  ;;  %v2832_v13 = vpop.permute.xlu0 %2831 }
 0x993   : > { %4853 = vmatprep.subr.bf16.mxu0 %v2832_v13 }
 0x994   : > { %4854 = vmatpush3.bf16.msra.mxu0 %v2832_v13 }
 0x995   : > { %4855 = vmatprep.subr.bf16.mxu0 %v2834_v24  ;;  %v6833_v37 = vpop.eup %5250 }
 0x996   : > { %v6836_v1 = vpop.eup %5252 }
 0x997   : > { %v6838_v54 = vpop.eup %5254 }
 0x998   : > { %4856 = vmatpush3.bf16.msra.mxu0 %v2834_v24  ;;  %v6842_v50 = vpop.eup %5256 }
 0x99f   : > { %2837 = vrot.lane.b32.xlu1 %v7795_v7, %s5426_s17 }
 0x9a8   : > { %2835 = vrot.lane.b32.xlu0 %v7796_v56, %s5426_s17 }
 0x9b9   : > { %v2702_v11 = vpop.xlane.xlu1 %2701 }
 0x9ba   : > { %v2718_v23 = vsub.f32 %v6789_v63, %v2702_v11 }
 0x9bc   : > { %v2749_v5 = vmul.f32 1.442695, %v2718_v23 }
 0x9bd   : > { %v2698_v29 = vpop.xlane.xlu1 %2697 }
 0x9be   : > { %v2716_v28 = vsub.f32 %v6793_v18, %v2698_v29 }
 0x9c0   : > { %v2745_v59 = vmul.f32 1.442695, %v2716_v28 }
 0x9c2   : > { %5258 = vpow2.f32 %v2745_v59 }
 0x9c3   : > { %2767 = vadd.xlane.f32.xlu1 %v6833_v37  ;;  %5260 = vpow2.f32 %v2743_v40 }
 0x9c4   : > { %5262 = vpow2.f32 %v2749_v5 }
 0x9c5   : > { %5264 = vpow2.f32 %v2747_v25 }
 0x9c7   : > { %2769 = vadd.xlane.f32.xlu0 %v6838_v54  ;;  %2773 = vadd.xlane.f32.xlu1 %v6836_v1 }
 0x9cb   : > { %2771 = vadd.xlane.f32.xlu0 %v6842_v50 }
 0x9cc   : > { %v6845_v63 = vpop.eup %5258 }
 0x9cd   : > { %2777 = vadd.xlane.f32.xlu1 %v6845_v63  ;;  %v6848_v18 = vpop.eup %5260 }
 0x9ce   : > { %v6851_v46 = vpop.eup %5262 }
 0x9cf   : > { %2775 = vadd.xlane.f32.xlu0 %v6848_v18  ;;  %v6854_v45 = vpop.eup %5264 }
 0x9d1   : > { %2781 = vadd.xlane.f32.xlu1 %v6851_v46 }
 0x9d3   : > { %2779 = vadd.xlane.f32.xlu0 %v6854_v45 }
 0x9e2   : > { %1900 = vrot.lane.b32.xlu1 %v7797_v26, %s5425_s16 }
 0x9e6   : > { %1902 = vrot.lane.b32.xlu1 %v7798_v9, %s5425_s16 }
 0x9e9   : > { %1898 = vrot.lane.b32.xlu0 %v7799_v30, %s5425_s16 }
 0x9ea   : > { %1904 = vrot.lane.b32.xlu1 %v7800_v62, %s5425_s16 }
 0x9ed   : > { %2429 = vrot.lane.b32.xlu0 %v6719_v14, %s5422_s30  ;;  %v7804_v14 = vld [vmem:[#allocation29_spill] sm:$0xff] }
 0x9ee   : > { %2431 = vrot.lane.b32.xlu1 %v6723_v43, %s5422_s30 }
 0x9f1   : > { %2433 = vrot.lane.b32.xlu0 %v6717_v16, %s5422_s30  ;;  %v7805_v16 = vld [vmem:[#allocation30_spill] sm:$0xff] }
 0x9f2   : > { %2435 = vrot.lane.b32.xlu1 %v6721_v32, %s5422_s30  ;;  %v7806_v32 = vld [vmem:[#allocation33_spill] sm:$0xff] }
 0x9f5   : > { %1906 = vrot.lane.b32.xlu0 %v7801_v51, %s5425_s16 }
 0x9f6   : > { %1908 = vrot.lane.b32.xlu1 %v7802_v58, %s5425_s16 }
 0x9f9   : > { %1910 = vrot.lane.b32.xlu0 %v7803_v55, %s5425_s16 }
 0x9fa   : > { %1912 = vrot.lane.b32.xlu1 %v7804_v14, %s5425_s16 }
 0x9fd   : > { %2437 = vrot.lane.b32.xlu0 %v6727_v61, %s5422_s30 }
 0x9fe   : > { %2439 = vrot.lane.b32.xlu1 %v6731_v19, %s5422_s30 }
 0xa01   : > { %2441 = vrot.lane.b32.xlu0 %v6725_v12, %s5422_s30 }
 0xa02   : > { %2443 = vrot.lane.b32.xlu1 %v6729_v21, %s5422_s30 }
 0xa05   : > { %1914 = vrot.lane.b32.xlu0 %v7805_v16, %s5425_s16 }
 0xa06   : > { %1916 = vrot.lane.b32.xlu1 %v7806_v32, %s5425_s16 }
 0xa0b   : > { %v2756_v43 = vpop.xlane.xlu1 %2755 }
 0xa0f   : > { %v2752_v36 = vpop.xlane.xlu1 %2751 }
 0xa10   : > { %5266 = vrcp.f32 %v2752_v36 }
 0xa13   : > { %v2758_v48 = vpop.xlane.xlu1 %2757 }
 0xa17   : > { %v2754_v61 = vpop.xlane.xlu1 %2753  ;;  %v2764_v13 = vpop.xlane.xlu0 %2763 }
 0xa18   : > { %5268 = vrcp.f32 %v2754_v61 }
 0xa19   : > { %5270 = vrcp.f32 %v2758_v48 }
 0xa1a   : > { %5272 = vrcp.f32 %v2756_v43  ;;  %v5267_v21 = vpop.eup %5266 }
 0xa1b   : > { %v2760_v19 = vpop.xlane.xlu1 %2759  ;;  %v2766_v12 = vpop.xlane.xlu0 %2765  ;;  %v2799_v20 = vmul.f32 %v5267_v21, %v6800_v10 }
 0xa1c   : > { %5274 = vrcp.f32 %v2760_v19 }
 0xa1f   : > { %v2762_v24 = vpop.xlane.xlu0 %2761  ;;  %v2838_v8 = vpop.permute.xlu1 %2837 }
 0xa20   : > { %5276 = vrcp.f32 %v2762_v24 }
 0xa21   : > { %5278 = vrcp.f32 %v2766_v12 }
 0xa22   : > { %v5269_v7 = vpop.eup %5268  ;;  %5280 = vrcp.f32 %v2764_v13 }
 0xa23   : > { %v5271_v56 = vpop.eup %5270  ;;  %v2836_v0 = vpop.permute.xlu0 %2835  ;;  %v2800_v34 = vmul.f32 %v5269_v7, %v6806_v3 }
 0xa24   : > { %4857 = vmatprep.subr.bf16.mxu0 %v2836_v0  ;;  %v5273_v31 = vpop.eup %5272  ;;  %v2802_v2 = vmul.f32 %v5271_v56, %v6803_v41 }
 0xa25   : > { %4858 = vmatpush3.bf16.msra.mxu0 %v2836_v0  ;;  %v2815_v4 = vpack.c.bf16 %v2800_v34, %v2799_v20  ;;  %v2801_v52 = vmul.f32 %v5273_v31, %v6796_v6 }
 0xa26   : > { %4859 = vmatprep.subr.bf16.mxu0 %v2838_v8  ;;  %v5275_v11 = vpop.eup %5274 }
 0xa27   : > { %4861 = vmatprep.mubr.bf16.mxu0 %v2815_v4  ;;  %v2816_v29 = vpack.c.bf16 %v2802_v2, %v2801_v52  ;;  %v2803_v10 = vmul.f32 %v5275_v11, %v6814_v22 }
 0xa29   : > { %4860 = vmatpush3.bf16.msra.mxu0 %v2838_v8 }
 0xa2a   : > { %v5277_v57 = vpop.eup %5276 }
 0xa2b   : > { %v5279_v23 = vpop.eup %5278  ;;  %v2804_v3 = vmul.f32 %v5277_v57, %v6818_v53 }
 0xa2c   : > { %4862 = vmatmul.mubr.bf16.vlgmr.msra.gmra.mrb[80].mxu0 %v2816_v29  ;;  %v5281_v28 = vpop.eup %5280  ;;  %v2806_v40 = vmul.f32 %v5279_v23, %v6812_v35  ;;  %v4978_v29 = vld [vmem:[%s7654_s5] sm:$0xff]   ;;  %v4979_v23 = vld [vmem:[%s7654_s5 + $0x8] sm:$0xff]  }
 0xa2d   : > { %v2817_v38 = vpack.c.bf16 %v2804_v3, %v2803_v10  ;;  %v2805_v41 = vmul.f32 %v5281_v28, %v6808_v27  ;;  %4877 = vmatprep.subr.bf16.mxu0 %v4978_v29  ;;  %v4980_v10 = vld [vmem:[%s7654_s5 + $0x10] sm:$0xff]   ;;  %v4981_v28 = vld [vmem:[%s7654_s5 + $0x18] sm:$0xff]  }
 0xa2e   : > { %4878 = vmatpush3.bf16.msra.mxu0 %v4978_v29 }
 0xa2f   : > { %4865 = vmatprep.mubr.bf16.mxu0 %v2817_v38  ;;  %v2818_v59 = vpack.c.bf16 %v2806_v40, %v2805_v41  ;;  %4879 = vmatprep.subr.bf16.mxu0 %v4979_v23 }
 0xa32   : > { %4880 = vmatpush3.bf16.msra.mxu0 %v4979_v23 }
 0xa33   : > { %4881 = vmatprep.subr.bf16.mxu0 %v4980_v10 }
 0xa34   : > { %4866 = vmatmul.mubr.bf16.gmra.mrb[84].mxu0 %v2818_v59 }
 0xa36   : > { %4882 = vmatpush3.bf16.msra.mxu0 %v4980_v10 }
 0xa37   : > { %4883 = vmatprep.subr.bf16.mxu0 %v4981_v28 }
 0xa3a   : > { %4884 = vmatpush3.bf16.msra.mxu0 %v4981_v28 }
 0xa50   : > { %v2768_v5 = vpop.xlane.xlu1 %2767 }
 0xa51   : > { %5282 = vrcp.f32 %v2768_v5  ;;  %v7807_v5 = vld [vmem:[#allocation31_spill] sm:$0xff] }
 0xa54   : > { %v2774_v6 = vpop.xlane.xlu1 %2773  ;;  %v2770_v25 = vpop.xlane.xlu0 %2769 }
 0xa55   : > { %5284 = vrcp.f32 %v2770_v25 }
 0xa56   : > { %5286 = vrcp.f32 %v2774_v6 }
 0xa58   : > { %v2772_v26 = vpop.xlane.xlu0 %2771 }
 0xa59   : > { %5288 = vrcp.f32 %v2772_v26  ;;  %v7808_v26 = vld [vmem:[#allocation32_spill] sm:$0xff] }
 0xa5a   : > { %v2778_v22 = vpop.xlane.xlu1 %2777 }
 0xa5b   : > { %5290 = vrcp.f32 %v2778_v22  ;;  %v5283_v9 = vpop.eup %5282 }
 0xa5c   : > { %v2776_v53 = vpop.xlane.xlu0 %2775  ;;  %v2807_v51 = vmul.f32 %v5283_v9, %v6833_v37 }
 0xa5d   : > { %5292 = vrcp.f32 %v2776_v53  ;;  %v7809_v53 = vld [vmem:[#allocation35_spill] sm:$0xff] }
 0xa5e   : > { %v2782_v30 = vpop.xlane.xlu1 %2781 }
 0xa5f   : > { %5294 = vrcp.f32 %v2782_v30  ;;  %v5285_v35 = vpop.eup %5284 }
 0xa60   : > { %v2780_v62 = vpop.xlane.xlu0 %2779  ;;  %v5287_v27 = vpop.eup %5286  ;;  %v2808_v58 = vmul.f32 %v5285_v35, %v6838_v54 }
 0xa61   : > { %5296 = vrcp.f32 %v2780_v62  ;;  %v2810_v36 = vmul.f32 %v5287_v27, %v6836_v1 }
 0xa62   : > { %v1901_v55 = vpop.permute.xlu1 %1900  ;;  %v2819_v16 = vpack.c.bf16 %v2808_v58, %v2807_v51  ;;  %v7812_v51 = vld [vmem:[#allocation36_spill] sm:$0xff] }
 0xa63   : > { %v5289_v14 = vpop.eup %5288  ;;  %1948 = vst.msk [vmem:[#allocation2 + $0x8] sm:$0xff] %vm1946_vm1, %v1901_v55 }
 0xa64   : > { %v1899_v32 = vpop.permute.xlu0 %1898  ;;  %v2809_v43 = vmul.f32 %v5289_v14, %v6842_v50  ;;  %4869 = vmatprep.mubr.bf16.mxu0 %v2819_v16 }
 0xa65   : > { %v5291_v48 = vpop.eup %5290  ;;  %1947 = vst.msk [vmem:[#allocation2] sm:$0xff] %vm1946_vm1, %v1899_v32 }
 0xa66   : > { %v1903_v61 = vpop.permute.xlu1 %1902  ;;  %v2820_v13 = vpack.c.bf16 %v2810_v36, %v2809_v43  ;;  %v2812_v12 = vmul.f32 %v5291_v48, %v6845_v63 }
 0xa67   : > { %v5293_v37 = vpop.eup %5292  ;;  %1949 = vst.msk [vmem:[#allocation2 + $0x10] sm:$0xff] %vm1946_vm1, %v1903_v61 }
 0xa68   : > { %4870 = vmatmul.mubr.bf16.gmra.mrb[88].mxu0 %v2820_v13  ;;  %v2430_v54 = vpop.permute.xlu0 %2429  ;;  %v2811_v19 = vmul.f32 %v5293_v37, %v6848_v18 }
 0xa69   : > { %v5295_v24 = vpop.eup %5294  ;;  %2478 = vst.msk [vmem:[#allocation2] sm:$0xff] %vm2477_vm4, %v2430_v54 }
 0xa6a   : > { %v1905_v1 = vpop.permute.xlu1 %1904  ;;  %v2821_v50 = vpack.c.bf16 %v2812_v12, %v2811_v19  ;;  %v2814_v0 = vmul.f32 %v5295_v24, %v6851_v46 }
 0xa6b   : > { %v5297_v21 = vpop.eup %5296  ;;  %1950 = vst.msk [vmem:[#allocation2 + $0x18] sm:$0xff] %vm1946_vm1, %v1905_v1 }
 0xa6c   : > { %4873 = vmatprep.mubr.bf16.mxu0 %v2821_v50  ;;  %v2434_v7 = vpop.permute.xlu0 %2433  ;;  %v2813_v56 = vmul.f32 %v5297_v21, %v6854_v45 }
 0xa6d   : > { %2480 = vst.msk [vmem:[#allocation2 + $0x10] sm:$0xff] %vm2477_vm4, %v2434_v7 }
 0xa6e   : > { %v2432_v20 = vpop.permute.xlu1 %2431  ;;  %v2822_v18 = vpack.c.bf16 %v2814_v0, %v2813_v56 }
 0xa6f   : > { %2479 = vst.msk [vmem:[#allocation2 + $0x8] sm:$0xff] %vm2477_vm4, %v2432_v20 }
 0xa70   : > { %4874 = vmatmul.mubr.bf16.gmra.mrb[92].mxu0 %v2822_v18  ;;  %v1907_v63 = vpop.permute.xlu0 %1906 }
 0xa71   : > { %1951 = vst.msk [vmem:[#allocation2 + $0x20] sm:$0xff] %vm1946_vm1, %v1907_v63 }
 0xa72   : > { %v2436_v34 = vpop.permute.xlu1 %2435 }
 0xa73   : > { %2481 = vst.msk [vmem:[#allocation2 + $0x18] sm:$0xff] %vm2477_vm4, %v2436_v34 }
 0xa74   : > { %v1911_v31 = vpop.permute.xlu0 %1910 }
 0xa75   : > { %1953 = vst.msk [vmem:[#allocation2 + $0x30] sm:$0xff] %vm1946_vm1, %v1911_v31 }
 0xa76   : > { %v1909_v8 = vpop.permute.xlu1 %1908 }
 0xa77   : > { %1952 = vst.msk [vmem:[#allocation2 + $0x28] sm:$0xff] %vm1946_vm1, %v1909_v8 }
 0xa78   : > { %v2438_v46 = vpop.permute.xlu0 %2437 }
 0xa79   : > { %2482 = vst.msk [vmem:[#allocation2 + $0x20] sm:$0xff] %vm2477_vm4, %v2438_v46 }
 0xa7a   : > { %v1913_v45 = vpop.permute.xlu1 %1912 }
 0xa7b   : > { %1954 = vst.msk [vmem:[#allocation2 + $0x38] sm:$0xff] %vm1946_vm1, %v1913_v45 }
 0xa7c   : > { %v2442_v4 = vpop.permute.xlu0 %2441 }
 0xa7d   : > { %2484 = vst.msk [vmem:[#allocation2 + $0x30] sm:$0xff] %vm2477_vm4, %v2442_v4 }
 0xa7e   : > { %v2440_v2 = vpop.permute.xlu1 %2439 }
 0xa7f   : > { %2483 = vst.msk [vmem:[#allocation2 + $0x28] sm:$0xff] %vm2477_vm4, %v2440_v2 }
 0xa80   : > { %v1915_v11 = vpop.permute.xlu0 %1914 }
 0xa81   : > { %1955 = vst.msk [vmem:[#allocation2 + $0x40] sm:$0xff] %vm1946_vm1, %v1915_v11 }
 0xa82   : > { %v2444_v52 = vpop.permute.xlu1 %2443 }
 0xa83   : > { %2485 = vst.msk [vmem:[#allocation2 + $0x38] sm:$0xff] %vm2477_vm4, %v2444_v52 }
 0xa86   : > { %v1917_v57 = vpop.permute.xlu1 %1916 }
 0xa87   : > { %1956 = vst.msk [vmem:[#allocation2 + $0x48] sm:$0xff] %vm1946_vm1, %v1917_v57 }
 0xaff   : > { %v4863_v3 = vpop.f32.mrb[80].mxu0 }
 0xb00   : > { %2964 = vrot.lane.b32.xlu0 %v4863_v3, %s5420_s26  ;;  %v2881_v38 = vpop.f32.mrb[81].mxu0 }
 0xb01   : > { %v4864_v40 = vpop.f32.mrb[82].mxu0 }
 0xb02   : > { %2966 = vrot.lane.b32.xlu1 %v4864_v40, %s5420_s26  ;;  %v2884_v41 = vpop.f32.mrb[83].mxu0 }
 0xb04   : > { %2960 = vrot.lane.b32.xlu0 %v2881_v38, %s5420_s26 }
 0xb06   : > { %2962 = vrot.lane.b32.xlu1 %v2884_v41, %s5420_s26 }
 0xb07   : > { %v4867_v59 = vpop.f32.mrb[84].mxu0 }
 0xb08   : > { %1918 = vrot.lane.b32.xlu0 %v7807_v5, %s5425_s16  ;;  %v2897_v6 = vpop.f32.mrb[85].mxu0 }
 0xb09   : > { %v4868_v25 = vpop.f32.mrb[86].mxu0 }
 0xb0a   : > { %1920 = vrot.lane.b32.xlu1 %v7808_v26, %s5425_s16  ;;  %v2900_v22 = vpop.f32.mrb[87].mxu0 }
 0xb0c   : > { %2445 = vrot.lane.b32.xlu0 %v6735_v44, %s5422_s30  ;;  %v7810_v44 = vld [vmem:[#allocation37_spill] sm:$0xff] }
 0xb0e   : > { %2447 = vrot.lane.b32.xlu1 %v6739_v33, %s5422_s30 }
 0xb10   : > { %2972 = vrot.lane.b32.xlu0 %v4867_v59, %s5420_s26 }
 0xb12   : > { %2974 = vrot.lane.b32.xlu1 %v4868_v25, %s5420_s26 }
 0xb14   : > { %2968 = vrot.lane.b32.xlu0 %v2897_v6, %s5420_s26 }
 0xb16   : > { %2970 = vrot.lane.b32.xlu1 %v2900_v22, %s5420_s26 }
 0xb18   : > { %2449 = vrot.lane.b32.xlu0 %v6733_v39, %s5422_s30 }
 0xb1a   : > { %2451 = vrot.lane.b32.xlu1 %v6737_v49, %s5422_s30  ;;  %v7811_v49 = vld [vmem:[#allocation34_spill] sm:$0xff] }
 0xb1c   : > { %1922 = vrot.lane.b32.xlu0 %v7809_v53, %s5425_s16 }
 0xb1e   : > { %1924 = vrot.lane.b32.xlu1 %v7810_v44, %s5425_s16 }
 0xb3b   : > { %v4871_v33 = vpop.f32.mrb[88].mxu0 }
 0xb3c   : > { %2980 = vrot.lane.b32.xlu0 %v4871_v33, %s5420_s26  ;;  %v2913_v9 = vpop.f32.mrb[89].mxu0 }
 0xb3d   : > { %v4872_v30 = vpop.f32.mrb[90].mxu0 }
 0xb3e   : > { %2982 = vrot.lane.b32.xlu1 %v4872_v30, %s5420_s26  ;;  %v2916_v35 = vpop.f32.mrb[91].mxu0 }
 0xb40   : > { %2976 = vrot.lane.b32.xlu0 %v2913_v9, %s5420_s26  ;;  %v7024_v9 = vld [vmem:[%s7655_s6] ss:$0 sm:$0xff] }
 0xb42   : > { %2978 = vrot.lane.b32.xlu1 %v2916_v35, %s5420_s26 }
 0xb43   : > { %v4875_v39 = vpop.f32.mrb[92].mxu0 }
 0xb44   : > { %1926 = vrot.lane.b32.xlu0 %v7811_v49, %s5425_s16  ;;  %v2929_v62 = vpop.f32.mrb[93].mxu0 }
 0xb45   : > { %v4876_v27 = vpop.f32.mrb[94].mxu0 }
 0xb46   : > { %1928 = vrot.lane.b32.xlu1 %v7812_v51, %s5425_s16  ;;  %v2932_v58 = vpop.f32.mrb[95].mxu0  ;;  %v5394_v51 = vld [vmem:[%s5513_s14] sm:$0xff]  ;;  %s7581_s16 = scalar_lea.vmem %s7662_s13, %s4314_s28 }
 0xb48   : > { %2453 = vrot.lane.b32.xlu0 %v6743_v42, %s5422_s30 }
 0xb4a   : > { %2455 = vrot.lane.b32.xlu1 %v6747_v47, %s5422_s30 }
 0xb4c   : > { %2457 = vrot.lane.b32.xlu0 %v6741_v15, %s5422_s30 }
 0xb4e   : > { %2459 = vrot.lane.b32.xlu1 %v6745_v17, %s5422_s30 }
 0xb50   : > { %2984 = vrot.lane.b32.xlu0 %v2929_v62, %s5420_s26 }
 0xb52   : > { %2986 = vrot.lane.b32.xlu1 %v2932_v58, %s5420_s26 }
 0xb54   : > { %2988 = vrot.lane.b32.xlu0 %v4875_v39, %s5420_s26 }
 0xb56   : > { %2990 = vrot.lane.b32.xlu1 %v4876_v27, %s5420_s26 }
 0xb72   : > { %v2965_v55 = vpop.permute.xlu0 %2964 }
 0xb73   : > { %3011 = vst.msk [vmem:[#allocation2 + $0x10] sm:$0xff] %vm3008_vm5, %v2965_v55 }
 0xb74   : > { %v2967_v42 = vpop.permute.xlu1 %2966 }
 0xb75   : > { %3012 = vst.msk [vmem:[#allocation2 + $0x18] sm:$0xff] %vm3008_vm5, %v2967_v42  ;;  %v5395_v42 = vld [vmem:[%s5513_s14 + $0x10] sm:$0xff] }
 0xb76   : > { %v2961_v47 = vpop.permute.xlu0 %2960 }
 0xb77   : > { %3009 = vst.msk [vmem:[#allocation2] sm:$0xff] %vm3008_vm5, %v2961_v47 }
 0xb78   : > { %v2963_v15 = vpop.permute.xlu1 %2962 }
 0xb79   : > { %3010 = vst.msk [vmem:[#allocation2 + $0x8] sm:$0xff] %vm3008_vm5, %v2963_v15 }
 0xb7a   : > { %v1919_v17 = vpop.permute.xlu0 %1918  ;;  %v3027_v13 = vld [vmem:[#allocation2 + $0x10] sm:$0xff] }
 0xb7b   : > { %1957 = vst.msk [vmem:[#allocation2 + $0x50] sm:$0xff] %vm1946_vm1, %v1919_v17  ;;  %v5396_v17 = vld [vmem:[%s5513_s14 + $0x8] sm:$0xff] }
 0xb7c   : > { %v1921_v14 = vpop.permute.xlu1 %1920  ;;  %v3028_v32 = vld [vmem:[#allocation2 + $0x18] sm:$0xff] }
 0xb7d   : > { %1958 = vst.msk [vmem:[#allocation2 + $0x58] sm:$0xff] %vm1946_vm1, %v1921_v14  ;;  %v3042_v54 = vpack.c.bf16 %v3028_v32, %v3027_v13 }
 0xb7e   : > { %v2446_v16 = vpop.permute.xlu0 %2445  ;;  %v3025_v36 = vld [vmem:[#allocation2] sm:$0xff] }
 0xb7f   : > { %2486 = vst.msk [vmem:[#allocation2 + $0x40] sm:$0xff] %vm2477_vm4, %v2446_v16 }
 0xb80   : > { %v2448_v43 = vpop.permute.xlu1 %2447  ;;  %v3026_v48 = vld [vmem:[#allocation2 + $0x8] sm:$0xff] }
 0xb81   : > { %2487 = vst.msk [vmem:[#allocation2 + $0x48] sm:$0xff] %vm2477_vm4, %v2448_v43  ;;  %v3041_v61 = vpack.c.bf16 %v3026_v48, %v3025_v36  ;;  %v5397_v43 = vld [vmem:[%s5513_s14 + $0x18] sm:$0xff] }
 0xb82   : > { %v2973_v37 = vpop.permute.xlu0 %2972 }
 0xb83   : > { %3015 = vst.msk [vmem:[#allocation2 + $0x30] sm:$0xff] %vm3008_vm5, %v2973_v37  ;;  %4885 = vmatprep.mubr.msk.bf16.mxu0 %vm463_vm0, %v3041_v61 }
 0xb84   : > { %v2975_v19 = vpop.permute.xlu1 %2974  ;;  %4886 = vmatmul.mubr.msk.bf16.vlgmr.msra.gmra.mrb[96].mxu0 %vm463_vm0, %v3042_v54 }
 0xb85   : > { %3016 = vst.msk [vmem:[#allocation2 + $0x38] sm:$0xff] %vm3008_vm5, %v2975_v19 }
 0xb86   : > { %v2969_v12 = vpop.permute.xlu0 %2968 }
 0xb87   : > { %3013 = vst.msk [vmem:[#allocation2 + $0x20] sm:$0xff] %vm3008_vm5, %v2969_v12 }
 0xb88   : > { %v2971_v24 = vpop.permute.xlu1 %2970 }
 0xb89   : > { %3014 = vst.msk [vmem:[#allocation2 + $0x28] sm:$0xff] %vm3008_vm5, %v2971_v24 }
 0xb8a   : > { %v2450_v1 = vpop.permute.xlu0 %2449  ;;  %v3031_v63 = vld [vmem:[#allocation2 + $0x30] sm:$0xff] }
 0xb8b   : > { %2488 = vst.msk [vmem:[#allocation2 + $0x50] sm:$0xff] %vm2477_vm4, %v2450_v1  ;;  %v5398_v1 = vld [vmem:[%s5513_s14 + $0x20] sm:$0xff] }
 0xb8c   : > { %v2452_v50 = vpop.permute.xlu1 %2451  ;;  %v3032_v7 = vld [vmem:[#allocation2 + $0x38] sm:$0xff] }
 0xb8d   : > { %2489 = vst.msk [vmem:[#allocation2 + $0x58] sm:$0xff] %vm2477_vm4, %v2452_v50  ;;  %v3044_v34 = vpack.c.bf16 %v3032_v7, %v3031_v63 }
 0xb8e   : > { %v1923_v21 = vpop.permute.xlu0 %1922  ;;  %v3029_v0 = vld [vmem:[#allocation2 + $0x20] sm:$0xff] }
 0xb8f   : > { %1959 = vst.msk [vmem:[#allocation2 + $0x60] sm:$0xff] %vm1946_vm1, %v1923_v21 }
 0xb90   : > { %v1925_v56 = vpop.permute.xlu1 %1924  ;;  %v3030_v20 = vld [vmem:[#allocation2 + $0x28] sm:$0xff] }
 0xb91   : > { %1960 = vst.msk [vmem:[#allocation2 + $0x68] sm:$0xff] %vm1946_vm1, %v1925_v56  ;;  %v3043_v18 = vpack.c.bf16 %v3030_v20, %v3029_v0  ;;  %v5399_v56 = vld [vmem:[%s5513_s14 + $0x30] sm:$0xff]  ;;  %v5400_v20 = vld [vmem:[%s5513_s14 + $0x28] sm:$0xff] }
 0xb93   : > { %4889 = vmatprep.mubr.msk.bf16.mxu0 %vm463_vm0, %v3043_v18 }
 0xb94   : > { %4890 = vmatmul.mubr.msk.bf16.gmra.mrb[100].mxu0 %vm463_vm0, %v3044_v34  ;;  %v5401_v34 = vld [vmem:[%s5513_s14 + $0x38] sm:$0xff] }
 0xbae   : > { %v2981_v31 = vpop.permute.xlu0 %2980 }
 0xbaf   : > { %3019 = vst.msk [vmem:[#allocation2 + $0x50] sm:$0xff] %vm3008_vm5, %v2981_v31 }
 0xbb0   : > { %v2983_v8 = vpop.permute.xlu1 %2982 }
 0xbb1   : > { %3020 = vst.msk [vmem:[#allocation2 + $0x58] sm:$0xff] %vm3008_vm5, %v2983_v8 }
 0xbb2   : > { %v2977_v46 = vpop.permute.xlu0 %2976 }
 0xbb3   : > { %3017 = vst.msk [vmem:[#allocation2 + $0x40] sm:$0xff] %vm3008_vm5, %v2977_v46 }
 0xbb4   : > { %v2979_v45 = vpop.permute.xlu1 %2978 }
 0xbb5   : > { %3018 = vst.msk [vmem:[#allocation2 + $0x48] sm:$0xff] %vm3008_vm5, %v2979_v45 }
 0xbb6   : > { %v1927_v4 = vpop.permute.xlu0 %1926  ;;  %v3035_v3 = vld [vmem:[#allocation2 + $0x50] sm:$0xff] }
 0xbb7   : > { %1961 = vst.msk [vmem:[#allocation2 + $0x70] sm:$0xff] %vm1946_vm1, %v1927_v4 }
 0xbb8   : > { %v1929_v2 = vpop.permute.xlu1 %1928  ;;  %v3036_v52 = vld [vmem:[#allocation2 + $0x58] sm:$0xff] }
 0xbb9   : > { %1962 = vst.msk [vmem:[#allocation2 + $0x78] sm:$0xff] %vm1946_vm1, %v1929_v2  ;;  %v3046_v38 = vpack.c.bf16 %v3036_v52, %v3035_v3 }
 0xbba   : > { %v2454_v11 = vpop.permute.xlu0 %2453  ;;  %v3033_v29 = vld [vmem:[#allocation2 + $0x40] sm:$0xff] }
 0xbbb   : > { %2490 = vst.msk [vmem:[#allocation2 + $0x60] sm:$0xff] %vm2477_vm4, %v2454_v11 }
 0xbbc   : > { %v2456_v57 = vpop.permute.xlu1 %2455  ;;  %v3034_v23 = vld [vmem:[#allocation2 + $0x48] sm:$0xff] }
 0xbbd   : > { %2491 = vst.msk [vmem:[#allocation2 + $0x68] sm:$0xff] %vm2477_vm4, %v2456_v57  ;;  %v3045_v10 = vpack.c.bf16 %v3034_v23, %v3033_v29  ;;  %v5402_v23 = vld [vmem:[%s5513_s14 + $0x40] sm:$0xff] }
 0xbbe   : > { %v2458_v28 = vpop.permute.xlu0 %2457 }
 0xbbf   : > { %2492 = vst.msk [vmem:[#allocation2 + $0x70] sm:$0xff] %vm2477_vm4, %v2458_v28  ;;  %4893 = vmatprep.mubr.msk.bf16.mxu0 %vm463_vm0, %v3045_v10 }
 0xbc0   : > { %v2460_v40 = vpop.permute.xlu1 %2459  ;;  %4894 = vmatmul.mubr.msk.bf16.gmra.mrb[104].mxu0 %vm463_vm0, %v3046_v38  ;;  %v5403_v38 = vld [vmem:[%s5513_s14 + $0x50] sm:$0xff] }
 0xbc1   : > { %2493 = vst.msk [vmem:[#allocation2 + $0x78] sm:$0xff] %vm2477_vm4, %v2460_v40 }
 0xbc2   : > { %v2985_v41 = vpop.permute.xlu0 %2984 }
 0xbc3   : > { %3021 = vst.msk [vmem:[#allocation2 + $0x60] sm:$0xff] %vm3008_vm5, %v2985_v41  ;;  %v5404_v41 = vld [vmem:[%s5513_s14 + $0x48] sm:$0xff] }
 0xbc4   : > { %v2987_v59 = vpop.permute.xlu1 %2986 }
 0xbc5   : > { %3022 = vst.msk [vmem:[#allocation2 + $0x68] sm:$0xff] %vm3008_vm5, %v2987_v59 }
 0xbc6   : > { %v2989_v5 = vpop.permute.xlu0 %2988 }
 0xbc7   : > { %3023 = vst.msk [vmem:[#allocation2 + $0x70] sm:$0xff] %vm3008_vm5, %v2989_v5 }
 0xbc8   : > { %v2991_v6 = vpop.permute.xlu1 %2990 }
 0xbc9   : > { %3024 = vst.msk [vmem:[#allocation2 + $0x78] sm:$0xff] %vm3008_vm5, %v2991_v6  ;;  %v5405_v6 = vld [vmem:[%s5513_s14 + $0x58] sm:$0xff] }
 0xbca   : > { %v3037_v25 = vld [vmem:[#allocation2 + $0x60] sm:$0xff] }
 0xbcc   : > { %v3038_v26 = vld [vmem:[#allocation2 + $0x68] sm:$0xff] }
 0xbcd   : > { %v3047_v22 = vpack.c.bf16 %v3038_v26, %v3037_v25 }
 0xbce   : > { %v3039_v53 = vld [vmem:[#allocation2 + $0x70] sm:$0xff] }
 0xbcf   : > { %4897 = vmatprep.mubr.msk.bf16.mxu0 %vm463_vm0, %v3047_v22 }
 0xbd0   : > { %v3040_v44 = vld [vmem:[#allocation2 + $0x78] sm:$0xff] }
 0xbd1   : > { %v3048_v33 = vpack.c.bf16 %v3040_v44, %v3039_v53 }
 0xbd3   : > { %4898 = vmatmul.mubr.msk.bf16.gmra.mrb[108].mxu0 %vm463_vm0, %v3048_v33 }
 0xc57   : > { %v4887_v30 = vpop.f32.mrb[96].mxu0 }
 0xc58   : > { %v3146_v35 = vpop.f32.mrb[97].mxu0  ;;  %v3155_v39 = vadd.f32 %v4887_v30, %v7024_v9 }
 0xc59   : > { %v3147_v49 = vadd.f32 %v7024_v9, %v3146_v35  ;;  %v4888_v62 = vpop.f32.mrb[98].mxu0 }
 0xc5a   : > { %v3149_v27 = vpop.f32.mrb[99].mxu0  ;;  %v7033_v47 = vadd.f32 %v5395_v42, %v3155_v39  ;;  %v3158_v15 = vadd.f32 %v4888_v62, %v7024_v9  ;;  %v5406_v62 = vld [vmem:[%s5513_s14 + $0x60] sm:$0xff]  ;;  %v5407_v42 = vld [vmem:[%s5513_s14 + $0x70] sm:$0xff] }
 0xc5b   : > { %v7029_v58 = vadd.f32 %v5394_v51, %v3147_v49  ;;  %v3150_v55 = vadd.f32 %v7024_v9, %v3149_v27 }
 0xc5c   : > { %v7044_v36 = vadd.f32 %v5397_v43, %v3158_v15  ;;  %v3233_v48 = vsel %vm463_vm0, %v7033_v47, 0.0  ;;  %v5409_v43 = vld [vmem:[%s5513_s14 + $0x78] sm:$0xff] }
 0xc5d   : > { %v7037_v14 = vadd.f32 %v5396_v17, %v3150_v55  ;;  %v3227_v16 = vsel %vm463_vm0, %v7029_v58, 0.0  ;;  %v5408_v17 = vld [vmem:[%s5513_s14 + $0x68] sm:$0xff] }
 0xc5e   : > { %3228 = vadd.xlane.f32.xlu0 %v3227_v16  ;;  %v3236_v61 = vsel %vm463_vm0, %v7044_v36, 0.0 }
 0xc5f   : > { %v3230_v32 = vsel %vm463_vm0, %v7037_v14, 0.0 }
 0xc60   : > { %3231 = vadd.xlane.f32.xlu1 %v3230_v32 }
 0xc62   : > { %3234 = vadd.xlane.f32.xlu0 %v3233_v48 }
 0xc66   : > { %3237 = vadd.xlane.f32.xlu0 %v3236_v61 }
 0xc67   : > { %v4891_v13 = vpop.f32.mrb[100].mxu0 }
 0xc68   : > { %v3162_v37 = vpop.f32.mrb[101].mxu0  ;;  %v3171_v54 = vadd.f32 %v4891_v13, %v7024_v9 }
 0xc69   : > { %v3163_v19 = vadd.f32 %v7024_v9, %v3162_v37  ;;  %v4892_v12 = vpop.f32.mrb[102].mxu0 }
 0xc6a   : > { %v3165_v24 = vpop.f32.mrb[103].mxu0  ;;  %v3174_v21 = vadd.f32 %v4892_v12, %v7024_v9  ;;  %v7058_v0 = vadd.f32 %v5399_v56, %v3171_v54 }
 0xc6b   : > { %v7053_v50 = vadd.f32 %v5398_v1, %v3163_v19  ;;  %v3166_v7 = vadd.f32 %v7024_v9, %v3165_v24 }
 0xc6c   : > { %v7066_v31 = vadd.f32 %v5401_v34, %v3174_v21  ;;  %v3245_v46 = vsel %vm463_vm0, %v7058_v0, 0.0 }
 0xc6d   : > { %v7061_v18 = vadd.f32 %v5400_v20, %v3166_v7  ;;  %v3239_v63 = vsel %vm463_vm0, %v7053_v50, 0.0 }
 0xc6e   : > { %3240 = vadd.xlane.f32.xlu0 %v3239_v63  ;;  %v3248_v45 = vsel %vm463_vm0, %v7066_v31, 0.0 }
 0xc6f   : > { %v3242_v8 = vsel %vm463_vm0, %v7061_v18, 0.0 }
 0xc70   : > { %3243 = vadd.xlane.f32.xlu1 %v3242_v8 }
 0xc72   : > { %3246 = vadd.xlane.f32.xlu0 %v3245_v46 }
 0xc74   : > { %3249 = vadd.xlane.f32.xlu1 %v3248_v45 }
 0xc93   : > { %v4895_v4 = vpop.f32.mrb[104].mxu0 }
 0xc94   : > { %v3178_v2 = vpop.f32.mrb[105].mxu0  ;;  %v3187_v11 = vadd.f32 %v4895_v4, %v7024_v9 }
 0xc95   : > { %v3179_v52 = vadd.f32 %v7024_v9, %v3178_v2  ;;  %v4896_v57 = vpop.f32.mrb[106].mxu0 }
 0xc96   : > { %v3181_v29 = vpop.f32.mrb[107].mxu0  ;;  %v3190_v3 = vadd.f32 %v4896_v57, %v7024_v9  ;;  %v7082_v40 = vadd.f32 %v5403_v38, %v3187_v11 }
 0xc97   : > { %v7077_v10 = vadd.f32 %v5402_v23, %v3179_v52  ;;  %v3182_v28 = vadd.f32 %v7024_v9, %v3181_v29 }
 0xc98   : > { %v7090_v25 = vadd.f32 %v5405_v6, %v3190_v3  ;;  %v3257_v22 = vsel %vm463_vm0, %v7082_v40, 0.0 }
 0xc99   : > { %v7085_v59 = vadd.f32 %v5404_v41, %v3182_v28  ;;  %v3251_v5 = vsel %vm463_vm0, %v7077_v10, 0.0 }
 0xc9a   : > { %3252 = vadd.xlane.f32.xlu0 %v3251_v5  ;;  %v3260_v53 = vsel %vm463_vm0, %v7090_v25, 0.0 }
 0xc9b   : > { %v3254_v26 = vsel %vm463_vm0, %v7085_v59, 0.0 }
 0xc9c   : > { %3255 = vadd.xlane.f32.xlu1 %v3254_v26 }
 0xc9e   : > { %3258 = vadd.xlane.f32.xlu0 %v3257_v22 }
 0xca0   : > { %3261 = vadd.xlane.f32.xlu1 %v3260_v53 }
 0xca6   : > { %v4899_v44 = vpop.f32.mrb[108].mxu0 }
 0xca7   : > { %v3194_v33 = vpop.f32.mrb[109].mxu0  ;;  %v3203_v30 = vadd.f32 %v4899_v44, %v7024_v9 }
 0xca8   : > { %v3195_v35 = vadd.f32 %v7024_v9, %v3194_v33  ;;  %v4900_v39 = vpop.f32.mrb[110].mxu0 }
 0xca9   : > { %v3197_v49 = vpop.f32.mrb[111].mxu0  ;;  %v3206_v51 = vadd.f32 %v4900_v39, %v7024_v9  ;;  %v7106_v15 = vadd.f32 %v5407_v42, %v3203_v30  ;;  %v4984_v42 = vld [vmem:[%s7658_s9 + $0x4] ss:$8 sps:$4 sm:$0xff]  }
 0xcaa   : > { %v7101_v27 = vadd.f32 %v5406_v62, %v3195_v35  ;;  %v3198_v55 = vadd.f32 %v7024_v9, %v3197_v49  ;;  %3571 = vmatprep.subr.bf16.mxu1 %v4984_v42 }
 0xcab   : > { %v7114_v48 = vadd.f32 %v5409_v43, %v3206_v51  ;;  %v3269_v9 = vsel %vm463_vm0, %v7106_v15, 0.0  ;;  %v4985_v43 = vld [vmem:[%s7658_s9 + $0x10] ss:$8 sps:$4 sm:$0xff]  }
 0xcac   : > { %v7109_v16 = vadd.f32 %v5408_v17, %v3198_v55  ;;  %v3263_v32 = vsel %vm463_vm0, %v7101_v27, 0.0  ;;  %v4982_v17 = vld [vmem:[%s7658_s9] ss:$8 sps:$4 sm:$0xff]  }
 0xcad   : > { %3264 = vadd.xlane.f32.xlu0 %v3263_v32  ;;  %v3272_v13 = vsel %vm463_vm0, %v7114_v48, 0.0  ;;  %3572 = vmatpush1.bf16.msra.mxu1 %v4982_v17  ;;  %v4987_v32 = vld [vmem:[%s7658_s9 + $0x14] ss:$8 sps:$4 sm:$0xff]  }
 0xcae   : > { %v3266_v61 = vsel %vm463_vm0, %v7109_v16, 0.0  ;;  %3573 = vmatprep.subr.bf16.mxu1 %v4987_v32 }
 0xcaf   : > { %3267 = vadd.xlane.f32.xlu1 %v3266_v61  ;;  %v4990_v61 = vld [vmem:[%s7658_s9 + $0x24] ss:$8 sps:$4 sm:$0xff]  }
 0xcb1   : > { %3270 = vadd.xlane.f32.xlu0 %v3269_v9  ;;  %3574 = vmatpush1.bf16.msra.mxu1 %v4985_v43  ;;  %v4988_v9 = vld [vmem:[%s7658_s9 + $0x20] ss:$8 sps:$4 sm:$0xff]  }
 0xcb2   : > { %3575 = vmatprep.subr.bf16.mxu1 %v4990_v61 }
 0xcb3   : > { %3273 = vadd.xlane.f32.xlu1 %v3272_v13  ;;  %v4993_v13 = vld [vmem:[%s7658_s9 + $0x34] ss:$8 sps:$4 sm:$0xff]  }
 0xcb5   : > { %3576 = vmatpush1.bf16.msra.mxu1 %v4988_v9 }
 0xcb6   : > { %3577 = vmatprep.subr.bf16.mxu1 %v4993_v13 }
 0xceb   : > { %v3229_v37 = vpop.xlane.xlu0 %3228 }
 0xcec   : > { %v3275_v54 = vmul.f32 0.015625, %v3229_v37  ;;  %v4991_v37 = vld [vmem:[%s7658_s9 + $0x30] ss:$8 sps:$4 sm:$0xff]  }
 0xced   : > { %v3232_v19 = vpop.xlane.xlu1 %3231  ;;  %3578 = vmatpush1.bf16.msra.mxu1 %v4991_v37 }
 0xcee   : > { %v7123_v12 = vsub.f32 %v7029_v58, %v3275_v54  ;;  %v3276_v24 = vmul.f32 0.015625, %v3232_v19 }
 0xcef   : > { %v3235_v1 = vpop.xlane.xlu0 %3234 }
 0xcf0   : > { %v7126_v21 = vsub.f32 %v7037_v14, %v3276_v24  ;;  %v3277_v7 = vmul.f32 0.015625, %v3235_v1  ;;  %v3307_v56 = vmul.f32 %v7123_v12, %v7123_v12 }
 0xcf2   : > { %v7131_v20 = vsub.f32 %v7033_v47, %v3277_v7  ;;  %v3323_v63 = vsel %vm463_vm0, %v3307_v56, 0.0  ;;  %v3308_v34 = vmul.f32 %v7126_v21, %v7126_v21 }
 0xcf3   : > { %3324 = vadd.xlane.f32.xlu0 %v3323_v63  ;;  %v3238_v8 = vpop.xlane.xlu0 %3237 }
 0xcf4   : > { %v3278_v46 = vmul.f32 0.015625, %v3238_v8  ;;  %v3326_v45 = vsel %vm463_vm0, %v3308_v34, 0.0  ;;  %v3309_v4 = vmul.f32 %v7131_v20, %v7131_v20 }
 0xcf5   : > { %3327 = vadd.xlane.f32.xlu1 %v3326_v45 }
 0xcf6   : > { %v7140_v2 = vsub.f32 %v7044_v36, %v3278_v46  ;;  %v3329_v11 = vsel %vm463_vm0, %v3309_v4, 0.0 }
 0xcf7   : > { %3330 = vadd.xlane.f32.xlu0 %v3329_v11 }
 0xcf8   : > { %v3310_v52 = vmul.f32 %v7140_v2, %v7140_v2 }
 0xcfa   : > { %v3332_v57 = vsel %vm463_vm0, %v3310_v52, 0.0 }
 0xcfb   : > { %3333 = vadd.xlane.f32.xlu1 %v3332_v57  ;;  %v3241_v29 = vpop.xlane.xlu0 %3240 }
 0xcfc   : > { %v3279_v23 = vmul.f32 0.015625, %v3241_v29 }
 0xcfd   : > { %v3244_v3 = vpop.xlane.xlu1 %3243 }
 0xcfe   : > { %v7147_v28 = vsub.f32 %v7053_v50, %v3279_v23  ;;  %v3280_v38 = vmul.f32 0.015625, %v3244_v3 }
 0xcff   : > { %v3247_v41 = vpop.xlane.xlu0 %3246 }
 0xd00   : > { %v7150_v5 = vsub.f32 %v7061_v18, %v3280_v38  ;;  %v3281_v6 = vmul.f32 0.015625, %v3247_v41  ;;  %v3311_v26 = vmul.f32 %v7147_v28, %v7147_v28 }
 0xd01   : > { %v3250_v22 = vpop.xlane.xlu1 %3249 }
 0xd02   : > { %v7155_v53 = vsub.f32 %v7058_v0, %v3281_v6  ;;  %v3282_v44 = vmul.f32 0.015625, %v3250_v22  ;;  %v3335_v33 = vsel %vm463_vm0, %v3311_v26, 0.0  ;;  %v3312_v30 = vmul.f32 %v7150_v5, %v7150_v5 }
 0xd03   : > { %3336 = vadd.xlane.f32.xlu0 %v3335_v33 }
 0xd04   : > { %v7161_v35 = vsub.f32 %v7066_v31, %v3282_v44  ;;  %v3338_v39 = vsel %vm463_vm0, %v3312_v30, 0.0  ;;  %v3313_v49 = vmul.f32 %v7155_v53, %v7155_v53 }
 0xd05   : > { %3339 = vadd.xlane.f32.xlu1 %v3338_v39 }
 0xd06   : > { %v3341_v62 = vsel %vm463_vm0, %v3313_v49, 0.0  ;;  %v3314_v51 = vmul.f32 %v7161_v35, %v7161_v35 }
 0xd07   : > { %3342 = vadd.xlane.f32.xlu0 %v3341_v62 }
 0xd08   : > { %v3344_v55 = vsel %vm463_vm0, %v3314_v51, 0.0 }
 0xd09   : > { %3345 = vadd.xlane.f32.xlu1 %v3344_v55 }
 0xd27   : > { %v3253_v54 = vpop.xlane.xlu0 %3252 }
 0xd28   : > { %v3283_v19 = vmul.f32 0.015625, %v3253_v54 }
 0xd29   : > { %v3256_v24 = vpop.xlane.xlu1 %3255 }
 0xd2a   : > { %v7195_v1 = vsub.f32 %v7077_v10, %v3283_v19  ;;  %v3284_v7 = vmul.f32 0.015625, %v3256_v24 }
 0xd2b   : > { %v3259_v56 = vpop.xlane.xlu0 %3258 }
 0xd2c   : > { %v7198_v63 = vsub.f32 %v7085_v59, %v3284_v7  ;;  %v3285_v34 = vmul.f32 0.015625, %v3259_v56  ;;  %v3315_v8 = vmul.f32 %v7195_v1, %v7195_v1 }
 0xd2d   : > { %v3262_v46 = vpop.xlane.xlu1 %3261 }
 0xd2e   : > { %v7203_v45 = vsub.f32 %v7082_v40, %v3285_v34  ;;  %v3286_v4 = vmul.f32 0.015625, %v3262_v46  ;;  %v3347_v11 = vsel %vm463_vm0, %v3315_v8, 0.0  ;;  %v3316_v52 = vmul.f32 %v7198_v63, %v7198_v63 }
 0xd2f   : > { %3348 = vadd.xlane.f32.xlu0 %v3347_v11 }
 0xd30   : > { %v7209_v57 = vsub.f32 %v7090_v25, %v3286_v4  ;;  %v3350_v29 = vsel %vm463_vm0, %v3316_v52, 0.0  ;;  %v3317_v23 = vmul.f32 %v7203_v45, %v7203_v45 }
 0xd31   : > { %3351 = vadd.xlane.f32.xlu1 %v3350_v29 }
 0xd32   : > { %v3353_v3 = vsel %vm463_vm0, %v3317_v23, 0.0  ;;  %v3318_v38 = vmul.f32 %v7209_v57, %v7209_v57 }
 0xd33   : > { %3354 = vadd.xlane.f32.xlu0 %v3353_v3 }
 0xd34   : > { %v3356_v41 = vsel %vm463_vm0, %v3318_v38, 0.0  ;;  %v7245_v38 = vld [vmem:[%s7656_s7] ss:$0 sm:$0xff] }
 0xd35   : > { %3357 = vadd.xlane.f32.xlu1 %v3356_v41 }
 0xd3a   : > { %v3265_v6 = vpop.xlane.xlu0 %3264 }
 0xd3b   : > { %v3287_v26 = vmul.f32 0.015625, %v3265_v6 }
 0xd3c   : > { %v3268_v22 = vpop.xlane.xlu1 %3267 }
 0xd3d   : > { %v7219_v44 = vsub.f32 %v7101_v27, %v3287_v26  ;;  %v3288_v33 = vmul.f32 0.015625, %v3268_v22 }
 0xd3e   : > { %v3271_v30 = vpop.xlane.xlu0 %3270 }
 0xd3f   : > { %v7222_v39 = vsub.f32 %v7109_v16, %v3288_v33  ;;  %v3289_v49 = vmul.f32 0.015625, %v3271_v30  ;;  %v3319_v62 = vmul.f32 %v7219_v44, %v7219_v44 }
 0xd40   : > { %v3274_v51 = vpop.xlane.xlu1 %3273 }
 0xd41   : > { %v7227_v55 = vsub.f32 %v7106_v15, %v3289_v49  ;;  %v3290_v42 = vmul.f32 0.015625, %v3274_v51  ;;  %v3359_v17 = vsel %vm463_vm0, %v3319_v62, 0.0  ;;  %v3320_v32 = vmul.f32 %v7222_v39, %v7222_v39  ;;  %v7253_v51 = vld [vmem:[%s7657_s8] ss:$0 sm:$0xff] }
 0xd42   : > { %3360 = vadd.xlane.f32.xlu0 %v3359_v17 }
 0xd43   : > { %v7233_v43 = vsub.f32 %v7114_v48, %v3290_v42  ;;  %v3362_v61 = vsel %vm463_vm0, %v3320_v32, 0.0  ;;  %v3321_v9 = vmul.f32 %v7227_v55, %v7227_v55 }
 0xd44   : > { %3363 = vadd.xlane.f32.xlu1 %v3362_v61 }
 0xd45   : > { %v3365_v13 = vsel %vm463_vm0, %v3321_v9, 0.0  ;;  %v3322_v37 = vmul.f32 %v7233_v43, %v7233_v43 }
 0xd46   : > { %3366 = vadd.xlane.f32.xlu0 %v3365_v13 }
 0xd47   : > { %v3368_v54 = vsel %vm463_vm0, %v3322_v37, 0.0 }
 0xd48   : > { %3369 = vadd.xlane.f32.xlu1 %v3368_v54 }
 0xd80   : > { %v3325_v19 = vpop.xlane.xlu0 %3324 }
 0xd81   : > { %v3371_v24 = vmul.f32 0.015625, %v3325_v19 }
 0xd82   : > { %v3328_v7 = vpop.xlane.xlu1 %3327 }
 0xd83   : > { %v3387_v56 = vadd.f32 1e-05, %v3371_v24  ;;  %v3372_v34 = vmul.f32 0.015625, %v3328_v7 }
 0xd84   : > { %v3331_v8 = vpop.xlane.xlu0 %3330 }
 0xd85   : > { %5298 = vrsqrt.f32 %v3387_v56  ;;  %v3388_v46 = vadd.f32 1e-05, %v3372_v34  ;;  %v3373_v4 = vmul.f32 0.015625, %v3331_v8 }
 0xd87   : > { %5300 = vrsqrt.f32 %v3388_v46  ;;  %v3389_v11 = vadd.f32 1e-05, %v3373_v4 }
 0xd88   : > { %v3334_v52 = vpop.xlane.xlu1 %3333 }
 0xd89   : > { %5302 = vrsqrt.f32 %v3389_v11  ;;  %v3374_v29 = vmul.f32 0.015625, %v3334_v52 }
 0xd8b   : > { %v3390_v23 = vadd.f32 1e-05, %v3374_v29 }
 0xd8d   : > { %5304 = vrsqrt.f32 %v3390_v23 }
 0xd8f   : > { %v5299_v3 = vpop.eup %5298 }
 0xd90   : > { %v3419_v41 = vmul.f32 %v5299_v3, %v7123_v12  ;;  %v3337_v6 = vpop.xlane.xlu0 %3336 }
 0xd91   : > { %v5301_v26 = vpop.eup %5300  ;;  %v3375_v22 = vmul.f32 0.015625, %v3337_v6 }
 0xd92   : > { %v3441_v33 = vmul.f32 %v7245_v38, %v3419_v41  ;;  %v3420_v30 = vmul.f32 %v5301_v26, %v7126_v21  ;;  %v3340_v49 = vpop.xlane.xlu1 %3339 }
 0xd93   : > { %v5303_v62 = vpop.eup %5302  ;;  %v3391_v42 = vadd.f32 1e-05, %v3375_v22  ;;  %v3376_v17 = vmul.f32 0.015625, %v3340_v49 }
 0xd94   : > { %v3442_v32 = vmul.f32 %v7245_v38, %v3420_v30  ;;  %v3343_v61 = vpop.xlane.xlu0 %3342  ;;  %v3463_v13 = vadd.f32 %v7253_v51, %v3441_v33  ;;  %v3421_v21 = vmul.f32 %v5303_v62, %v7131_v20 }
 0xd95   : > { %5306 = vrsqrt.f32 %v3391_v42  ;;  %v3392_v12 = vadd.f32 1e-05, %v3376_v17  ;;  %v3377_v9 = vmul.f32 0.015625, %v3343_v61 }
 0xd96   : > { %v3464_v37 = vadd.f32 %v7253_v51, %v3442_v32  ;;  %v3346_v54 = vpop.xlane.xlu1 %3345  ;;  %v3443_v46 = vmul.f32 %v7245_v38, %v3421_v21 }
 0xd97   : > { %v5305_v19 = vpop.eup %5304  ;;  %5308 = vrsqrt.f32 %v3392_v12  ;;  %v3393_v24 = vadd.f32 1e-05, %v3377_v9  ;;  %v3378_v7 = vmul.f32 0.015625, %v3346_v54 }
 0xd98   : > { %v3422_v56 = vmul.f32 %v5305_v19, %v7140_v2  ;;  %v3479_v34 = vpack.c.bf16 %v3464_v37, %v3463_v13  ;;  %v3465_v11 = vadd.f32 %v7253_v51, %v3443_v46 }
 0xd99   : > { %5310 = vrsqrt.f32 %v3393_v24  ;;  %v3394_v8 = vadd.f32 1e-05, %v3378_v7 }
 0xd9a   : > { %4390 = vmatmul.mubr.msk.bf16.vlgmr.msra.gmra.mrb[64].mxu1 %vm463_vm0, %v3479_v34  ;;  %v3444_v4 = vmul.f32 %v7245_v38, %v3422_v56 }
 0xd9b   : > { %5312 = vrsqrt.f32 %v3394_v8  ;;  %3613 = vmatprep.mubr.bf16.mxu1 %v7792_v60 }
 0xd9c   : > { %v3466_v20 = vadd.f32 %v7253_v51, %v3444_v4 }
 0xd9e   : > { %v3480_v2 = vpack.c.bf16 %v3466_v20, %v3465_v11 }
 0xd9f   : > { %v5307_v52 = vpop.eup %5306 }
 0xda0   : > { %v3423_v29 = vmul.f32 %v5307_v52, %v7147_v28 }
 0xda1   : > { %v5309_v23 = vpop.eup %5308 }
 0xda2   : > { %v3424_v3 = vmul.f32 %v5309_v23, %v7150_v5  ;;  %4391 = vmatmul.mubr.msk.bf16.gmra.mrb[68].mxu1 %vm463_vm0, %v3480_v2  ;;  %v3445_v41 = vmul.f32 %v7245_v38, %v3423_v29 }
 0xda3   : > { %v5311_v6 = vpop.eup %5310  ;;  %3623 = vmatprep.mubr.bf16.mxu1 %v7792_v60 }
 0xda4   : > { %v3446_v26 = vmul.f32 %v7245_v38, %v3424_v3  ;;  %v3425_v33 = vmul.f32 %v5311_v6, %v7155_v53  ;;  %v3467_v28 = vadd.f32 %v7253_v51, %v3445_v41 }
 0xda5   : > { %v5313_v22 = vpop.eup %5312 }
 0xda6   : > { %v3426_v30 = vmul.f32 %v5313_v22, %v7161_v35  ;;  %v3468_v49 = vadd.f32 %v7253_v51, %v3446_v26  ;;  %v3447_v42 = vmul.f32 %v7245_v38, %v3425_v33 }
 0xda8   : > { %v3481_v62 = vpack.c.bf16 %v3468_v49, %v3467_v28  ;;  %v3448_v5 = vmul.f32 %v7245_v38, %v3426_v30  ;;  %v3469_v32 = vadd.f32 %v7253_v51, %v3447_v42 }
 0xdaa   : > { %4392 = vmatmul.mubr.msk.bf16.gmra.mrb[72].mxu1 %vm463_vm0, %v3481_v62  ;;  %v3470_v17 = vadd.f32 %v7253_v51, %v3448_v5 }
 0xdab   : > { %3633 = vmatprep.mubr.bf16.mxu1 %v7792_v60 }
 0xdac   : > { %v3482_v53 = vpack.c.bf16 %v3470_v17, %v3469_v32 }
 0xdb2   : > { %4393 = vmatmul.mubr.msk.bf16.gmra.mrb[76].mxu1 %vm463_vm0, %v3482_v53 }
 0xdb3   : > { %3643 = vmatprep.mubr.bf16.mxu1 %v7792_v60 }
 0xdbc   : > { %v3349_v35 = vpop.xlane.xlu0 %3348 }
 0xdbd   : > { %v3379_v61 = vmul.f32 0.015625, %v3349_v35 }
 0xdbe   : > { %v3352_v12 = vpop.xlane.xlu1 %3351 }
 0xdbf   : > { %v3395_v9 = vadd.f32 1e-05, %v3379_v61  ;;  %v3380_v13 = vmul.f32 0.015625, %v3352_v12 }
 0xdc0   : > { %v3355_v37 = vpop.xlane.xlu0 %3354 }
 0xdc1   : > { %5314 = vrsqrt.f32 %v3395_v9  ;;  %v3396_v21 = vadd.f32 1e-05, %v3380_v13  ;;  %v3381_v54 = vmul.f32 0.015625, %v3355_v37 }
 0xdc2   : > { %v3358_v19 = vpop.xlane.xlu1 %3357 }
 0xdc3   : > { %5316 = vrsqrt.f32 %v3396_v21  ;;  %v3397_v24 = vadd.f32 1e-05, %v3381_v54  ;;  %v3382_v7 = vmul.f32 0.015625, %v3358_v19 }
 0xdc5   : > { %5318 = vrsqrt.f32 %v3397_v24  ;;  %v3398_v56 = vadd.f32 1e-05, %v3382_v7 }
 0xdc7   : > { %5320 = vrsqrt.f32 %v3398_v56 }
 0xdcb   : > { %v5315_v34 = vpop.eup %5314 }
 0xdcc   : > { %v3427_v8 = vmul.f32 %v5315_v34, %v7195_v1 }
 0xdcd   : > { %v5317_v46 = vpop.eup %5316 }
 0xdce   : > { %v3428_v4 = vmul.f32 %v5317_v46, %v7198_v63  ;;  %v3449_v20 = vmul.f32 %v7245_v38, %v3427_v8 }
 0xdcf   : > { %v5319_v11 = vpop.eup %5318  ;;  %v3361_v52 = vpop.xlane.xlu0 %3360 }
 0xdd0   : > { %v3383_v29 = vmul.f32 0.015625, %v3361_v52  ;;  %v3450_v2 = vmul.f32 %v7245_v38, %v3428_v4  ;;  %v3429_v3 = vmul.f32 %v5319_v11, %v7203_v45  ;;  %v3471_v6 = vadd.f32 %v7253_v51, %v3449_v20  ;;  %v4995_v20 = vld [vmem:[%s7660_s11] sm:$0xff]   ;;  %v4999_v11 = vld [vmem:[%s7660_s11 + $0x10] sm:$0xff]   ;;  %v5000_v52 = vld [vmem:[%s7660_s11 + $0x58] sm:$0xff]  }
 0xdd1   : > { %v5321_v23 = vpop.eup %5320  ;;  %v3364_v41 = vpop.xlane.xlu1 %3363 }
 0xdd2   : > { %v3430_v26 = vmul.f32 %v5321_v23, %v7209_v57  ;;  %v3399_v22 = vadd.f32 1e-05, %v3383_v29  ;;  %v3384_v1 = vmul.f32 0.015625, %v3364_v41  ;;  %v3472_v33 = vadd.f32 %v7253_v51, %v3450_v2  ;;  %v5001_v29 = vld [vmem:[%s7660_s11 + $0x18] sm:$0xff]   ;;  %v5002_v2 = vld [vmem:[%s7660_s11 + $0x60] sm:$0xff]   ;;  %v5005_v41 = vld [vmem:[%s7660_s11 + $0x28] sm:$0xff]  }
 0xdd3   : > { %v3367_v63 = vpop.xlane.xlu0 %3366  ;;  %v3451_v17 = vmul.f32 %v7245_v38, %v3429_v3  ;;  %v5003_v23 = vld [vmem:[%s7660_s11 + $0x20] sm:$0xff]   ;;  %v5004_v3 = vld [vmem:[%s7660_s11 + $0x68] sm:$0xff]  }
 0xdd4   : > { %5322 = vrsqrt.f32 %v3399_v22  ;;  %v3400_v30 = vadd.f32 1e-05, %v3384_v1  ;;  %v3385_v28 = vmul.f32 0.015625, %v3367_v63  ;;  %v3483_v49 = vpack.c.bf16 %v3472_v33, %v3471_v6  ;;  %v5006_v6 = vld [vmem:[%s7660_s11 + $0x70] sm:$0xff]   ;;  %v5008_v22 = vld [vmem:[%s7660_s11 + $0x78] sm:$0xff]   ;;  %v7813_v63 = vld [vmem:[#allocation3_spill] sm:$0xff] }
 0xdd5   : > { %v3370_v62 = vpop.xlane.xlu1 %3369  ;;  %v3452_v5 = vmul.f32 %v7245_v38, %v3430_v26  ;;  %v3473_v53 = vadd.f32 %v7253_v51, %v3451_v17  ;;  %v5007_v26 = vld [vmem:[%s7660_s11 + $0x30] sm:$0xff]   ;;  %v5009_v1 = vld [vmem:[%s7660_s11 + $0x38] sm:$0xff]   ;;  %v3495_v33 = vld [vmem:[%s7659_s10] sm:$0x3] }
 0xdd6   : > { %5324 = vrsqrt.f32 %v3400_v30  ;;  %v3401_v42 = vadd.f32 1e-05, %v3385_v28  ;;  %v3386_v45 = vmul.f32 0.015625, %v3370_v62  ;;  %4394 = vmatmul.mubr.msk.bf16.gmra.mrb[80].mxu1 %vm463_vm0, %v3483_v49  ;;  %v7814_v30 = vsub.s32 0, %v7813_v63 }
 0xdd7   : > { %3653 = vmatprep.mubr.bf16.mxu1 %v7792_v60  ;;  %v3474_v32 = vadd.f32 %v7253_v51, %v3452_v5  ;;  %v7815_v49 = vsub.s32 1, %v7813_v63 }
 0xdd8   : > { %5326 = vrsqrt.f32 %v3401_v42  ;;  %v3402_v57 = vadd.f32 1e-05, %v3386_v45  ;;  %v7368_v28 = vrot.slane %v3495_v33, %v7814_v30 }
 0xdd9   : > { %v3484_v35 = vpack.c.bf16 %v3474_v32, %v3473_v53  ;;  %v7372_v62 = vrot.slane %v3495_v33, %v7815_v49 }
 0xdda   : > { %5328 = vrsqrt.f32 %v3402_v57 }
 0xdde   : > { %v5323_v61 = vpop.eup %5322  ;;  %4395 = vmatmul.mubr.msk.bf16.gmra.mrb[84].mxu1 %vm463_vm0, %v3484_v35 }
 0xddf   : > { %v3431_v12 = vmul.f32 %v5323_v61, %v7219_v44  ;;  %3663 = vmatprep.mubr.bf16.mxu1 %v7792_v60 }
 0xde0   : > { %v5325_v9 = vpop.eup %5324 }
 0xde1   : > { %v3432_v13 = vmul.f32 %v5325_v9, %v7222_v39  ;;  %v3453_v37 = vmul.f32 %v7245_v38, %v3431_v12 }
 0xde2   : > { %v5327_v21 = vpop.eup %5326 }
 0xde3   : > { %v3454_v54 = vmul.f32 %v7245_v38, %v3432_v13  ;;  %v3433_v24 = vmul.f32 %v5327_v21, %v7227_v55  ;;  %v3475_v56 = vadd.f32 %v7253_v51, %v3453_v37 }
 0xde4   : > { %v5329_v19 = vpop.eup %5328 }
 0xde5   : > { %v3434_v7 = vmul.f32 %v5329_v19, %v7233_v43  ;;  %v3476_v34 = vadd.f32 %v7253_v51, %v3454_v54  ;;  %v3455_v39 = vmul.f32 %v7245_v38, %v3433_v24  ;;  %v4994_v43 = vld [vmem:[%s7660_s11 + $0x40] sm:$0xff]  }
 0xde6   : > { %4557 = vmatprep.subr.bf16.mxu0 %v4994_v43  ;;  %4901 = vmatprep.subr.bf16.mxu1 %v4994_v43 }
 0xde7   : > { %v3485_v44 = vpack.c.bf16 %v3476_v34, %v3475_v56  ;;  %v3456_v8 = vmul.f32 %v7245_v38, %v3434_v7  ;;  %v3477_v4 = vadd.f32 %v7253_v51, %v3455_v39  ;;  %4558 = vmatpush3.bf16.msra.mxu0 %v4995_v20  ;;  %4909 = vmatpush3.bf16.msra.mxu1 %v4995_v20  ;;  %v4997_v38 = vld [vmem:[%s7660_s11 + $0x8] sm:$0xff]  }
 0xde9   : > { %4396 = vmatmul.mubr.msk.bf16.gmra.mrb[88].mxu1 %vm463_vm0, %v3485_v44  ;;  %v3478_v46 = vadd.f32 %v7253_v51, %v3456_v8  ;;  %v4998_v51 = vld [vmem:[%s7660_s11 + $0x50] sm:$0xff]  }
 0xdea   : > { %3673 = vmatprep.mubr.bf16.mxu1 %v7792_v60  ;;  %v4996_v60 = vld [vmem:[%s7660_s11 + $0x48] sm:$0xff]  }
 0xdeb   : > { %v3486_v55 = vpack.c.bf16 %v3478_v46, %v3477_v4  ;;  %4559 = vmatprep.subr.bf16.mxu0 %v4996_v60  ;;  %4902 = vmatprep.subr.bf16.mxu1 %v4996_v60 }
 0xdec   : > { %4560 = vmatpush3.bf16.msra.mxu0 %v4997_v38  ;;  %4910 = vmatpush3.bf16.msra.mxu1 %v4997_v38 }
 0xded   : > { %4561 = vmatprep.subr.bf16.mxu0 %v4998_v51  ;;  %4903 = vmatprep.subr.bf16.mxu1 %v4998_v51 }
 0xdf0   : > { %4562 = vmatpush3.bf16.msra.mxu0 %v4999_v11  ;;  %4911 = vmatpush3.bf16.msra.mxu1 %v4999_v11 }
 0xdf1   : > { %4397 = vmatmul.mubr.msk.bf16.gmra.mrb[92].mxu1 %vm463_vm0, %v3486_v55  ;;  %4563 = vmatprep.subr.bf16.mxu0 %v5000_v52 }
 0xdf2   : > { %4904 = vmatprep.subr.bf16.mxu1 %v5000_v52 }
 0xdf4   : > { %4564 = vmatpush3.bf16.msra.mxu0 %v5001_v29  ;;  %4912 = vmatpush3.bf16.msra.mxu1 %v5001_v29 }
 0xdf5   : > { %4565 = vmatprep.subr.bf16.mxu0 %v5002_v2  ;;  %4905 = vmatprep.subr.bf16.mxu1 %v5002_v2 }
 0xdf8   : > { %4566 = vmatpush3.bf16.msra.mxu0 %v5003_v23  ;;  %4913 = vmatpush3.bf16.msra.mxu1 %v5003_v23 }
 0xdf9   : > { %4567 = vmatprep.subr.bf16.mxu0 %v5004_v3  ;;  %4906 = vmatprep.subr.bf16.mxu1 %v5004_v3 }
 0xdfc   : > { %4568 = vmatpush3.bf16.msra.mxu0 %v5005_v41  ;;  %4914 = vmatpush3.bf16.msra.mxu1 %v5005_v41 }
 0xdfd   : > { %4569 = vmatprep.subr.bf16.mxu0 %v5006_v6  ;;  %4907 = vmatprep.subr.bf16.mxu1 %v5006_v6 }
 0xe00   : > { %4570 = vmatpush3.bf16.msra.mxu0 %v5007_v26  ;;  %4915 = vmatpush3.bf16.msra.mxu1 %v5007_v26 }
 0xe01   : > { %4571 = vmatprep.subr.bf16.mxu0 %v5008_v22  ;;  %4908 = vmatprep.subr.bf16.mxu1 %v5008_v22 }
 0xe04   : > { %4572 = vmatpush3.bf16.msra.mxu0 %v5009_v1  ;;  %4916 = vmatpush3.bf16.msra.mxu1 %v5009_v1 }
 0xe6d   : > { %v3605_v5 = vpop.f32.mrb[64].mxu1 }
 0xe6e   : > { %v3606_v42 = vadd.f32 %v3605_v5, %v7368_v28  ;;  %v3607_v45 = vpop.f32.mrb[65].mxu1 }
 0xe6f   : > { %v3608_v17 = vadd.f32 %v3607_v45, %v7372_v62  ;;  %v3609_v57 = vpop.f32.mrb[66].mxu1 }
 0xe70   : > { %v3716_v32 = vmul.f32 0.044715, %v3606_v42  ;;  %v7377_v53 = vadd.f32 %v3609_v57, %v7368_v28  ;;  %v3611_v35 = vpop.f32.mrb[67].mxu1  ;;  %v3684_v45 = vmul.f32 0.5, %v3606_v42 }
 0xe71   : > { %v3717_v61 = vmul.f32 0.044715, %v3608_v17  ;;  %v7380_v12 = vadd.f32 %v3611_v35, %v7372_v62 }
 0xe72   : > { %v3748_v9 = vmul.f32 %v3716_v32, %v3606_v42  ;;  %v3718_v13 = vmul.f32 0.044715, %v7377_v53 }
 0xe73   : > { %v3749_v37 = vmul.f32 %v3717_v61, %v3608_v17  ;;  %v3719_v21 = vmul.f32 0.044715, %v7380_v12 }
 0xe74   : > { %v3780_v54 = vmul.f32 %v3748_v9, %v3606_v42  ;;  %v3750_v19 = vmul.f32 %v3718_v13, %v7377_v53 }
 0xe75   : > { %v3781_v24 = vmul.f32 %v3749_v37, %v3608_v17  ;;  %v3751_v7 = vmul.f32 %v3719_v21, %v7380_v12  ;;  %v3615_v56 = vpop.f32.mrb[68].mxu1 }
 0xe76   : > { %v3812_v34 = vadd.f32 %v3780_v54, %v3606_v42  ;;  %v3782_v44 = vmul.f32 %v3750_v19, %v7377_v53  ;;  %v7388_v8 = vadd.f32 %v3615_v56, %v7368_v28  ;;  %v3617_v39 = vpop.f32.mrb[69].mxu1 }
 0xe77   : > { %v3783_v46 = vmul.f32 %v3751_v7, %v7380_v12  ;;  %v3618_v4 = vadd.f32 %v3617_v39, %v7372_v62  ;;  %v3619_v55 = vpop.f32.mrb[70].mxu1  ;;  %v3813_v43 = vadd.f32 %v3781_v24, %v3608_v17  ;;  %v3685_v24 = vmul.f32 0.5, %v3608_v17 }
 0xe78   : > { %v3844_v20 = vmul.f32 0.7978846, %v3812_v34  ;;  %v3814_v60 = vadd.f32 %v3782_v44, %v7377_v53  ;;  %v3720_v38 = vmul.f32 0.044715, %v7388_v8  ;;  %v7395_v51 = vadd.f32 %v3619_v55, %v7368_v28  ;;  %v3621_v11 = vpop.f32.mrb[71].mxu1 }
 0xe79   : > { %v3721_v52 = vmul.f32 0.044715, %v3618_v4  ;;  %v7398_v29 = vadd.f32 %v3621_v11, %v7372_v62  ;;  %v3815_v2 = vadd.f32 %v3783_v46, %v7380_v12  ;;  %v3845_v23 = vmul.f32 0.7978846, %v3813_v43 }
 0xe7a   : > { %5330 = vtanh.f32 %v3844_v20  ;;  %v3846_v3 = vmul.f32 0.7978846, %v3814_v60  ;;  %v3752_v41 = vmul.f32 %v3720_v38, %v7388_v8  ;;  %v3722_v6 = vmul.f32 0.044715, %v7395_v51 }
 0xe7b   : > { %v3753_v26 = vmul.f32 %v3721_v52, %v3618_v4  ;;  %v3723_v22 = vmul.f32 0.044715, %v7398_v29  ;;  %v3847_v1 = vmul.f32 0.7978846, %v3815_v2  ;;  %5332 = vtanh.f32 %v3845_v23 }
 0xe7c   : > { %5334 = vtanh.f32 %v3846_v3  ;;  %v3784_v33 = vmul.f32 %v3752_v41, %v7388_v8  ;;  %v3754_v63 = vmul.f32 %v3722_v6, %v7395_v51  ;;  %v3686_v52 = vmul.f32 0.5, %v7377_v53 }
 0xe7d   : > { %v3785_v30 = vmul.f32 %v3753_v26, %v3618_v4  ;;  %v3755_v49 = vmul.f32 %v3723_v22, %v7398_v29  ;;  %v3625_v5 = vpop.f32.mrb[72].mxu1  ;;  %5336 = vtanh.f32 %v3847_v1  ;;  %v3687_v23 = vmul.f32 0.5, %v7380_v12 }
 0xe7e   : > { %v3786_v57 = vmul.f32 %v3754_v63, %v7395_v51  ;;  %v7409_v32 = vadd.f32 %v3625_v5, %v7368_v28  ;;  %v3627_v35 = vpop.f32.mrb[73].mxu1  ;;  %v3816_v21 = vadd.f32 %v3784_v33, %v7388_v8  ;;  %v3689_v22 = vmul.f32 0.5, %v3618_v4 }
 0xe7f   : > { %v3787_v61 = vmul.f32 %v3755_v49, %v7398_v29  ;;  %v7413_v9 = vadd.f32 %v3627_v35, %v7372_v62  ;;  %v3629_v13 = vpop.f32.mrb[74].mxu1  ;;  %v3817_v37 = vadd.f32 %v3785_v30, %v3618_v4 }
 0xe80   : > { %v3724_v54 = vmul.f32 0.044715, %v7409_v32  ;;  %v7418_v19 = vadd.f32 %v3629_v13, %v7368_v28  ;;  %v3631_v42 = vpop.f32.mrb[75].mxu1  ;;  %v3818_v7 = vadd.f32 %v3786_v57, %v7395_v51  ;;  %v3848_v43 = vmul.f32 0.7978846, %v3816_v21 }
 0xe81   : > { %v3725_v56 = vmul.f32 0.044715, %v7413_v9  ;;  %v7423_v34 = vadd.f32 %v3631_v42, %v7372_v62  ;;  %v3819_v44 = vadd.f32 %v3787_v61, %v7398_v29  ;;  %v3849_v39 = vmul.f32 0.7978846, %v3817_v37 }
 0xe82   : > { %v3756_v46 = vmul.f32 %v3724_v54, %v7409_v32  ;;  %v3726_v55 = vmul.f32 0.044715, %v7418_v19  ;;  %v3850_v20 = vmul.f32 0.7978846, %v3818_v7 }
 0xe83   : > { %v3757_v60 = vmul.f32 %v3725_v56, %v7413_v9  ;;  %v3727_v17 = vmul.f32 0.044715, %v7423_v34  ;;  %v3851_v38 = vmul.f32 0.7978846, %v3819_v44  ;;  %5338 = vtanh.f32 %v3849_v39 }
 0xe84   : > { %v5331_v11 = vpop.eup %5330  ;;  %v3758_v2 = vmul.f32 %v3726_v55, %v7418_v19  ;;  %5340 = vtanh.f32 %v3848_v43  ;;  %v3788_v12 = vmul.f32 %v3756_v46, %v7409_v32 }
 0xe85   : > { %v5333_v3 = vpop.eup %5332  ;;  %v3759_v41 = vmul.f32 %v3727_v17, %v7423_v34  ;;  %v3635_v6 = vpop.f32.mrb[76].mxu1  ;;  %v3908_v26 = vadd.f32 1.0, %v5331_v11  ;;  %5342 = vtanh.f32 %v3851_v38  ;;  %v3789_v33 = vmul.f32 %v3757_v60, %v7413_v9 }
 0xe86   : > { %v5335_v1 = vpop.eup %5334  ;;  %v7436_v63 = vadd.f32 %v3635_v6, %v7368_v28  ;;  %v3637_v30 = vpop.f32.mrb[77].mxu1  ;;  %v3909_v53 = vadd.f32 1.0, %v5333_v3  ;;  %5344 = vtanh.f32 %v3850_v20  ;;  %v3790_v61 = vmul.f32 %v3758_v2, %v7418_v19 }
 0xe87   : > { %v5337_v49 = vpop.eup %5336  ;;  %v3791_v5 = vmul.f32 %v3759_v41, %v7423_v34  ;;  %v7441_v57 = vadd.f32 %v3637_v30, %v7372_v62  ;;  %v3639_v35 = vpop.f32.mrb[78].mxu1  ;;  %v3910_v4 = vadd.f32 1.0, %v5335_v1  ;;  %v3940_v56 = vmul.f32 %v3908_v26, %v3684_v45 }
 0xe88   : > { %v3728_v13 = vmul.f32 0.044715, %v7436_v63  ;;  %v7446_v37 = vadd.f32 %v3639_v35, %v7368_v28  ;;  %v3641_v21 = vpop.f32.mrb[79].mxu1  ;;  %v3911_v54 = vadd.f32 1.0, %v5337_v49  ;;  %v3941_v46 = vmul.f32 %v3909_v53, %v3685_v24 }
 0xe89   : > { %v3729_v42 = vmul.f32 0.044715, %v7441_v57  ;;  %v7450_v7 = vadd.f32 %v3641_v21, %v7372_v62  ;;  %v3942_v44 = vmul.f32 %v3910_v4, %v3686_v52  ;;  %v3821_v43 = vadd.f32 %v3789_v33, %v7413_v9 }
 0xe8a   : > { %v3730_v39 = vmul.f32 0.044715, %v7446_v37  ;;  %v3943_v55 = vmul.f32 %v3911_v54, %v3687_v23  ;;  %v3823_v38 = vadd.f32 %v3791_v5, %v7423_v34  ;;  %v3760_v11 = vmul.f32 %v3728_v13, %v7436_v63 }
 0xe8b   : > { %v3761_v20 = vmul.f32 %v3729_v42, %v7441_v57  ;;  %v3731_v60 = vmul.f32 0.044715, %v7450_v7  ;;  %v3972_v17 = vpack.c.bf16 %v3942_v44, %v3940_v56  ;;  %v3691_v3 = vmul.f32 0.5, %v7398_v29 }
 0xe8c   : > { %v3973_v2 = vpack.c.bf16 %v3943_v55, %v3941_v46  ;;  %v3853_v45 = vmul.f32 0.7978846, %v3821_v43  ;;  %v3762_v41 = vmul.f32 %v3730_v39, %v7446_v37  ;;  %v3688_v23 = vmul.f32 0.5, %v7388_v8 }
 0xe8d   : > { %v5339_v52 = vpop.eup %5338  ;;  %v3763_v24 = vmul.f32 %v3731_v60, %v7450_v7  ;;  %v3855_v6 = vmul.f32 0.7978846, %v3823_v38  ;;  %v3793_v1 = vmul.f32 %v3761_v20, %v7441_v57  ;;  %v3820_v30 = vadd.f32 %v3788_v12, %v7409_v32 }
 0xe8e   : > { %v5341_v26 = vpop.eup %5340  ;;  %4155 = vmatprep.mubr.bf16.mxu0 %v3973_v2  ;;  %v3913_v33 = vadd.f32 1.0, %v5339_v52  ;;  %5346 = vtanh.f32 %v3853_v45  ;;  %v3822_v5 = vadd.f32 %v3790_v61, %v7418_v19  ;;  %v3792_v8 = vmul.f32 %v3760_v11, %v7436_v63 }
 0xe8f   : > { %v5343_v53 = vpop.eup %5342  ;;  %v3795_v29 = vmul.f32 %v3763_v24, %v7450_v7  ;;  %4156 = vmatmul.mubr.bf16.vlgmr.msra.gmra.mrb[112].mxu0 %v3972_v17  ;;  %v3912_v49 = vadd.f32 1.0, %v5341_v26  ;;  %5348 = vtanh.f32 %v3855_v6  ;;  %v3690_v13 = vmul.f32 0.5, %v7395_v51 }
 0xe90   : > { %v5345_v35 = vpop.eup %5344  ;;  %v3915_v4 = vadd.f32 1.0, %v5343_v53  ;;  %v3852_v21 = vmul.f32 0.7978846, %v3820_v30  ;;  %v3794_v54 = vmul.f32 %v3762_v41, %v7446_v37  ;;  %v3945_v42 = vmul.f32 %v3913_v33, %v3689_v22 }
 0xe91   : > { %v3914_v56 = vadd.f32 1.0, %v5345_v35  ;;  %v3854_v12 = vmul.f32 0.7978846, %v3822_v5  ;;  %v3825_v39 = vadd.f32 %v3793_v1, %v7441_v57  ;;  %v3827_v46 = vadd.f32 %v3795_v29, %v7450_v7 }
 0xe92   : > { %v3947_v44 = vmul.f32 %v3915_v4, %v3691_v3  ;;  %5350 = vtanh.f32 %v3852_v21  ;;  %v3944_v55 = vmul.f32 %v3912_v49, %v3688_v23  ;;  %v3824_v51 = vadd.f32 %v3792_v8, %v7436_v63 }
 0xe93   : > { %v3946_v61 = vmul.f32 %v3914_v56, %v3690_v13  ;;  %5352 = vtanh.f32 %v3854_v12  ;;  %v3857_v20 = vmul.f32 0.7978846, %v3825_v39  ;;  %v3859_v60 = vmul.f32 0.7978846, %v3827_v46 }
 0xe94   : > { %v3975_v43 = vpack.c.bf16 %v3947_v44, %v3945_v42  ;;  %v3826_v38 = vadd.f32 %v3794_v54, %v7446_v37  ;;  %v3856_v22 = vmul.f32 0.7978846, %v3824_v51  ;;  %v3693_v52 = vmul.f32 0.5, %v7413_v9 }
 0xe95   : > { %v3974_v17 = vpack.c.bf16 %v3946_v61, %v3944_v55  ;;  %5354 = vtanh.f32 %v3857_v20  ;;  %v3695_v41 = vmul.f32 0.5, %v7423_v34  ;;  %v3692_v53 = vmul.f32 0.5, %v7409_v32 }
 0xe96   : > { %4163 = vmatprep.mubr.bf16.mxu0 %v3975_v43  ;;  %5356 = vtanh.f32 %v3859_v60  ;;  %v3858_v11 = vmul.f32 0.7978846, %v3826_v38  ;;  %v3694_v29 = vmul.f32 0.5, %v7418_v19  ;;  %v3697_v21 = vmul.f32 0.5, %v7441_v57 }
 0xe97   : > { %4164 = vmatmul.mubr.bf16.gmra.mrb[116].mxu0 %v3974_v17  ;;  %5358 = vtanh.f32 %v3856_v22  ;;  %v3699_v54 = vmul.f32 0.5, %v7450_v7  ;;  %v3696_v12 = vmul.f32 0.5, %v7436_v63  ;;  %v3698_v39 = vmul.f32 0.5, %v7446_v37 }
 0xe98   : > { %v5347_v2 = vpop.eup %5346  ;;  %5360 = vtanh.f32 %v3858_v11 }
 0xe99   : > { %v5349_v3 = vpop.eup %5348  ;;  %v3917_v45 = vadd.f32 1.0, %v5347_v2 }
 0xe9a   : > { %v3919_v24 = vadd.f32 1.0, %v5349_v3 }
 0xe9b   : > { %v3949_v6 = vmul.f32 %v3917_v45, %v3693_v52 }
 0xe9c   : > { %v5351_v23 = vpop.eup %5350  ;;  %v3951_v26 = vmul.f32 %v3919_v24, %v3695_v41 }
 0xe9d   : > { %v5353_v1 = vpop.eup %5352  ;;  %v3916_v33 = vadd.f32 1.0, %v5351_v23 }
 0xe9e   : > { %v3977_v30 = vpack.c.bf16 %v3951_v26, %v3949_v6  ;;  %v3918_v49 = vadd.f32 1.0, %v5353_v1 }
 0xe9f   : > { %v5355_v5 = vpop.eup %5354  ;;  %v3948_v35 = vmul.f32 %v3916_v33, %v3692_v53 }
 0xea0   : > { %4171 = vmatprep.mubr.bf16.mxu0 %v3977_v30  ;;  %v3950_v8 = vmul.f32 %v3918_v49, %v3694_v29  ;;  %v5357_v4 = vpop.eup %5356  ;;  %v3921_v9 = vadd.f32 1.0, %v5355_v5 }
 0xea1   : > { %v5359_v13 = vpop.eup %5358  ;;  %v3923_v42 = vadd.f32 1.0, %v5357_v4 }
 0xea2   : > { %v3976_v34 = vpack.c.bf16 %v3950_v8, %v3948_v35  ;;  %v5361_v56 = vpop.eup %5360  ;;  %v3920_v32 = vadd.f32 1.0, %v5359_v13  ;;  %v3953_v19 = vmul.f32 %v3921_v9, %v3697_v21 }
 0xea3   : > { %v3955_v44 = vmul.f32 %v3923_v42, %v3699_v54  ;;  %v3922_v46 = vadd.f32 1.0, %v5361_v56 }
 0xea4   : > { %4172 = vmatmul.mubr.bf16.gmra.mrb[120].mxu0 %v3976_v34  ;;  %v3952_v61 = vmul.f32 %v3920_v32, %v3696_v12 }
 0xea5   : > { %v3979_v55 = vpack.c.bf16 %v3955_v44, %v3953_v19  ;;  %v3954_v43 = vmul.f32 %v3922_v46, %v3698_v39 }
 0xea7   : > { %4179 = vmatprep.mubr.bf16.mxu0 %v3979_v55  ;;  %v3978_v20 = vpack.c.bf16 %v3954_v43, %v3952_v61 }
 0xea9   : > { %v3645_v60 = vpop.f32.mrb[80].mxu1 }
 0xeaa   : > { %v3646_v57 = vadd.f32 %v3645_v60, %v7368_v28  ;;  %v3647_v7 = vpop.f32.mrb[81].mxu1 }
 0xeab   : > { %v3648_v51 = vadd.f32 %v3647_v7, %v7372_v62  ;;  %v3649_v17 = vpop.f32.mrb[82].mxu1 }
 0xeac   : > { %4180 = vmatmul.mubr.bf16.gmra.mrb[124].mxu0 %v3978_v20  ;;  %v3732_v63 = vmul.f32 0.044715, %v3646_v57  ;;  %v3650_v38 = vadd.f32 %v3649_v17, %v7368_v28  ;;  %v3651_v22 = vpop.f32.mrb[83].mxu1 }
 0xead   : > { %v3733_v11 = vmul.f32 0.044715, %v3648_v51  ;;  %v7485_v37 = vadd.f32 %v3651_v22, %v7372_v62 }
 0xeae   : > { %v3764_v2 = vmul.f32 %v3732_v63, %v3646_v57  ;;  %v3734_v3 = vmul.f32 0.044715, %v3650_v38 }
 0xeaf   : > { %v3765_v45 = vmul.f32 %v3733_v11, %v3648_v51  ;;  %v3735_v52 = vmul.f32 0.044715, %v7485_v37 }
 0xeb0   : > { %v3796_v41 = vmul.f32 %v3764_v2, %v3646_v57  ;;  %v3766_v24 = vmul.f32 %v3734_v3, %v3650_v38 }
 0xeb1   : > { %v3797_v23 = vmul.f32 %v3765_v45, %v3648_v51  ;;  %v3767_v6 = vmul.f32 %v3735_v52, %v7485_v37  ;;  %v3655_v26 = vpop.f32.mrb[84].mxu1  ;;  %v3700_v52 = vmul.f32 0.5, %v3646_v57 }
 0xeb2   : > { %v3798_v1 = vmul.f32 %v3766_v24, %v3650_v38  ;;  %v7490_v33 = vadd.f32 %v3655_v26, %v7368_v28  ;;  %v3657_v30 = vpop.f32.mrb[85].mxu1  ;;  %v3828_v53 = vadd.f32 %v3796_v41, %v3646_v57  ;;  %v3701_v26 = vmul.f32 0.5, %v3648_v51 }
 0xeb3   : > { %v3799_v29 = vmul.f32 %v3767_v6, %v7485_v37  ;;  %v3658_v49 = vadd.f32 %v3657_v30, %v7372_v62  ;;  %v3659_v5 = vpop.f32.mrb[86].mxu1  ;;  %v3829_v35 = vadd.f32 %v3797_v23, %v3648_v51  ;;  %v3703_v51 = vmul.f32 0.5, %v7485_v37 }
 0xeb4   : > { %v3736_v8 = vmul.f32 0.044715, %v7490_v33  ;;  %v3660_v4 = vadd.f32 %v3659_v5, %v7368_v28  ;;  %v3661_v9 = vpop.f32.mrb[87].mxu1  ;;  %v3830_v13 = vadd.f32 %v3798_v1, %v3650_v38  ;;  %v3860_v34 = vmul.f32 0.7978846, %v3828_v53 }
 0xeb5   : > { %v3737_v21 = vmul.f32 0.044715, %v3658_v49  ;;  %v3662_v54 = vadd.f32 %v3661_v9, %v7372_v62  ;;  %v3831_v42 = vadd.f32 %v3799_v29, %v7485_v37  ;;  %v3861_v56 = vmul.f32 0.7978846, %v3829_v35 }
 0xeb6   : > { %v3768_v12 = vmul.f32 %v3736_v8, %v7490_v33  ;;  %v3738_v32 = vmul.f32 0.044715, %v3660_v4  ;;  %v3862_v19 = vmul.f32 0.7978846, %v3830_v13  ;;  %5362 = vtanh.f32 %v3860_v34 }
 0xeb7   : > { %v3769_v44 = vmul.f32 %v3737_v21, %v3658_v49  ;;  %v3739_v39 = vmul.f32 0.044715, %v3662_v54  ;;  %v3863_v46 = vmul.f32 0.7978846, %v3831_v42  ;;  %5364 = vtanh.f32 %v3861_v56 }
 0xeb8   : > { %v3800_v55 = vmul.f32 %v3768_v12, %v7490_v33  ;;  %v3770_v61 = vmul.f32 %v3738_v32, %v3660_v4  ;;  %5366 = vtanh.f32 %v3862_v19  ;;  %v3702_v29 = vmul.f32 0.5, %v3650_v38 }
 0xeb9   : > { %v3801_v43 = vmul.f32 %v3769_v44, %v3658_v49  ;;  %v3771_v20 = vmul.f32 %v3739_v39, %v3662_v54  ;;  %5368 = vtanh.f32 %v3863_v46  ;;  %v7516_v21 = vmul.f32 0.5, %v3658_v49 }
 0xeba   : > { %v3802_v60 = vmul.f32 %v3770_v61, %v3660_v4  ;;  %v3832_v7 = vadd.f32 %v3800_v55, %v7490_v33  ;;  %v3707_v32 = vmul.f32 0.5, %v3662_v54  ;;  %v3704_v46 = vmul.f32 0.5, %v7490_v33 }
 0xebb   : > { %v3803_v17 = vmul.f32 %v3771_v20, %v3662_v54  ;;  %v3833_v63 = vadd.f32 %v3801_v43, %v3658_v49  ;;  %v3706_v55 = vmul.f32 0.5, %v3660_v4 }
 0xebc   : > { %v3665_v22 = vpop.f32.mrb[88].mxu1  ;;  %v3834_v11 = vadd.f32 %v3802_v60, %v3660_v4  ;;  %v3864_v2 = vmul.f32 0.7978846, %v3832_v7 }
 0xebd   : > { %v7502_v3 = vadd.f32 %v3665_v22, %v7368_v28  ;;  %v3667_v45 = vpop.f32.mrb[89].mxu1  ;;  %v3835_v41 = vadd.f32 %v3803_v17, %v3662_v54  ;;  %v3865_v24 = vmul.f32 0.7978846, %v3833_v63 }
 0xebe   : > { %v7505_v23 = vadd.f32 %v3667_v45, %v7372_v62  ;;  %v3669_v6 = vpop.f32.mrb[90].mxu1  ;;  %v3866_v1 = vmul.f32 0.7978846, %v3834_v11  ;;  %5370 = vtanh.f32 %v3864_v2 }
 0xebf   : > { %v7508_v30 = vadd.f32 %v3669_v6, %v7368_v28  ;;  %v3671_v53 = vpop.f32.mrb[91].mxu1  ;;  %v3867_v5 = vmul.f32 0.7978846, %v3835_v41  ;;  %5372 = vtanh.f32 %v3865_v24  ;;  %v3740_v8 = vmul.f32 0.044715, %v7502_v3 }
 0xec0   : > { %v5363_v35 = vpop.eup %5362  ;;  %v3741_v57 = vmul.f32 0.044715, %v7505_v23  ;;  %v7513_v9 = vadd.f32 %v3671_v53, %v7372_v62  ;;  %5374 = vtanh.f32 %v3866_v1 }
 0xec1   : > { %v5365_v13 = vpop.eup %5364  ;;  %v3924_v34 = vadd.f32 1.0, %v5363_v35  ;;  %5376 = vtanh.f32 %v3867_v5  ;;  %v3742_v44 = vmul.f32 0.044715, %v7508_v30  ;;  %v3772_v37 = vmul.f32 %v3740_v8, %v7502_v3 }
 0xec2   : > { %v5367_v42 = vpop.eup %5366  ;;  %v3773_v38 = vmul.f32 %v3741_v57, %v7505_v23  ;;  %v3743_v56 = vmul.f32 0.044715, %v7513_v9  ;;  %v3925_v12 = vadd.f32 1.0, %v5365_v13 }
 0xec3   : > { %v5369_v19 = vpop.eup %5368  ;;  %v3926_v39 = vadd.f32 1.0, %v5367_v42  ;;  %v3956_v17 = vmul.f32 %v3924_v34, %v3700_v52  ;;  %v3774_v45 = vmul.f32 %v3742_v44, %v7508_v30  ;;  %v3804_v1 = vmul.f32 %v3772_v37, %v7502_v3 }
 0xec4   : > { %v3805_v49 = vmul.f32 %v3773_v38, %v7505_v23  ;;  %v3775_v61 = vmul.f32 %v3743_v56, %v7513_v9  ;;  %v3675_v43 = vpop.f32.mrb[92].mxu1  ;;  %v3927_v20 = vadd.f32 1.0, %v5369_v19  ;;  %v3957_v54 = vmul.f32 %v3925_v12, %v3701_v26 }
 0xec5   : > { %v7526_v60 = vadd.f32 %v3675_v43, %v7368_v28  ;;  %v3677_v7 = vpop.f32.mrb[93].mxu1  ;;  %v3958_v63 = vmul.f32 %v3926_v39, %v3702_v29 }
 0xec6   : > { %v3807_v22 = vmul.f32 %v3775_v61, %v7513_v9  ;;  %v7530_v33 = vadd.f32 %v3677_v7, %v7372_v62  ;;  %v3679_v4 = vpop.f32.mrb[94].mxu1  ;;  %v3959_v11 = vmul.f32 %v3927_v20, %v3703_v51  ;;  %v3837_v2 = vadd.f32 %v3805_v49, %v7505_v23 }
 0xec7   : > { %v3744_v41 = vmul.f32 0.044715, %v7526_v60  ;;  %v7536_v24 = vadd.f32 %v3679_v4, %v7368_v28  ;;  %v3681_v6 = vpop.f32.mrb[95].mxu1  ;;  %v3980_v26 = vpack.c.bf16 %v3958_v63, %v3956_v17 }
 0xec8   : > { %v5371_v52 = vpop.eup %5370  ;;  %v3745_v53 = vmul.f32 0.044715, %v7530_v33  ;;  %v7541_v29 = vadd.f32 %v3681_v6, %v7372_v62  ;;  %v3981_v5 = vpack.c.bf16 %v3959_v11, %v3957_v54  ;;  %v3839_v28 = vadd.f32 %v3807_v22, %v7513_v9 }
 0xec9   : > { %v5373_v35 = vpop.eup %5372  ;;  %v3776_v8 = vmul.f32 %v3744_v41, %v7526_v60  ;;  %v3746_v57 = vmul.f32 0.044715, %v7536_v24  ;;  %v3928_v13 = vadd.f32 1.0, %v5371_v52  ;;  %v3869_v56 = vmul.f32 0.7978846, %v3837_v2 }
 0xeca   : > { %v5375_v51 = vpop.eup %5374  ;;  %v3777_v34 = vmul.f32 %v3745_v53, %v7530_v33  ;;  %v3747_v42 = vmul.f32 0.044715, %v7541_v29  ;;  %4187 = vmatprep.mubr.bf16.mxu0 %v3981_v5  ;;  %v3929_v38 = vadd.f32 1.0, %v5373_v35  ;;  %v3806_v62 = vmul.f32 %v3774_v45, %v7508_v30 }
 0xecb   : > { %v5377_v12 = vpop.eup %5376  ;;  %v3808_v19 = vmul.f32 %v3776_v8, %v7526_v60  ;;  %v3778_v44 = vmul.f32 %v3746_v57, %v7536_v24  ;;  %4188 = vmatmul.mubr.bf16.gmra.mrb[128].mxu0 %v3980_v26  ;;  %v3930_v39 = vadd.f32 1.0, %v5375_v51  ;;  %v3960_v43 = vmul.f32 %v3928_v13, %v3704_v46 }
 0xecc   : > { %v3809_v37 = vmul.f32 %v3777_v34, %v7530_v33  ;;  %v3779_v49 = vmul.f32 %v3747_v42, %v7541_v29  ;;  %v3931_v61 = vadd.f32 1.0, %v5377_v12  ;;  %v3871_v17 = vmul.f32 0.7978846, %v3839_v28 }
 0xecd   : > { %v3840_v20 = vadd.f32 %v3808_v19, %v7526_v60  ;;  %v3810_v7 = vmul.f32 %v3778_v44, %v7536_v24  ;;  %v3962_v54 = vmul.f32 %v3930_v39, %v3706_v55  ;;  %v3961_v22 = vmul.f32 %v3929_v38, %v7516_v21 }
 0xece   : > { %v3811_v63 = vmul.f32 %v3779_v49, %v7541_v29  ;;  %v3963_v4 = vmul.f32 %v3931_v61, %v3707_v32  ;;  %5378 = vtanh.f32 %v3869_v56  ;;  %v3836_v46 = vadd.f32 %v3804_v1, %v7502_v3 }
 0xecf   : > { %v3872_v11 = vmul.f32 0.7978846, %v3840_v20  ;;  %v3842_v2 = vadd.f32 %v3810_v7, %v7536_v24  ;;  %v3982_v45 = vpack.c.bf16 %v3962_v54, %v3960_v43  ;;  %5380 = vtanh.f32 %v3871_v17 }
 0xed0   : > { %v3983_v41 = vpack.c.bf16 %v3963_v4, %v3961_v22  ;;  %v3838_v6 = vadd.f32 %v3806_v62, %v7508_v30  ;;  %v3841_v55 = vadd.f32 %v3809_v37, %v7530_v33  ;;  %v3868_v52 = vmul.f32 0.7978846, %v3836_v46 }
 0xed1   : > { %5382 = vtanh.f32 %v3872_v11  ;;  %v3874_v26 = vmul.f32 0.7978846, %v3842_v2  ;;  %v3843_v21 = vadd.f32 %v3811_v63, %v7541_v29  ;;  %v3709_v57 = vmul.f32 0.5, %v7505_v23 }
 0xed2   : > { %4195 = vmatprep.mubr.bf16.mxu0 %v3983_v41  ;;  %v3870_v53 = vmul.f32 0.7978846, %v3838_v6  ;;  %v3873_v32 = vmul.f32 0.7978846, %v3841_v55  ;;  %v3711_v13 = vmul.f32 0.5, %v7513_v9  ;;  %v3712_v62 = vmul.f32 0.5, %v7526_v60 }
 0xed3   : > { %5384 = vtanh.f32 %v3874_v26  ;;  %4196 = vmatmul.mubr.bf16.gmra.mrb[132].mxu0 %v3982_v45  ;;  %v3875_v5 = vmul.f32 0.7978846, %v3843_v21  ;;  %v3714_v19 = vmul.f32 0.5, %v7536_v24  ;;  %v3708_v49 = vmul.f32 0.5, %v7502_v3 }
 0xed4   : > { %5386 = vtanh.f32 %v3868_v52  ;;  %v3710_v9 = vmul.f32 0.5, %v7508_v30  ;;  %v3713_v17 = vmul.f32 0.5, %v7530_v33  ;;  %v3715_v60 = vmul.f32 0.5, %v7541_v29  ;;  %v7573_v33 = vld [vmem:[%s7661_s12] ss:$0 sm:$0xff] }
 0xed5   : > { %5388 = vtanh.f32 %v3870_v53 }
 0xed6   : > { %5390 = vtanh.f32 %v3873_v32 }
 0xed7   : > { %5392 = vtanh.f32 %v3875_v5 }
 0xed8   : > { %v5379_v1 = vpop.eup %5378 }
 0xed9   : > { %v5381_v35 = vpop.eup %5380  ;;  %v3933_v8 = vadd.f32 1.0, %v5379_v1 }
 0xeda   : > { %v3935_v28 = vadd.f32 1.0, %v5381_v35 }
 0xedb   : > { %v5383_v51 = vpop.eup %5382  ;;  %v3965_v34 = vmul.f32 %v3933_v8, %v3709_v57 }
 0xedc   : > { %v3967_v42 = vmul.f32 %v3935_v28, %v3711_v13  ;;  %v3936_v38 = vadd.f32 1.0, %v5383_v51 }
 0xedd   : > { %v5385_v56 = vpop.eup %5384 }
 0xede   : > { %v5387_v12 = vpop.eup %5386  ;;  %v3985_v44 = vpack.c.bf16 %v3967_v42, %v3965_v34  ;;  %v3938_v39 = vadd.f32 1.0, %v5385_v56  ;;  %v3968_v20 = vmul.f32 %v3936_v38, %v3712_v62 }
 0xedf   : > { %v5389_v37 = vpop.eup %5388  ;;  %v3932_v61 = vadd.f32 1.0, %v5387_v12 }
 0xee0   : > { %v5391_v23 = vpop.eup %5390  ;;  %4203 = vmatprep.mubr.bf16.mxu0 %v3985_v44  ;;  %v3934_v43 = vadd.f32 1.0, %v5389_v37  ;;  %v3970_v7 = vmul.f32 %v3938_v39, %v3714_v19 }
 0xee1   : > { %v5393_v54 = vpop.eup %5392  ;;  %v3937_v63 = vadd.f32 1.0, %v5391_v23  ;;  %v3964_v24 = vmul.f32 %v3932_v61, %v3708_v49 }
 0xee2   : > { %v3966_v22 = vmul.f32 %v3934_v43, %v3710_v9  ;;  %v3939_v4 = vadd.f32 1.0, %v5393_v54  ;;  %v3986_v11 = vpack.c.bf16 %v3970_v7, %v3968_v20 }
 0xee3   : > { %v3969_v2 = vmul.f32 %v3937_v63, %v3713_v17 }
 0xee4   : > { %v3984_v3 = vpack.c.bf16 %v3966_v22, %v3964_v24  ;;  %v3971_v45 = vmul.f32 %v3939_v4, %v3715_v60 }
 0xee6   : > { %4204 = vmatmul.mubr.bf16.gmra.mrb[136].mxu0 %v3984_v3  ;;  %v3987_v41 = vpack.c.bf16 %v3971_v45, %v3969_v2 }
 0xee8   : > { %4211 = vmatprep.mubr.bf16.mxu1 %v3987_v41 }
 0xee9   : > { %4212 = vmatmul.mubr.bf16.vlgmr.msra.gmra.mrb[96].mxu1 %v3986_v11 }
 0xf62   : > { %v4573_v30 = vpop.f32.mrb[112].mxu0 }
 0xf63   : > { %v4574_v29 = vpop.f32.mrb[113].mxu0 }
 0xf64   : > { %v4575_v46 = vadd.f32 %v4574_v29, %v4573_v30  ;;  %v4576_v6 = vpop.f32.mrb[114].mxu0 }
 0xf65   : > { %v4577_v26 = vpop.f32.mrb[115].mxu0 }
 0xf66   : > { %v4158_v55 = vadd.f32 %v4575_v46, %v7573_v33  ;;  %v4578_v52 = vadd.f32 %v4577_v26, %v4576_v6 }
 0xf68   : > { %v4220_v53 = vadd.f32 %v4158_v55, %v7029_v58  ;;  %v4161_v21 = vadd.f32 %v4578_v52, %v7573_v33 }
 0xf6a   : > { %4236 = vst.msk [vmem:[%s7581_s16] sm:$0xff] %vm463_vm0, %v4220_v53  ;;  %v4221_v32 = vadd.f32 %v4161_v21, %v7037_v14  ;;  %v4579_v5 = vpop.f32.mrb[116].mxu0 }
 0xf6b   : > { %v4580_v1 = vpop.f32.mrb[117].mxu0 }
 0xf6c   : > { %4237 = vst.msk [vmem:[%s7581_s16 + $0x8] sm:$0xff] %vm463_vm0, %v4221_v32  ;;  %v4581_v35 = vadd.f32 %v4580_v1, %v4579_v5  ;;  %v4582_v8 = vpop.f32.mrb[118].mxu0 }
 0xf6d   : > { %v4583_v57 = vpop.f32.mrb[119].mxu0 }
 0xf6e   : > { %v4166_v13 = vadd.f32 %v4581_v35, %v7573_v33  ;;  %v4584_v28 = vadd.f32 %v4583_v57, %v4582_v8 }
 0xf70   : > { %v4222_v58 = vadd.f32 %v4166_v13, %v7033_v47  ;;  %v4169_v51 = vadd.f32 %v4584_v28, %v7573_v33 }
 0xf72   : > { %4238 = vst.msk [vmem:[%s7581_s16 + $0x10] sm:$0xff] %vm463_vm0, %v4222_v58  ;;  %v4223_v14 = vadd.f32 %v4169_v51, %v7044_v36 }
 0xf74   : > { %4239 = vst.msk [vmem:[%s7581_s16 + $0x18] sm:$0xff] %vm463_vm0, %v4223_v14 }
 0xf77   : > { %v4585_v34 = vpop.f32.mrb[120].mxu0 }
 0xf78   : > { %v4586_v42 = vpop.f32.mrb[121].mxu0 }
 0xf79   : > { %v4587_v38 = vadd.f32 %v4586_v42, %v4585_v34  ;;  %v4588_v56 = vpop.f32.mrb[122].mxu0 }
 0xf7a   : > { %v4589_v12 = vpop.f32.mrb[123].mxu0 }
 0xf7b   : > { %v4174_v62 = vadd.f32 %v4587_v38, %v7573_v33  ;;  %v4590_v19 = vadd.f32 %v4589_v12, %v4588_v56 }
 0xf7d   : > { %v4224_v47 = vadd.f32 %v4174_v62, %v7053_v50  ;;  %v4177_v44 = vadd.f32 %v4590_v19, %v7573_v33 }
 0xf7f   : > { %4240 = vst.msk [vmem:[%s7581_s16 + $0x20] sm:$0xff] %vm463_vm0, %v4224_v47  ;;  %v4225_v36 = vadd.f32 %v4177_v44, %v7061_v18  ;;  %v4591_v39 = vpop.f32.mrb[124].mxu0 }
 0xf80   : > { %v4592_v37 = vpop.f32.mrb[125].mxu0 }
 0xf81   : > { %4241 = vst.msk [vmem:[%s7581_s16 + $0x28] sm:$0xff] %vm463_vm0, %v4225_v36  ;;  %v4593_v49 = vadd.f32 %v4592_v37, %v4591_v39  ;;  %v4594_v61 = vpop.f32.mrb[126].mxu0 }
 0xf82   : > { %v4595_v23 = vpop.f32.mrb[127].mxu0 }
 0xf83   : > { %v4182_v9 = vadd.f32 %v4593_v49, %v7573_v33  ;;  %v4596_v43 = vadd.f32 %v4595_v23, %v4594_v61 }
 0xf85   : > { %v4226_v50 = vadd.f32 %v4182_v9, %v7058_v0  ;;  %v4185_v20 = vadd.f32 %v4596_v43, %v7573_v33 }
 0xf87   : > { %4242 = vst.msk [vmem:[%s7581_s16 + $0x30] sm:$0xff] %vm463_vm0, %v4226_v50  ;;  %v4227_v18 = vadd.f32 %v4185_v20, %v7066_v31 }
 0xf89   : > { %4243 = vst.msk [vmem:[%s7581_s16 + $0x38] sm:$0xff] %vm463_vm0, %v4227_v18 }
 0xf9e   : > { %v4597_v7 = vpop.f32.mrb[128].mxu0 }
 0xf9f   : > { %v4598_v54 = vpop.f32.mrb[129].mxu0 }
 0xfa0   : > { %v4599_v17 = vadd.f32 %v4598_v54, %v4597_v7  ;;  %v4600_v60 = vpop.f32.mrb[130].mxu0 }
 0xfa1   : > { %v4601_v63 = vpop.f32.mrb[131].mxu0 }
 0xfa2   : > { %v4190_v24 = vadd.f32 %v4599_v17, %v7573_v33  ;;  %v4602_v22 = vadd.f32 %v4601_v63, %v4600_v60 }
 0xfa4   : > { %v4228_v0 = vadd.f32 %v4190_v24, %v7077_v10  ;;  %v4193_v4 = vadd.f32 %v4602_v22, %v7573_v33 }
 0xfa6   : > { %4244 = vst.msk [vmem:[%s7581_s16 + $0x40] sm:$0xff] %vm463_vm0, %v4228_v0  ;;  %v4229_v31 = vadd.f32 %v4193_v4, %v7085_v59  ;;  %v4603_v11 = vpop.f32.mrb[132].mxu0 }
 0xfa7   : > { %v4604_v3 = vpop.f32.mrb[133].mxu0 }
 0xfa8   : > { %4245 = vst.msk [vmem:[%s7581_s16 + $0x48] sm:$0xff] %vm463_vm0, %v4229_v31  ;;  %v4605_v2 = vadd.f32 %v4604_v3, %v4603_v11  ;;  %v4606_v45 = vpop.f32.mrb[134].mxu0 }
 0xfa9   : > { %v4607_v41 = vpop.f32.mrb[135].mxu0 }
 0xfaa   : > { %v4198_v30 = vadd.f32 %v4605_v2, %v7573_v33  ;;  %v4608_v29 = vadd.f32 %v4607_v41, %v4606_v45 }
 0xfac   : > { %v4230_v46 = vadd.f32 %v4198_v30, %v7082_v40  ;;  %v4201_v10 = vadd.f32 %v4608_v29, %v7573_v33 }
 0xfae   : > { %4246 = vst.msk [vmem:[%s7581_s16 + $0x50] sm:$0xff] %vm463_vm0, %v4230_v46  ;;  %v4231_v6 = vadd.f32 %v4201_v10, %v7090_v25 }
 0xfb0   : > { %4247 = vst.msk [vmem:[%s7581_s16 + $0x58] sm:$0xff] %vm463_vm0, %v4231_v6 }
 0xfb9   : > { %v4609_v59 = vpop.f32.mrb[136].mxu0 }
 0xfba   : > { %v4610_v26 = vpop.f32.mrb[137].mxu0 }
 0xfbb   : > { %v4611_v55 = vadd.f32 %v4610_v26, %v4609_v59  ;;  %v4612_v52 = vpop.f32.mrb[138].mxu0 }
 0xfbc   : > { %v4613_v53 = vpop.f32.mrb[139].mxu0  ;;  %v4615_v21 = vpop.f32.mrb[96].mxu1 }
 0xfbd   : > { %v4206_v32 = vadd.f32 %v4611_v55, %v7573_v33  ;;  %v4614_v40 = vadd.f32 %v4613_v53, %v4612_v52  ;;  %v4616_v5 = vpop.f32.mrb[97].mxu1 }
 0xfbe   : > { %v4617_v1 = vadd.f32 %v4616_v5, %v4615_v21  ;;  %v4618_v35 = vpop.f32.mrb[98].mxu1 }
 0xfbf   : > { %v4232_v25 = vadd.f32 %v4206_v32, %v7101_v27  ;;  %v4209_v8 = vadd.f32 %v4614_v40, %v7573_v33  ;;  %v4619_v57 = vpop.f32.mrb[99].mxu1 }
 0xfc0   : > { %v4214_v13 = vadd.f32 %v4617_v1, %v7573_v33  ;;  %v4620_v28 = vadd.f32 %v4619_v57, %v4618_v35 }
 0xfc1   : > { %4248 = vst.msk [vmem:[%s7581_s16 + $0x60] sm:$0xff] %vm463_vm0, %v4232_v25  ;;  %v4233_v58 = vadd.f32 %v4209_v8, %v7109_v16 }
 0xfc2   : > { %v4234_v51 = vadd.f32 %v4214_v13, %v7106_v15  ;;  %v4217_v14 = vadd.f32 %v4620_v28, %v7573_v33 }
 0xfc3   : > { %4249 = vst.msk [vmem:[%s7581_s16 + $0x68] sm:$0xff] %vm463_vm0, %v4233_v58 }
 0xfc4   : > { %4250 = vst.msk [vmem:[%s7581_s16 + $0x70] sm:$0xff] %vm463_vm0, %v4234_v51  ;;  %v4235_v27 = vadd.f32 %v4217_v14, %v7114_v48 }
 0xfc6   : > { %4251 = vst.msk [vmem:[%s7581_s16 + $0x78] sm:$0xff] %vm463_vm0, %v4235_v27 }
 0xfc7 PF: > { %s23_s25 = sadd.s32 1, %s5416_s25  }
 0xfc8   : > { %p20_p4 = scmp.ge.s32.totalorder %s23_s25, 4  }
 0xfca   :  { %22 = sbr.rel (!%p20_p4) target bundleno = 1 (0x1), region = 102 }

</bundles_post_ra>
